<compile_context>
chip_gen: v5e
topology: v5e:2x2
jax: 0.10.0
libtpu: 0.0.40
codegen_flags: <defaults>
</compile_context>

<pallas_src>
import functools

import jax
import jax.numpy as jnp
from jax import lax
from jax.experimental import pallas as pl
from jax.experimental.pallas import tpu as pltpu


def _rnn_kernel(S, B, H, C, E, A,
                img_ref, emb_ref, init_ref,
                w0_ref, b0_ref, w1_ref, b1_ref,
                wa_ref, ba_ref, wo_ref, bo_ref,
                logits_ref, fstate_ref,
                pre_scr, c1_scr):
    # ---------------- once-per-call work (off the serial recurrence) --------
    # MaxPool1d(kernel=10) over the length axis -> [B, C]
    img_pooled = jnp.max(img_ref[...], axis=-1)

    # Loop-invariant image contribution to layer-0 gates (+ bias): [B, 4H].
    img_gate = (jnp.dot(img_pooled, w0_ref[:C, :],
                        preferred_element_type=jnp.float32)
                + b0_ref[...])

    # Token contributions for ALL steps in one batched matmul (teacher forcing):
    # [S*B, E] @ [E, 4H] -> stored in VMEM scratch, sliced per step below.
    pre_scr[...] = jnp.dot(emb_ref[...], w0_ref[C:C + E, :],
                           preferred_element_type=jnp.float32)

    h0 = init_ref[0, :, :H]
    c0 = init_ref[0, :, H:]
    h1 = init_ref[1, :, :H]
    c1 = init_ref[1, :, H:]

    # ---------------- serial recurrence over time ----------------------------
    def step(s, carry):
        h0, c0, h1, c1 = carry
        row = pl.multiple_of(s * B, B)

        # ---- LSTM cell 0: only the recurrent matmul is on the serial path.
        gates0 = (pre_scr[pl.ds(row, B), :]
                  + img_gate
                  + jnp.dot(h0, w0_ref[C + E:, :],
                            preferred_element_type=jnp.float32))
        sg0 = jax.nn.sigmoid(gates0)          # full [B, 4H] lane-dense EUP pass
        tg0 = jnp.tanh(gates0)                # full [B, 4H] lane-dense EUP pass
        i0 = sg0[:, 0:H]
        f0 = sg0[:, H:2 * H]
        o0 = sg0[:, 2 * H:3 * H]
        g0 = tg0[:, 3 * H:4 * H]
        c0n = f0 * c0 + i0 * g0
        h0n = o0 * jnp.tanh(c0n)

        # ---- attention layer on cat(h0n, c0n): single K=2H matmul
        att = (jnp.dot(jnp.concatenate([h0n, c0n], axis=-1), wa_ref[...],
                       preferred_element_type=jnp.float32)
               + ba_ref[...])

        # ---- LSTM cell 1: one fused K=(H+A+H) matmul on cat(h0n, att, h1)
        x1 = jnp.concatenate([h0n, att, h1], axis=-1)
        gates1 = (jnp.dot(x1, w1_ref[...],
                          preferred_element_type=jnp.float32)
                  + b1_ref[...])
        sg1 = jax.nn.sigmoid(gates1)
        tg1 = jnp.tanh(gates1)
        i1 = sg1[:, 0:H]
        f1 = sg1[:, H:2 * H]
        o1 = sg1[:, 2 * H:3 * H]
        g1 = tg1[:, 3 * H:4 * H]
        c1n = f1 * c1 + i1 * g1
        h1n = o1 * jnp.tanh(c1n)

        # stash layer-1 memory cell; vocab projection happens after the loop
        c1_scr[pl.ds(row, B), :] = c1n
        return h0n, c0n, h1n, c1n

    h0, c0, h1, c1 = lax.fori_loop(0, S, step, (h0, c0, h1, c1), unroll=True)

    # ---------------- epilogue: one big projection + single state writeback --
    logits = (jnp.dot(c1_scr[...], wo_ref[...],
                      preferred_element_type=jnp.float32)
              + bo_ref[...])
    logits_ref[...] = logits.astype(logits_ref.dtype)

    fstate_ref[0] = jnp.concatenate([h0, c0], axis=-1).astype(fstate_ref.dtype)
    fstate_ref[1] = jnp.concatenate([h1, c1], axis=-1).astype(fstate_ref.dtype)


def rnn_forward(xTokens, baseimgfeat, initial_state, params):
    B, S = xTokens.shape
    emb_table = params["embedding"]
    E = emb_table.shape[1]
    H = params["H"]
    A = params["A"]
    C = baseimgfeat.shape[1]
    V = params["wo"].shape[1]

    # glue: embedding lookup + layout to [S*B, E] (row s*B+b = step s, batch b)
    emb = emb_table[xTokens]                              # [B, S, E]
    emb_flat = jnp.transpose(emb, (1, 0, 2)).reshape(S * B, E)

    kernel = functools.partial(_rnn_kernel, S, B, H, C, E, A)

    grid_spec = pltpu.PrefetchScalarGridSpec(
        num_scalar_prefetch=0,
        grid=(1,),
        in_specs=[
            pl.BlockSpec(baseimgfeat.shape, lambda i: (0, 0, 0)),
            pl.BlockSpec((S * B, E), lambda i: (0, 0)),
            pl.BlockSpec(initial_state.shape, lambda i: (0, 0, 0)),
            pl.BlockSpec(params["w0"].shape, lambda i: (0, 0)),
            pl.BlockSpec(params["b0"].shape, lambda i: (0, 0)),
            pl.BlockSpec(params["w1"].shape, lambda i: (0, 0)),
            pl.BlockSpec(params["b1"].shape, lambda i: (0, 0)),
            pl.BlockSpec(params["wa"].shape, lambda i: (0, 0)),
            pl.BlockSpec(params["ba"].shape, lambda i: (0, 0)),
            pl.BlockSpec(params["wo"].shape, lambda i: (0, 0)),
            pl.BlockSpec(params["bo"].shape, lambda i: (0, 0)),
        ],
        out_specs=[
            pl.BlockSpec((S * B, V), lambda i: (0, 0)),
            pl.BlockSpec((2, B, 2 * H), lambda i: (0, 0, 0)),
        ],
        scratch_shapes=[
            pltpu.VMEM((S * B, 4 * H), jnp.float32),   # precomputed token gates
            pltpu.VMEM((S * B, H), jnp.float32),       # per-step c1 for logits
        ],
    )

    logits_flat, final_state = pl.pallas_call(
        kernel,
        grid_spec=grid_spec,
        out_shape=(
            jax.ShapeDtypeStruct((S * B, V), jnp.float32),
            jax.ShapeDtypeStruct((2, B, 2 * H), jnp.float32),
        ),
        compiler_params=pltpu.CompilerParams(dimension_semantics=("arbitrary",)),
    )(baseimgfeat, emb_flat, initial_state,
      params["w0"], params["b0"], params["w1"], params["b1"],
      params["wa"], params["ba"], params["wo"], params["bo"])

    logits = jnp.transpose(logits_flat.reshape(S, B, V), (1, 0, 2))   # [B, S, V]
    return logits, final_state


# ---------------- pure-JAX reference (mirrors the PyTorch code) ----------------
def _lstm_cell_ref(x, state_old, w, b, H):
    h = state_old[:, :H]
    c = state_old[:, H:]
    x2 = jnp.concatenate([x, h], axis=1)
    g = x2 @ w + b
    i = jax.nn.sigmoid(g[:, 0:H])
    f = jax.nn.sigmoid(g[:, H:2 * H])
    o = jax.nn.sigmoid(g[:, 2 * H:3 * H])
    ct = jnp.tanh(g[:, 3 * H:4 * H])
    c_new = f * c + i * ct
    return jnp.concatenate([o * jnp.tanh(c_new), c_new], axis=1)


def rnn_reference(xTokens, baseimgfeat, initial_state, params):
    B, S = xTokens.shape
    H = params["H"]
    emb = params["embedding"][xTokens]
    img_pooled = jnp.max(baseimgfeat, axis=-1)      # MaxPool1d(10) then squeeze
    state = initial_state
    tok = emb[:, 0, :]
    logits_list = []
    for kk in range(S):
        lvl0 = jnp.concatenate([img_pooled, tok], axis=1)
        s0 = _lstm_cell_ref(lvl0, state[0], params["w0"], params["b0"], H)
        att = s0 @ params["wa"] + params["ba"]
        curr = jnp.concatenate([s0[:, :H], att], axis=1)
        s1 = _lstm_cell_ref(curr, state[1], params["w1"], params["b1"], H)
        logits = s1[:, H:] @ params["wo"] + params["bo"]
        logits_list.append(logits)
        state = jnp.stack([s0, s1], axis=0)
        if kk < S - 1:
            tok = emb[:, kk + 1, :]
    return jnp.stack(logits_list, axis=1), state


if __name__ == "__main__":
    B, S = 8, 8             # batch, truncated_backprop_length
    E = 32                  # embedding size
    C = 32                  # image feature channels
    L = 10                  # image feature length (MaxPool1d(10) -> 1)
    H = 32                  # hidden_state_size
    A = 32                  # attention layer output size
    V = 128                 # vocabulary size
    # input_size = C + E = 64 ; last_layer_state_size = H + A = 64

    key = jax.random.PRNGKey(0)
    ks = jax.random.split(key, 12)

    def gate_stack(k, in_dim):
        # 4 gates (i, f, o, c_tilde), each [in_dim+H, H], Var = 1/(in_dim+H)
        sub = jax.random.split(k, 4)
        mats = [jax.random.normal(sk, (in_dim + H, H), jnp.float32)
                / jnp.sqrt(jnp.float32(in_dim + H)) for sk in sub]
        return jnp.concatenate(mats, axis=1)        # [in_dim+H, 4H]

    params = {
        "H": H,
        "A": A,
        "embedding": jax.random.normal(ks[0], (V, E), jnp.float32),
        "w0": gate_stack(ks[1], C + E),
        "b0": jnp.zeros((1, 4 * H), jnp.float32),
        "w1": gate_stack(ks[2], H + A),
        "b1": jnp.zeros((1, 4 * H), jnp.float32),
        "wa": jax.random.normal(ks[3], (2 * H, A), jnp.float32) / jnp.sqrt(jnp.float32(2 * H)),
        "ba": jnp.zeros((1, A), jnp.float32),
        "wo": jax.random.normal(ks[4], (H, V), jnp.float32) / jnp.sqrt(jnp.float32(H)),
        "bo": jnp.zeros((1, V), jnp.float32),
    }

    xTokens = jax.random.randint(ks[5], (B, S), 0, V, dtype=jnp.int32)
    baseimgfeat = jax.random.normal(ks[6], (B, C, L), jnp.float32)
    initial_state = 0.1 * jax.random.normal(ks[7], (2, B, 2 * H), jnp.float32)

    logits, final_state = rnn_forward(xTokens, baseimgfeat, initial_state, params)
    jax.block_until_ready((logits, final_state))

    ref_logits, ref_state = rnn_reference(xTokens, baseimgfeat, initial_state, params)
    assert logits.shape == (B, S, V) and final_state.shape == (2, B, 2 * H)
    assert jnp.allclose(logits, ref_logits, atol=1e-2, rtol=1e-2)
    assert jnp.allclose(final_state, ref_state, atol=1e-2, rtol=1e-2)

    print("KERNEL_OK")
</pallas_src>

<mosaic_0001>
module attributes {stable_mosaic.version = 11 : i64} {
  func.func @_rnn_kernel(%arg0: i32, %arg1: memref<8x32x10xf32, #tpu.memory_space<vmem>>, %arg2: memref<64x32xf32, #tpu.memory_space<vmem>>, %arg3: memref<2x8x64xf32, #tpu.memory_space<vmem>>, %arg4: memref<96x128xf32, #tpu.memory_space<vmem>>, %arg5: memref<1x128xf32, #tpu.memory_space<vmem>>, %arg6: memref<96x128xf32, #tpu.memory_space<vmem>>, %arg7: memref<1x128xf32, #tpu.memory_space<vmem>>, %arg8: memref<64x32xf32, #tpu.memory_space<vmem>>, %arg9: memref<1x32xf32, #tpu.memory_space<vmem>>, %arg10: memref<32x128xf32, #tpu.memory_space<vmem>>, %arg11: memref<1x128xf32, #tpu.memory_space<vmem>>, %arg12: memref<64x128xf32, #tpu.memory_space<vmem>>, %arg13: memref<2x8x64xf32, #tpu.memory_space<vmem>>, %arg14: memref<64x128xf32, #tpu.memory_space<vmem>>, %arg15: memref<64x32xf32, #tpu.memory_space<vmem>>) attributes {dimension_semantics = [#tpu.dimension_semantics<arbitrary>], iteration_bounds = array<i64: 1>, scalar_prefetch = 0 : i64, scratch_operands = 2 : i64, tpu.core_type = #tpu.core_type<tc>, window_params = [{pipeline_mode = #tpu.pipeline_mode<synchronous>, transform_indices = @transform_0, window_bounds = array<i64: 8, 32, 10>}, {pipeline_mode = #tpu.pipeline_mode<synchronous>, transform_indices = @transform_1, window_bounds = array<i64: 64, 32>}, {pipeline_mode = #tpu.pipeline_mode<synchronous>, transform_indices = @transform_2, window_bounds = array<i64: 2, 8, 64>}, {pipeline_mode = #tpu.pipeline_mode<synchronous>, transform_indices = @transform_3, window_bounds = array<i64: 96, 128>}, {pipeline_mode = #tpu.pipeline_mode<synchronous>, transform_indices = @transform_4, window_bounds = array<i64: 1, 128>}, {pipeline_mode = #tpu.pipeline_mode<synchronous>, transform_indices = @transform_5, window_bounds = array<i64: 96, 128>}, {pipeline_mode = #tpu.pipeline_mode<synchronous>, transform_indices = @transform_6, window_bounds = array<i64: 1, 128>}, {pipeline_mode = #tpu.pipeline_mode<synchronous>, transform_indices = @transform_7, window_bounds = array<i64: 64, 32>}, {pipeline_mode = #tpu.pipeline_mode<synchronous>, transform_indices = @transform_8, window_bounds = array<i64: 1, 32>}, {pipeline_mode = #tpu.pipeline_mode<synchronous>, transform_indices = @transform_9, window_bounds = array<i64: 32, 128>}, {pipeline_mode = #tpu.pipeline_mode<synchronous>, transform_indices = @transform_10, window_bounds = array<i64: 1, 128>}, {pipeline_mode = #tpu.pipeline_mode<synchronous>, transform_indices = @transform_11, window_bounds = array<i64: 64, 128>}, {pipeline_mode = #tpu.pipeline_mode<synchronous>, transform_indices = @transform_12, window_bounds = array<i64: 2, 8, 64>}]} {
    %c0 = arith.constant 0 : index
    %c0_0 = arith.constant 0 : index
    %c0_1 = arith.constant 0 : index
    %0 = vector.load %arg1[%c0, %c0_0, %c0_1] : memref<8x32x10xf32, #tpu.memory_space<vmem>>, vector<8x32x10xf32>
    %cst = arith.constant dense<0xFF800000> : vector<8x32xf32>
    %1 = vector.multi_reduction <maximumf>, %0, %cst [2] : vector<8x32x10xf32> to vector<8x32xf32>
    %c0_2 = arith.constant 0 : index
    %c0_3 = arith.constant 0 : index
    %2 = vector.load %arg4[%c0_2, %c0_3] : memref<96x128xf32, #tpu.memory_space<vmem>>, vector<32x128xf32>
    %cst_4 = arith.constant dense<0.000000e+00> : vector<8x128xf32>
    %3 = tpu.matmul %1, %2, %cst_4 {dimension_numbers = #tpu.dot_dimension_numbers<[1], [0], [0], [1], [0, 0, 1, 1], [], []>} : vector<8x32xf32>, vector<32x128xf32>, vector<8x128xf32> -> vector<8x128xf32>
    %c0_5 = arith.constant 0 : index
    %c0_6 = arith.constant 0 : index
    %4 = vector.load %arg5[%c0_5, %c0_6] : memref<1x128xf32, #tpu.memory_space<vmem>>, vector<1x128xf32>
    %5 = vector.broadcast %4 : vector<1x128xf32> to vector<8x128xf32>
    %6 = arith.addf %3, %5 : vector<8x128xf32>
    %c0_7 = arith.constant 0 : index
    %c0_8 = arith.constant 0 : index
    %7 = vector.load %arg2[%c0_7, %c0_8] : memref<64x32xf32, #tpu.memory_space<vmem>>, vector<64x32xf32>
    %c32 = arith.constant 32 : index
    %c0_9 = arith.constant 0 : index
    %8 = vector.load %arg4[%c32, %c0_9] : memref<96x128xf32, #tpu.memory_space<vmem>>, vector<32x128xf32>
    %cst_10 = arith.constant dense<0.000000e+00> : vector<64x128xf32>
    %9 = tpu.matmul %7, %8, %cst_10 {dimension_numbers = #tpu.dot_dimension_numbers<[1], [0], [0], [1], [0, 0, 1, 1], [], []>} : vector<64x32xf32>, vector<32x128xf32>, vector<64x128xf32> -> vector<64x128xf32>
    %c0_11 = arith.constant 0 : index
    %c0_12 = arith.constant 0 : index
    %10 = vector.load %arg14[%c0_11, %c0_12] : memref<64x128xf32, #tpu.memory_space<vmem>>, vector<64x128xf32>
    tpu.vector_store %arg14[%c0_11, %c0_12], %9 {strides = array<i32>} : memref<64x128xf32, #tpu.memory_space<vmem>>, vector<64x128xf32>,
    %c0_13 = arith.constant 0 : index
    %c0_14 = arith.constant 0 : index
    %c0_15 = arith.constant 0 : index
    %11 = vector.load %arg3[%c0_13, %c0_14, %c0_15] : memref<2x8x64xf32, #tpu.memory_space<vmem>>, vector<1x8x32xf32>
    %12 = vector.shape_cast %11 : vector<1x8x32xf32> to vector<8x32xf32>
    %c0_16 = arith.constant 0 : index
    %c0_17 = arith.constant 0 : index
    %c32_18 = arith.constant 32 : index
    %13 = vector.load %arg3[%c0_16, %c0_17, %c32_18] : memref<2x8x64xf32, #tpu.memory_space<vmem>>, vector<1x8x32xf32>
    %14 = vector.shape_cast %13 : vector<1x8x32xf32> to vector<8x32xf32>
    %c1 = arith.constant 1 : index
    %c0_19 = arith.constant 0 : index
    %c0_20 = arith.constant 0 : index
    %15 = vector.load %arg3[%c1, %c0_19, %c0_20] : memref<2x8x64xf32, #tpu.memory_space<vmem>>, vector<1x8x32xf32>
    %16 = vector.shape_cast %15 : vector<1x8x32xf32> to vector<8x32xf32>
    %c1_21 = arith.constant 1 : index
    %c0_22 = arith.constant 0 : index
    %c32_23 = arith.constant 32 : index
    %17 = vector.load %arg3[%c1_21, %c0_22, %c32_23] : memref<2x8x64xf32, #tpu.memory_space<vmem>>, vector<1x8x32xf32>
    %18 = vector.shape_cast %17 : vector<1x8x32xf32> to vector<8x32xf32>
    %c0_i32 = arith.constant 0 : i32
    %c8_i32 = arith.constant 8 : i32
    %19 = arith.muli %c0_i32, %c8_i32 : i32
    %20 = tpu.assume_multiple %19, 8 : i32
    %21 = arith.index_cast %20 : i32 to index
    %c0_24 = arith.constant 0 : index
    %22 = vector.load %arg14[%21, %c0_24] : memref<64x128xf32, #tpu.memory_space<vmem>>, vector<8x128xf32>
    %23 = arith.addf %22, %6 : vector<8x128xf32>
    %c64 = arith.constant 64 : index
    %c0_25 = arith.constant 0 : index
    %24 = vector.load %arg4[%c64, %c0_25] : memref<96x128xf32, #tpu.memory_space<vmem>>, vector<32x128xf32>
    %cst_26 = arith.constant dense<0.000000e+00> : vector<8x128xf32>
    %25 = tpu.matmul %12, %24, %cst_26 {dimension_numbers = #tpu.dot_dimension_numbers<[1], [0], [0], [1], [0, 0, 1, 1], [], []>} : vector<8x32xf32>, vector<32x128xf32>, vector<8x128xf32> -> vector<8x128xf32>
    %26 = arith.addf %23, %25 : vector<8x128xf32>
    %27 = arith.negf %26 : vector<8x128xf32>
    %28 = math.exp %27 : vector<8x128xf32>
    %cst_27 = arith.constant 1.000000e+00 : f32
    %29 = vector.broadcast %cst_27 : f32 to vector<8x128xf32>
    %30 = arith.addf %29, %28 : vector<8x128xf32>
    %31 = arith.divf %29, %30 : vector<8x128xf32>
    %32 = math.tanh %26 : vector<8x128xf32>
    %33 = vector.extract_strided_slice %31 {offsets = [0, 0], sizes = [8, 32], strides = [1, 1]} : vector<8x128xf32> to vector<8x32xf32>
    %34 = vector.extract_strided_slice %31 {offsets = [0, 32], sizes = [8, 32], strides = [1, 1]} : vector<8x128xf32> to vector<8x32xf32>
    %35 = vector.extract_strided_slice %31 {offsets = [0, 64], sizes = [8, 32], strides = [1, 1]} : vector<8x128xf32> to vector<8x32xf32>
    %36 = vector.extract_strided_slice %32 {offsets = [0, 96], sizes = [8, 32], strides = [1, 1]} : vector<8x128xf32> to vector<8x32xf32>
    %37 = arith.mulf %34, %14 : vector<8x32xf32>
    %38 = arith.mulf %33, %36 : vector<8x32xf32>
    %39 = arith.addf %37, %38 : vector<8x32xf32>
    %40 = math.tanh %39 : vector<8x32xf32>
    %41 = arith.mulf %35, %40 : vector<8x32xf32>
    %42 = tpu.concatenate %41, %39 in 1 : vector<8x32xf32>, vector<8x32xf32> -> vector<8x64xf32>
    %c0_28 = arith.constant 0 : index
    %c0_29 = arith.constant 0 : index
    %43 = vector.load %arg8[%c0_28, %c0_29] : memref<64x32xf32, #tpu.memory_space<vmem>>, vector<64x32xf32>
    %cst_30 = arith.constant dense<0.000000e+00> : vector<8x32xf32>
    %44 = tpu.matmul %42, %43, %cst_30 {dimension_numbers = #tpu.dot_dimension_numbers<[1], [0], [0], [1], [0, 0, 1, 1], [], []>} : vector<8x64xf32>, vector<64x32xf32>, vector<8x32xf32> -> vector<8x32xf32>
    %c0_31 = arith.constant 0 : index
    %c0_32 = arith.constant 0 : index
    %45 = vector.load %arg9[%c0_31, %c0_32] : memref<1x32xf32, #tpu.memory_space<vmem>>, vector<1x32xf32>
    %46 = vector.broadcast %45 : vector<1x32xf32> to vector<8x32xf32>
    %47 = arith.addf %44, %46 : vector<8x32xf32>
    %48 = tpu.concatenate %41, %47, %16 in 1 : vector<8x32xf32>, vector<8x32xf32>, vector<8x32xf32> -> vector<8x96xf32>
    %c0_33 = arith.constant 0 : index
    %c0_34 = arith.constant 0 : index
    %49 = vector.load %arg6[%c0_33, %c0_34] : memref<96x128xf32, #tpu.memory_space<vmem>>, vector<96x128xf32>
    %cst_35 = arith.constant dense<0.000000e+00> : vector<8x128xf32>
    %50 = tpu.matmul %48, %49, %cst_35 {dimension_numbers = #tpu.dot_dimension_numbers<[1], [0], [0], [1], [0, 0, 1, 1], [], []>} : vector<8x96xf32>, vector<96x128xf32>, vector<8x128xf32> -> vector<8x128xf32>
    %c0_36 = arith.constant 0 : index
    %c0_37 = arith.constant 0 : index
    %51 = vector.load %arg7[%c0_36, %c0_37] : memref<1x128xf32, #tpu.memory_space<vmem>>, vector<1x128xf32>
    %52 = vector.broadcast %51 : vector<1x128xf32> to vector<8x128xf32>
    %53 = arith.addf %50, %52 : vector<8x128xf32>
    %54 = arith.negf %53 : vector<8x128xf32>
    %55 = math.exp %54 : vector<8x128xf32>
    %cst_38 = arith.constant 1.000000e+00 : f32
    %56 = vector.broadcast %cst_38 : f32 to vector<8x128xf32>
    %57 = arith.addf %56, %55 : vector<8x128xf32>
    %58 = arith.divf %56, %57 : vector<8x128xf32>
    %59 = math.tanh %53 : vector<8x128xf32>
    %60 = vector.extract_strided_slice %58 {offsets = [0, 0], sizes = [8, 32], strides = [1, 1]} : vector<8x128xf32> to vector<8x32xf32>
    %61 = vector.extract_strided_slice %58 {offsets = [0, 32], sizes = [8, 32], strides = [1, 1]} : vector<8x128xf32> to vector<8x32xf32>
    %62 = vector.extract_strided_slice %58 {offsets = [0, 64], sizes = [8, 32], strides = [1, 1]} : vector<8x128xf32> to vector<8x32xf32>
    %63 = vector.extract_strided_slice %59 {offsets = [0, 96], sizes = [8, 32], strides = [1, 1]} : vector<8x128xf32> to vector<8x32xf32>
    %64 = arith.mulf %61, %18 : vector<8x32xf32>
    %65 = arith.mulf %60, %63 : vector<8x32xf32>
    %66 = arith.addf %64, %65 : vector<8x32xf32>
    %67 = math.tanh %66 : vector<8x32xf32>
    %68 = arith.mulf %62, %67 : vector<8x32xf32>
    %69 = arith.index_cast %20 : i32 to index
    %c0_39 = arith.constant 0 : index
    %70 = vector.load %arg15[%69, %c0_39] : memref<64x32xf32, #tpu.memory_space<vmem>>, vector<8x32xf32>
    tpu.vector_store %arg15[%69, %c0_39], %66 {strides = array<i32>} : memref<64x32xf32, #tpu.memory_space<vmem>>, vector<8x32xf32>,
    %c1_i32 = arith.constant 1 : i32
    %c8_i32_40 = arith.constant 8 : i32
    %71 = arith.muli %c1_i32, %c8_i32_40 : i32
    %72 = tpu.assume_multiple %71, 8 : i32
    %73 = arith.index_cast %72 : i32 to index
    %c0_41 = arith.constant 0 : index
    %74 = vector.load %arg14[%73, %c0_41] : memref<64x128xf32, #tpu.memory_space<vmem>>, vector<8x128xf32>
    %75 = arith.addf %74, %6 : vector<8x128xf32>
    %c64_42 = arith.constant 64 : index
    %c0_43 = arith.constant 0 : index
    %76 = vector.load %arg4[%c64_42, %c0_43] : memref<96x128xf32, #tpu.memory_space<vmem>>, vector<32x128xf32>
    %cst_44 = arith.constant dense<0.000000e+00> : vector<8x128xf32>
    %77 = tpu.matmul %41, %76, %cst_44 {dimension_numbers = #tpu.dot_dimension_numbers<[1], [0], [0], [1], [0, 0, 1, 1], [], []>} : vector<8x32xf32>, vector<32x128xf32>, vector<8x128xf32> -> vector<8x128xf32>
    %78 = arith.addf %75, %77 : vector<8x128xf32>
    %79 = arith.negf %78 : vector<8x128xf32>
    %80 = math.exp %79 : vector<8x128xf32>
    %cst_45 = arith.constant 1.000000e+00 : f32
    %81 = vector.broadcast %cst_45 : f32 to vector<8x128xf32>
    %82 = arith.addf %81, %80 : vector<8x128xf32>
    %83 = arith.divf %81, %82 : vector<8x128xf32>
    %84 = math.tanh %78 : vector<8x128xf32>
    %85 = vector.extract_strided_slice %83 {offsets = [0, 0], sizes = [8, 32], strides = [1, 1]} : vector<8x128xf32> to vector<8x32xf32>
    %86 = vector.extract_strided_slice %83 {offsets = [0, 32], sizes = [8, 32], strides = [1, 1]} : vector<8x128xf32> to vector<8x32xf32>
    %87 = vector.extract_strided_slice %83 {offsets = [0, 64], sizes = [8, 32], strides = [1, 1]} : vector<8x128xf32> to vector<8x32xf32>
    %88 = vector.extract_strided_slice %84 {offsets = [0, 96], sizes = [8, 32], strides = [1, 1]} : vector<8x128xf32> to vector<8x32xf32>
    %89 = arith.mulf %86, %39 : vector<8x32xf32>
    %90 = arith.mulf %85, %88 : vector<8x32xf32>
    %91 = arith.addf %89, %90 : vector<8x32xf32>
    %92 = math.tanh %91 : vector<8x32xf32>
    %93 = arith.mulf %87, %92 : vector<8x32xf32>
    %94 = tpu.concatenate %93, %91 in 1 : vector<8x32xf32>, vector<8x32xf32> -> vector<8x64xf32>
    %c0_46 = arith.constant 0 : index
    %c0_47 = arith.constant 0 : index
    %95 = vector.load %arg8[%c0_46, %c0_47] : memref<64x32xf32, #tpu.memory_space<vmem>>, vector<64x32xf32>
    %cst_48 = arith.constant dense<0.000000e+00> : vector<8x32xf32>
    %96 = tpu.matmul %94, %95, %cst_48 {dimension_numbers = #tpu.dot_dimension_numbers<[1], [0], [0], [1], [0, 0, 1, 1], [], []>} : vector<8x64xf32>, vector<64x32xf32>, vector<8x32xf32> -> vector<8x32xf32>
    %c0_49 = arith.constant 0 : index
    %c0_50 = arith.constant 0 : index
    %97 = vector.load %arg9[%c0_49, %c0_50] : memref<1x32xf32, #tpu.memory_space<vmem>>, vector<1x32xf32>
    %98 = vector.broadcast %97 : vector<1x32xf32> to vector<8x32xf32>
    %99 = arith.addf %96, %98 : vector<8x32xf32>
    %100 = tpu.concatenate %93, %99, %68 in 1 : vector<8x32xf32>, vector<8x32xf32>, vector<8x32xf32> -> vector<8x96xf32>
    %c0_51 = arith.constant 0 : index
    %c0_52 = arith.constant 0 : index
    %101 = vector.load %arg6[%c0_51, %c0_52] : memref<96x128xf32, #tpu.memory_space<vmem>>, vector<96x128xf32>
    %cst_53 = arith.constant dense<0.000000e+00> : vector<8x128xf32>
    %102 = tpu.matmul %100, %101, %cst_53 {dimension_numbers = #tpu.dot_dimension_numbers<[1], [0], [0], [1], [0, 0, 1, 1], [], []>} : vector<8x96xf32>, vector<96x128xf32>, vector<8x128xf32> -> vector<8x128xf32>
    %c0_54 = arith.constant 0 : index
    %c0_55 = arith.constant 0 : index
    %103 = vector.load %arg7[%c0_54, %c0_55] : memref<1x128xf32, #tpu.memory_space<vmem>>, vector<1x128xf32>
    %104 = vector.broadcast %103 : vector<1x128xf32> to vector<8x128xf32>
    %105 = arith.addf %102, %104 : vector<8x128xf32>
    %106 = arith.negf %105 : vector<8x128xf32>
    %107 = math.exp %106 : vector<8x128xf32>
    %cst_56 = arith.constant 1.000000e+00 : f32
    %108 = vector.broadcast %cst_56 : f32 to vector<8x128xf32>
    %109 = arith.addf %108, %107 : vector<8x128xf32>
    %110 = arith.divf %108, %109 : vector<8x128xf32>
    %111 = math.tanh %105 : vector<8x128xf32>
    %112 = vector.extract_strided_slice %110 {offsets = [0, 0], sizes = [8, 32], strides = [1, 1]} : vector<8x128xf32> to vector<8x32xf32>
    %113 = vector.extract_strided_slice %110 {offsets = [0, 32], sizes = [8, 32], strides = [1, 1]} : vector<8x128xf32> to vector<8x32xf32>
    %114 = vector.extract_strided_slice %110 {offsets = [0, 64], sizes = [8, 32], strides = [1, 1]} : vector<8x128xf32> to vector<8x32xf32>
    %115 = vector.extract_strided_slice %111 {offsets = [0, 96], sizes = [8, 32], strides = [1, 1]} : vector<8x128xf32> to vector<8x32xf32>
    %116 = arith.mulf %113, %66 : vector<8x32xf32>
    %117 = arith.mulf %112, %115 : vector<8x32xf32>
    %118 = arith.addf %116, %117 : vector<8x32xf32>
    %119 = math.tanh %118 : vector<8x32xf32>
    %120 = arith.mulf %114, %119 : vector<8x32xf32>
    %121 = arith.index_cast %72 : i32 to index
    %c0_57 = arith.constant 0 : index
    %122 = vector.load %arg15[%121, %c0_57] : memref<64x32xf32, #tpu.memory_space<vmem>>, vector<8x32xf32>
    tpu.vector_store %arg15[%121, %c0_57], %118 {strides = array<i32>} : memref<64x32xf32, #tpu.memory_space<vmem>>, vector<8x32xf32>,
    %c2_i32 = arith.constant 2 : i32
    %c8_i32_58 = arith.constant 8 : i32
    %123 = arith.muli %c2_i32, %c8_i32_58 : i32
    %124 = tpu.assume_multiple %123, 8 : i32
    %125 = arith.index_cast %124 : i32 to index
    %c0_59 = arith.constant 0 : index
    %126 = vector.load %arg14[%125, %c0_59] : memref<64x128xf32, #tpu.memory_space<vmem>>, vector<8x128xf32>
    %127 = arith.addf %126, %6 : vector<8x128xf32>
    %c64_60 = arith.constant 64 : index
    %c0_61 = arith.constant 0 : index
    %128 = vector.load %arg4[%c64_60, %c0_61] : memref<96x128xf32, #tpu.memory_space<vmem>>, vector<32x128xf32>
    %cst_62 = arith.constant dense<0.000000e+00> : vector<8x128xf32>
    %129 = tpu.matmul %93, %128, %cst_62 {dimension_numbers = #tpu.dot_dimension_numbers<[1], [0], [0], [1], [0, 0, 1, 1], [], []>} : vector<8x32xf32>, vector<32x128xf32>, vector<8x128xf32> -> vector<8x128xf32>
    %130 = arith.addf %127, %129 : vector<8x128xf32>
    %131 = arith.negf %130 : vector<8x128xf32>
    %132 = math.exp %131 : vector<8x128xf32>
    %cst_63 = arith.constant 1.000000e+00 : f32
    %133 = vector.broadcast %cst_63 : f32 to vector<8x128xf32>
    %134 = arith.addf %133, %132 : vector<8x128xf32>
    %135 = arith.divf %133, %134 : vector<8x128xf32>
    %136 = math.tanh %130 : vector<8x128xf32>
    %137 = vector.extract_strided_slice %135 {offsets = [0, 0], sizes = [8, 32], strides = [1, 1]} : vector<8x128xf32> to vector<8x32xf32>
    %138 = vector.extract_strided_slice %135 {offsets = [0, 32], sizes = [8, 32], strides = [1, 1]} : vector<8x128xf32> to vector<8x32xf32>
    %139 = vector.extract_strided_slice %135 {offsets = [0, 64], sizes = [8, 32], strides = [1, 1]} : vector<8x128xf32> to vector<8x32xf32>
    %140 = vector.extract_strided_slice %136 {offsets = [0, 96], sizes = [8, 32], strides = [1, 1]} : vector<8x128xf32> to vector<8x32xf32>
    %141 = arith.mulf %138, %91 : vector<8x32xf32>
    %142 = arith.mulf %137, %140 : vector<8x32xf32>
    %143 = arith.addf %141, %142 : vector<8x32xf32>
    %144 = math.tanh %143 : vector<8x32xf32>
    %145 = arith.mulf %139, %144 : vector<8x32xf32>
    %146 = tpu.concatenate %145, %143 in 1 : vector<8x32xf32>, vector<8x32xf32> -> vector<8x64xf32>
    %c0_64 = arith.constant 0 : index
    %c0_65 = arith.constant 0 : index
    %147 = vector.load %arg8[%c0_64, %c0_65] : memref<64x32xf32, #tpu.memory_space<vmem>>, vector<64x32xf32>
    %cst_66 = arith.constant dense<0.000000e+00> : vector<8x32xf32>
    %148 = tpu.matmul %146, %147, %cst_66 {dimension_numbers = #tpu.dot_dimension_numbers<[1], [0], [0], [1], [0, 0, 1, 1], [], []>} : vector<8x64xf32>, vector<64x32xf32>, vector<8x32xf32> -> vector<8x32xf32>
    %c0_67 = arith.constant 0 : index
    %c0_68 = arith.constant 0 : index
    %149 = vector.load %arg9[%c0_67, %c0_68] : memref<1x32xf32, #tpu.memory_space<vmem>>, vector<1x32xf32>
    %150 = vector.broadcast %149 : vector<1x32xf32> to vector<8x32xf32>
    %151 = arith.addf %148, %150 : vector<8x32xf32>
    %152 = tpu.concatenate %145, %151, %120 in 1 : vector<8x32xf32>, vector<8x32xf32>, vector<8x32xf32> -> vector<8x96xf32>
    %c0_69 = arith.constant 0 : index
    %c0_70 = arith.constant 0 : index
    %153 = vector.load %arg6[%c0_69, %c0_70] : memref<96x128xf32, #tpu.memory_space<vmem>>, vector<96x128xf32>
    %cst_71 = arith.constant dense<0.000000e+00> : vector<8x128xf32>
    %154 = tpu.matmul %152, %153, %cst_71 {dimension_numbers = #tpu.dot_dimension_numbers<[1], [0], [0], [1], [0, 0, 1, 1], [], []>} : vector<8x96xf32>, vector<96x128xf32>, vector<8x128xf32> -> vector<8x128xf32>
    %c0_72 = arith.constant 0 : index
    %c0_73 = arith.constant 0 : index
    %155 = vector.load %arg7[%c0_72, %c0_73] : memref<1x128xf32, #tpu.memory_space<vmem>>, vector<1x128xf32>
    %156 = vector.broadcast %155 : vector<1x128xf32> to vector<8x128xf32>
    %157 = arith.addf %154, %156 : vector<8x128xf32>
    %158 = arith.negf %157 : vector<8x128xf32>
    %159 = math.exp %158 : vector<8x128xf32>
    %cst_74 = arith.constant 1.000000e+00 : f32
    %160 = vector.broadcast %cst_74 : f32 to vector<8x128xf32>
    %161 = arith.addf %160, %159 : vector<8x128xf32>
    %162 = arith.divf %160, %161 : vector<8x128xf32>
    %163 = math.tanh %157 : vector<8x128xf32>
    %164 = vector.extract_strided_slice %162 {offsets = [0, 0], sizes = [8, 32], strides = [1, 1]} : vector<8x128xf32> to vector<8x32xf32>
    %165 = vector.extract_strided_slice %162 {offsets = [0, 32], sizes = [8, 32], strides = [1, 1]} : vector<8x128xf32> to vector<8x32xf32>
    %166 = vector.extract_strided_slice %162 {offsets = [0, 64], sizes = [8, 32], strides = [1, 1]} : vector<8x128xf32> to vector<8x32xf32>
    %167 = vector.extract_strided_slice %163 {offsets = [0, 96], sizes = [8, 32], strides = [1, 1]} : vector<8x128xf32> to vector<8x32xf32>
    %168 = arith.mulf %165, %118 : vector<8x32xf32>
    %169 = arith.mulf %164, %167 : vector<8x32xf32>
    %170 = arith.addf %168, %169 : vector<8x32xf32>
    %171 = math.tanh %170 : vector<8x32xf32>
    %172 = arith.mulf %166, %171 : vector<8x32xf32>
    %173 = arith.index_cast %124 : i32 to index
    %c0_75 = arith.constant 0 : index
    %174 = vector.load %arg15[%173, %c0_75] : memref<64x32xf32, #tpu.memory_space<vmem>>, vector<8x32xf32>
    tpu.vector_store %arg15[%173, %c0_75], %170 {strides = array<i32>} : memref<64x32xf32, #tpu.memory_space<vmem>>, vector<8x32xf32>,
    %c3_i32 = arith.constant 3 : i32
    %c8_i32_76 = arith.constant 8 : i32
    %175 = arith.muli %c3_i32, %c8_i32_76 : i32
    %176 = tpu.assume_multiple %175, 8 : i32
    %177 = arith.index_cast %176 : i32 to index
    %c0_77 = arith.constant 0 : index
    %178 = vector.load %arg14[%177, %c0_77] : memref<64x128xf32, #tpu.memory_space<vmem>>, vector<8x128xf32>
    %179 = arith.addf %178, %6 : vector<8x128xf32>
    %c64_78 = arith.constant 64 : index
    %c0_79 = arith.constant 0 : index
    %180 = vector.load %arg4[%c64_78, %c0_79] : memref<96x128xf32, #tpu.memory_space<vmem>>, vector<32x128xf32>
    %cst_80 = arith.constant dense<0.000000e+00> : vector<8x128xf32>
    %181 = tpu.matmul %145, %180, %cst_80 {dimension_numbers = #tpu.dot_dimension_numbers<[1], [0], [0], [1], [0, 0, 1, 1], [], []>} : vector<8x32xf32>, vector<32x128xf32>, vector<8x128xf32> -> vector<8x128xf32>
    %182 = arith.addf %179, %181 : vector<8x128xf32>
    %183 = arith.negf %182 : vector<8x128xf32>
    %184 = math.exp %183 : vector<8x128xf32>
    %cst_81 = arith.constant 1.000000e+00 : f32
    %185 = vector.broadcast %cst_81 : f32 to vector<8x128xf32>
    %186 = arith.addf %185, %184 : vector<8x128xf32>
    %187 = arith.divf %185, %186 : vector<8x128xf32>
    %188 = math.tanh %182 : vector<8x128xf32>
    %189 = vector.extract_strided_slice %187 {offsets = [0, 0], sizes = [8, 32], strides = [1, 1]} : vector<8x128xf32> to vector<8x32xf32>
    %190 = vector.extract_strided_slice %187 {offsets = [0, 32], sizes = [8, 32], strides = [1, 1]} : vector<8x128xf32> to vector<8x32xf32>
    %191 = vector.extract_strided_slice %187 {offsets = [0, 64], sizes = [8, 32], strides = [1, 1]} : vector<8x128xf32> to vector<8x32xf32>
    %192 = vector.extract_strided_slice %188 {offsets = [0, 96], sizes = [8, 32], strides = [1, 1]} : vector<8x128xf32> to vector<8x32xf32>
    %193 = arith.mulf %190, %143 : vector<8x32xf32>
    %194 = arith.mulf %189, %192 : vector<8x32xf32>
    %195 = arith.addf %193, %194 : vector<8x32xf32>
    %196 = math.tanh %195 : vector<8x32xf32>
    %197 = arith.mulf %191, %196 : vector<8x32xf32>
    %198 = tpu.concatenate %197, %195 in 1 : vector<8x32xf32>, vector<8x32xf32> -> vector<8x64xf32>
    %c0_82 = arith.constant 0 : index
    %c0_83 = arith.constant 0 : index
    %199 = vector.load %arg8[%c0_82, %c0_83] : memref<64x32xf32, #tpu.memory_space<vmem>>, vector<64x32xf32>
    %cst_84 = arith.constant dense<0.000000e+00> : vector<8x32xf32>
    %200 = tpu.matmul %198, %199, %cst_84 {dimension_numbers = #tpu.dot_dimension_numbers<[1], [0], [0], [1], [0, 0, 1, 1], [], []>} : vector<8x64xf32>, vector<64x32xf32>, vector<8x32xf32> -> vector<8x32xf32>
    %c0_85 = arith.constant 0 : index
    %c0_86 = arith.constant 0 : index
    %201 = vector.load %arg9[%c0_85, %c0_86] : memref<1x32xf32, #tpu.memory_space<vmem>>, vector<1x32xf32>
    %202 = vector.broadcast %201 : vector<1x32xf32> to vector<8x32xf32>
    %203 = arith.addf %200, %202 : vector<8x32xf32>
    %204 = tpu.concatenate %197, %203, %172 in 1 : vector<8x32xf32>, vector<8x32xf32>, vector<8x32xf32> -> vector<8x96xf32>
    %c0_87 = arith.constant 0 : index
    %c0_88 = arith.constant 0 : index
    %205 = vector.load %arg6[%c0_87, %c0_88] : memref<96x128xf32, #tpu.memory_space<vmem>>, vector<96x128xf32>
    %cst_89 = arith.constant dense<0.000000e+00> : vector<8x128xf32>
    %206 = tpu.matmul %204, %205, %cst_89 {dimension_numbers = #tpu.dot_dimension_numbers<[1], [0], [0], [1], [0, 0, 1, 1], [], []>} : vector<8x96xf32>, vector<96x128xf32>, vector<8x128xf32> -> vector<8x128xf32>
    %c0_90 = arith.constant 0 : index
    %c0_91 = arith.constant 0 : index
    %207 = vector.load %arg7[%c0_90, %c0_91] : memref<1x128xf32, #tpu.memory_space<vmem>>, vector<1x128xf32>
    %208 = vector.broadcast %207 : vector<1x128xf32> to vector<8x128xf32>
    %209 = arith.addf %206, %208 : vector<8x128xf32>
    %210 = arith.negf %209 : vector<8x128xf32>
    %211 = math.exp %210 : vector<8x128xf32>
    %cst_92 = arith.constant 1.000000e+00 : f32
    %212 = vector.broadcast %cst_92 : f32 to vector<8x128xf32>
    %213 = arith.addf %212, %211 : vector<8x128xf32>
    %214 = arith.divf %212, %213 : vector<8x128xf32>
    %215 = math.tanh %209 : vector<8x128xf32>
    %216 = vector.extract_strided_slice %214 {offsets = [0, 0], sizes = [8, 32], strides = [1, 1]} : vector<8x128xf32> to vector<8x32xf32>
    %217 = vector.extract_strided_slice %214 {offsets = [0, 32], sizes = [8, 32], strides = [1, 1]} : vector<8x128xf32> to vector<8x32xf32>
    %218 = vector.extract_strided_slice %214 {offsets = [0, 64], sizes = [8, 32], strides = [1, 1]} : vector<8x128xf32> to vector<8x32xf32>
    %219 = vector.extract_strided_slice %215 {offsets = [0, 96], sizes = [8, 32], strides = [1, 1]} : vector<8x128xf32> to vector<8x32xf32>
    %220 = arith.mulf %217, %170 : vector<8x32xf32>
    %221 = arith.mulf %216, %219 : vector<8x32xf32>
    %222 = arith.addf %220, %221 : vector<8x32xf32>
    %223 = math.tanh %222 : vector<8x32xf32>
    %224 = arith.mulf %218, %223 : vector<8x32xf32>
    %225 = arith.index_cast %176 : i32 to index
    %c0_93 = arith.constant 0 : index
    %226 = vector.load %arg15[%225, %c0_93] : memref<64x32xf32, #tpu.memory_space<vmem>>, vector<8x32xf32>
    tpu.vector_store %arg15[%225, %c0_93], %222 {strides = array<i32>} : memref<64x32xf32, #tpu.memory_space<vmem>>, vector<8x32xf32>,
    %c4_i32 = arith.constant 4 : i32
    %c8_i32_94 = arith.constant 8 : i32
    %227 = arith.muli %c4_i32, %c8_i32_94 : i32
    %228 = tpu.assume_multiple %227, 8 : i32
    %229 = arith.index_cast %228 : i32 to index
    %c0_95 = arith.constant 0 : index
    %230 = vector.load %arg14[%229, %c0_95] : memref<64x128xf32, #tpu.memory_space<vmem>>, vector<8x128xf32>
    %231 = arith.addf %230, %6 : vector<8x128xf32>
    %c64_96 = arith.constant 64 : index
    %c0_97 = arith.constant 0 : index
    %232 = vector.load %arg4[%c64_96, %c0_97] : memref<96x128xf32, #tpu.memory_space<vmem>>, vector<32x128xf32>
    %cst_98 = arith.constant dense<0.000000e+00> : vector<8x128xf32>
    %233 = tpu.matmul %197, %232, %cst_98 {dimension_numbers = #tpu.dot_dimension_numbers<[1], [0], [0], [1], [0, 0, 1, 1], [], []>} : vector<8x32xf32>, vector<32x128xf32>, vector<8x128xf32> -> vector<8x128xf32>
    %234 = arith.addf %231, %233 : vector<8x128xf32>
    %235 = arith.negf %234 : vector<8x128xf32>
    %236 = math.exp %235 : vector<8x128xf32>
    %cst_99 = arith.constant 1.000000e+00 : f32
    %237 = vector.broadcast %cst_99 : f32 to vector<8x128xf32>
    %238 = arith.addf %237, %236 : vector<8x128xf32>
    %239 = arith.divf %237, %238 : vector<8x128xf32>
    %240 = math.tanh %234 : vector<8x128xf32>
    %241 = vector.extract_strided_slice %239 {offsets = [0, 0], sizes = [8, 32], strides = [1, 1]} : vector<8x128xf32> to vector<8x32xf32>
    %242 = vector.extract_strided_slice %239 {offsets = [0, 32], sizes = [8, 32], strides = [1, 1]} : vector<8x128xf32> to vector<8x32xf32>
    %243 = vector.extract_strided_slice %239 {offsets = [0, 64], sizes = [8, 32], strides = [1, 1]} : vector<8x128xf32> to vector<8x32xf32>
    %244 = vector.extract_strided_slice %240 {offsets = [0, 96], sizes = [8, 32], strides = [1, 1]} : vector<8x128xf32> to vector<8x32xf32>
    %245 = arith.mulf %242, %195 : vector<8x32xf32>
    %246 = arith.mulf %241, %244 : vector<8x32xf32>
    %247 = arith.addf %245, %246 : vector<8x32xf32>
    %248 = math.tanh %247 : vector<8x32xf32>
    %249 = arith.mulf %243, %248 : vector<8x32xf32>
    %250 = tpu.concatenate %249, %247 in 1 : vector<8x32xf32>, vector<8x32xf32> -> vector<8x64xf32>
    %c0_100 = arith.constant 0 : index
    %c0_101 = arith.constant 0 : index
    %251 = vector.load %arg8[%c0_100, %c0_101] : memref<64x32xf32, #tpu.memory_space<vmem>>, vector<64x32xf32>
    %cst_102 = arith.constant dense<0.000000e+00> : vector<8x32xf32>
    %252 = tpu.matmul %250, %251, %cst_102 {dimension_numbers = #tpu.dot_dimension_numbers<[1], [0], [0], [1], [0, 0, 1, 1], [], []>} : vector<8x64xf32>, vector<64x32xf32>, vector<8x32xf32> -> vector<8x32xf32>
    %c0_103 = arith.constant 0 : index
    %c0_104 = arith.constant 0 : index
    %253 = vector.load %arg9[%c0_103, %c0_104] : memref<1x32xf32, #tpu.memory_space<vmem>>, vector<1x32xf32>
    %254 = vector.broadcast %253 : vector<1x32xf32> to vector<8x32xf32>
    %255 = arith.addf %252, %254 : vector<8x32xf32>
    %256 = tpu.concatenate %249, %255, %224 in 1 : vector<8x32xf32>, vector<8x32xf32>, vector<8x32xf32> -> vector<8x96xf32>
    %c0_105 = arith.constant 0 : index
    %c0_106 = arith.constant 0 : index
    %257 = vector.load %arg6[%c0_105, %c0_106] : memref<96x128xf32, #tpu.memory_space<vmem>>, vector<96x128xf32>
    %cst_107 = arith.constant dense<0.000000e+00> : vector<8x128xf32>
    %258 = tpu.matmul %256, %257, %cst_107 {dimension_numbers = #tpu.dot_dimension_numbers<[1], [0], [0], [1], [0, 0, 1, 1], [], []>} : vector<8x96xf32>, vector<96x128xf32>, vector<8x128xf32> -> vector<8x128xf32>
    %c0_108 = arith.constant 0 : index
    %c0_109 = arith.constant 0 : index
    %259 = vector.load %arg7[%c0_108, %c0_109] : memref<1x128xf32, #tpu.memory_space<vmem>>, vector<1x128xf32>
    %260 = vector.broadcast %259 : vector<1x128xf32> to vector<8x128xf32>
    %261 = arith.addf %258, %260 : vector<8x128xf32>
    %262 = arith.negf %261 : vector<8x128xf32>
    %263 = math.exp %262 : vector<8x128xf32>
    %cst_110 = arith.constant 1.000000e+00 : f32
    %264 = vector.broadcast %cst_110 : f32 to vector<8x128xf32>
    %265 = arith.addf %264, %263 : vector<8x128xf32>
    %266 = arith.divf %264, %265 : vector<8x128xf32>
    %267 = math.tanh %261 : vector<8x128xf32>
    %268 = vector.extract_strided_slice %266 {offsets = [0, 0], sizes = [8, 32], strides = [1, 1]} : vector<8x128xf32> to vector<8x32xf32>
    %269 = vector.extract_strided_slice %266 {offsets = [0, 32], sizes = [8, 32], strides = [1, 1]} : vector<8x128xf32> to vector<8x32xf32>
    %270 = vector.extract_strided_slice %266 {offsets = [0, 64], sizes = [8, 32], strides = [1, 1]} : vector<8x128xf32> to vector<8x32xf32>
    %271 = vector.extract_strided_slice %267 {offsets = [0, 96], sizes = [8, 32], strides = [1, 1]} : vector<8x128xf32> to vector<8x32xf32>
    %272 = arith.mulf %269, %222 : vector<8x32xf32>
    %273 = arith.mulf %268, %271 : vector<8x32xf32>
    %274 = arith.addf %272, %273 : vector<8x32xf32>
    %275 = math.tanh %274 : vector<8x32xf32>
    %276 = arith.mulf %270, %275 : vector<8x32xf32>
    %277 = arith.index_cast %228 : i32 to index
    %c0_111 = arith.constant 0 : index
    %278 = vector.load %arg15[%277, %c0_111] : memref<64x32xf32, #tpu.memory_space<vmem>>, vector<8x32xf32>
    tpu.vector_store %arg15[%277, %c0_111], %274 {strides = array<i32>} : memref<64x32xf32, #tpu.memory_space<vmem>>, vector<8x32xf32>,
    %c5_i32 = arith.constant 5 : i32
    %c8_i32_112 = arith.constant 8 : i32
    %279 = arith.muli %c5_i32, %c8_i32_112 : i32
    %280 = tpu.assume_multiple %279, 8 : i32
    %281 = arith.index_cast %280 : i32 to index
    %c0_113 = arith.constant 0 : index
    %282 = vector.load %arg14[%281, %c0_113] : memref<64x128xf32, #tpu.memory_space<vmem>>, vector<8x128xf32>
    %283 = arith.addf %282, %6 : vector<8x128xf32>
    %c64_114 = arith.constant 64 : index
    %c0_115 = arith.constant 0 : index
    %284 = vector.load %arg4[%c64_114, %c0_115] : memref<96x128xf32, #tpu.memory_space<vmem>>, vector<32x128xf32>
    %cst_116 = arith.constant dense<0.000000e+00> : vector<8x128xf32>
    %285 = tpu.matmul %249, %284, %cst_116 {dimension_numbers = #tpu.dot_dimension_numbers<[1], [0], [0], [1], [0, 0, 1, 1], [], []>} : vector<8x32xf32>, vector<32x128xf32>, vector<8x128xf32> -> vector<8x128xf32>
    %286 = arith.addf %283, %285 : vector<8x128xf32>
    %287 = arith.negf %286 : vector<8x128xf32>
    %288 = math.exp %287 : vector<8x128xf32>
    %cst_117 = arith.constant 1.000000e+00 : f32
    %289 = vector.broadcast %cst_117 : f32 to vector<8x128xf32>
    %290 = arith.addf %289, %288 : vector<8x128xf32>
    %291 = arith.divf %289, %290 : vector<8x128xf32>
    %292 = math.tanh %286 : vector<8x128xf32>
    %293 = vector.extract_strided_slice %291 {offsets = [0, 0], sizes = [8, 32], strides = [1, 1]} : vector<8x128xf32> to vector<8x32xf32>
    %294 = vector.extract_strided_slice %291 {offsets = [0, 32], sizes = [8, 32], strides = [1, 1]} : vector<8x128xf32> to vector<8x32xf32>
    %295 = vector.extract_strided_slice %291 {offsets = [0, 64], sizes = [8, 32], strides = [1, 1]} : vector<8x128xf32> to vector<8x32xf32>
    %296 = vector.extract_strided_slice %292 {offsets = [0, 96], sizes = [8, 32], strides = [1, 1]} : vector<8x128xf32> to vector<8x32xf32>
    %297 = arith.mulf %294, %247 : vector<8x32xf32>
    %298 = arith.mulf %293, %296 : vector<8x32xf32>
    %299 = arith.addf %297, %298 : vector<8x32xf32>
    %300 = math.tanh %299 : vector<8x32xf32>
    %301 = arith.mulf %295, %300 : vector<8x32xf32>
    %302 = tpu.concatenate %301, %299 in 1 : vector<8x32xf32>, vector<8x32xf32> -> vector<8x64xf32>
    %c0_118 = arith.constant 0 : index
    %c0_119 = arith.constant 0 : index
    %303 = vector.load %arg8[%c0_118, %c0_119] : memref<64x32xf32, #tpu.memory_space<vmem>>, vector<64x32xf32>
    %cst_120 = arith.constant dense<0.000000e+00> : vector<8x32xf32>
    %304 = tpu.matmul %302, %303, %cst_120 {dimension_numbers = #tpu.dot_dimension_numbers<[1], [0], [0], [1], [0, 0, 1, 1], [], []>} : vector<8x64xf32>, vector<64x32xf32>, vector<8x32xf32> -> vector<8x32xf32>
    %c0_121 = arith.constant 0 : index
    %c0_122 = arith.constant 0 : index
    %305 = vector.load %arg9[%c0_121, %c0_122] : memref<1x32xf32, #tpu.memory_space<vmem>>, vector<1x32xf32>
    %306 = vector.broadcast %305 : vector<1x32xf32> to vector<8x32xf32>
    %307 = arith.addf %304, %306 : vector<8x32xf32>
    %308 = tpu.concatenate %301, %307, %276 in 1 : vector<8x32xf32>, vector<8x32xf32>, vector<8x32xf32> -> vector<8x96xf32>
    %c0_123 = arith.constant 0 : index
    %c0_124 = arith.constant 0 : index
    %309 = vector.load %arg6[%c0_123, %c0_124] : memref<96x128xf32, #tpu.memory_space<vmem>>, vector<96x128xf32>
    %cst_125 = arith.constant dense<0.000000e+00> : vector<8x128xf32>
    %310 = tpu.matmul %308, %309, %cst_125 {dimension_numbers = #tpu.dot_dimension_numbers<[1], [0], [0], [1], [0, 0, 1, 1], [], []>} : vector<8x96xf32>, vector<96x128xf32>, vector<8x128xf32> -> vector<8x128xf32>
    %c0_126 = arith.constant 0 : index
    %c0_127 = arith.constant 0 : index
    %311 = vector.load %arg7[%c0_126, %c0_127] : memref<1x128xf32, #tpu.memory_space<vmem>>, vector<1x128xf32>
    %312 = vector.broadcast %311 : vector<1x128xf32> to vector<8x128xf32>
    %313 = arith.addf %310, %312 : vector<8x128xf32>
    %314 = arith.negf %313 : vector<8x128xf32>
    %315 = math.exp %314 : vector<8x128xf32>
    %cst_128 = arith.constant 1.000000e+00 : f32
    %316 = vector.broadcast %cst_128 : f32 to vector<8x128xf32>
    %317 = arith.addf %316, %315 : vector<8x128xf32>
    %318 = arith.divf %316, %317 : vector<8x128xf32>
    %319 = math.tanh %313 : vector<8x128xf32>
    %320 = vector.extract_strided_slice %318 {offsets = [0, 0], sizes = [8, 32], strides = [1, 1]} : vector<8x128xf32> to vector<8x32xf32>
    %321 = vector.extract_strided_slice %318 {offsets = [0, 32], sizes = [8, 32], strides = [1, 1]} : vector<8x128xf32> to vector<8x32xf32>
    %322 = vector.extract_strided_slice %318 {offsets = [0, 64], sizes = [8, 32], strides = [1, 1]} : vector<8x128xf32> to vector<8x32xf32>
    %323 = vector.extract_strided_slice %319 {offsets = [0, 96], sizes = [8, 32], strides = [1, 1]} : vector<8x128xf32> to vector<8x32xf32>
    %324 = arith.mulf %321, %274 : vector<8x32xf32>
    %325 = arith.mulf %320, %323 : vector<8x32xf32>
    %326 = arith.addf %324, %325 : vector<8x32xf32>
    %327 = math.tanh %326 : vector<8x32xf32>
    %328 = arith.mulf %322, %327 : vector<8x32xf32>
    %329 = arith.index_cast %280 : i32 to index
    %c0_129 = arith.constant 0 : index
    %330 = vector.load %arg15[%329, %c0_129] : memref<64x32xf32, #tpu.memory_space<vmem>>, vector<8x32xf32>
    tpu.vector_store %arg15[%329, %c0_129], %326 {strides = array<i32>} : memref<64x32xf32, #tpu.memory_space<vmem>>, vector<8x32xf32>,
    %c6_i32 = arith.constant 6 : i32
    %c8_i32_130 = arith.constant 8 : i32
    %331 = arith.muli %c6_i32, %c8_i32_130 : i32
    %332 = tpu.assume_multiple %331, 8 : i32
    %333 = arith.index_cast %332 : i32 to index
    %c0_131 = arith.constant 0 : index
    %334 = vector.load %arg14[%333, %c0_131] : memref<64x128xf32, #tpu.memory_space<vmem>>, vector<8x128xf32>
    %335 = arith.addf %334, %6 : vector<8x128xf32>
    %c64_132 = arith.constant 64 : index
    %c0_133 = arith.constant 0 : index
    %336 = vector.load %arg4[%c64_132, %c0_133] : memref<96x128xf32, #tpu.memory_space<vmem>>, vector<32x128xf32>
    %cst_134 = arith.constant dense<0.000000e+00> : vector<8x128xf32>
    %337 = tpu.matmul %301, %336, %cst_134 {dimension_numbers = #tpu.dot_dimension_numbers<[1], [0], [0], [1], [0, 0, 1, 1], [], []>} : vector<8x32xf32>, vector<32x128xf32>, vector<8x128xf32> -> vector<8x128xf32>
    %338 = arith.addf %335, %337 : vector<8x128xf32>
    %339 = arith.negf %338 : vector<8x128xf32>
    %340 = math.exp %339 : vector<8x128xf32>
    %cst_135 = arith.constant 1.000000e+00 : f32
    %341 = vector.broadcast %cst_135 : f32 to vector<8x128xf32>
    %342 = arith.addf %341, %340 : vector<8x128xf32>
    %343 = arith.divf %341, %342 : vector<8x128xf32>
    %344 = math.tanh %338 : vector<8x128xf32>
    %345 = vector.extract_strided_slice %343 {offsets = [0, 0], sizes = [8, 32], strides = [1, 1]} : vector<8x128xf32> to vector<8x32xf32>
    %346 = vector.extract_strided_slice %343 {offsets = [0, 32], sizes = [8, 32], strides = [1, 1]} : vector<8x128xf32> to vector<8x32xf32>
    %347 = vector.extract_strided_slice %343 {offsets = [0, 64], sizes = [8, 32], strides = [1, 1]} : vector<8x128xf32> to vector<8x32xf32>
    %348 = vector.extract_strided_slice %344 {offsets = [0, 96], sizes = [8, 32], strides = [1, 1]} : vector<8x128xf32> to vector<8x32xf32>
    %349 = arith.mulf %346, %299 : vector<8x32xf32>
    %350 = arith.mulf %345, %348 : vector<8x32xf32>
    %351 = arith.addf %349, %350 : vector<8x32xf32>
    %352 = math.tanh %351 : vector<8x32xf32>
    %353 = arith.mulf %347, %352 : vector<8x32xf32>
    %354 = tpu.concatenate %353, %351 in 1 : vector<8x32xf32>, vector<8x32xf32> -> vector<8x64xf32>
    %c0_136 = arith.constant 0 : index
    %c0_137 = arith.constant 0 : index
    %355 = vector.load %arg8[%c0_136, %c0_137] : memref<64x32xf32, #tpu.memory_space<vmem>>, vector<64x32xf32>
    %cst_138 = arith.constant dense<0.000000e+00> : vector<8x32xf32>
    %356 = tpu.matmul %354, %355, %cst_138 {dimension_numbers = #tpu.dot_dimension_numbers<[1], [0], [0], [1], [0, 0, 1, 1], [], []>} : vector<8x64xf32>, vector<64x32xf32>, vector<8x32xf32> -> vector<8x32xf32>
    %c0_139 = arith.constant 0 : index
    %c0_140 = arith.constant 0 : index
    %357 = vector.load %arg9[%c0_139, %c0_140] : memref<1x32xf32, #tpu.memory_space<vmem>>, vector<1x32xf32>
    %358 = vector.broadcast %357 : vector<1x32xf32> to vector<8x32xf32>
    %359 = arith.addf %356, %358 : vector<8x32xf32>
    %360 = tpu.concatenate %353, %359, %328 in 1 : vector<8x32xf32>, vector<8x32xf32>, vector<8x32xf32> -> vector<8x96xf32>
    %c0_141 = arith.constant 0 : index
    %c0_142 = arith.constant 0 : index
    %361 = vector.load %arg6[%c0_141, %c0_142] : memref<96x128xf32, #tpu.memory_space<vmem>>, vector<96x128xf32>
    %cst_143 = arith.constant dense<0.000000e+00> : vector<8x128xf32>
    %362 = tpu.matmul %360, %361, %cst_143 {dimension_numbers = #tpu.dot_dimension_numbers<[1], [0], [0], [1], [0, 0, 1, 1], [], []>} : vector<8x96xf32>, vector<96x128xf32>, vector<8x128xf32> -> vector<8x128xf32>
    %c0_144 = arith.constant 0 : index
    %c0_145 = arith.constant 0 : index
    %363 = vector.load %arg7[%c0_144, %c0_145] : memref<1x128xf32, #tpu.memory_space<vmem>>, vector<1x128xf32>
    %364 = vector.broadcast %363 : vector<1x128xf32> to vector<8x128xf32>
    %365 = arith.addf %362, %364 : vector<8x128xf32>
    %366 = arith.negf %365 : vector<8x128xf32>
    %367 = math.exp %366 : vector<8x128xf32>
    %cst_146 = arith.constant 1.000000e+00 : f32
    %368 = vector.broadcast %cst_146 : f32 to vector<8x128xf32>
    %369 = arith.addf %368, %367 : vector<8x128xf32>
    %370 = arith.divf %368, %369 : vector<8x128xf32>
    %371 = math.tanh %365 : vector<8x128xf32>
    %372 = vector.extract_strided_slice %370 {offsets = [0, 0], sizes = [8, 32], strides = [1, 1]} : vector<8x128xf32> to vector<8x32xf32>
    %373 = vector.extract_strided_slice %370 {offsets = [0, 32], sizes = [8, 32], strides = [1, 1]} : vector<8x128xf32> to vector<8x32xf32>
    %374 = vector.extract_strided_slice %370 {offsets = [0, 64], sizes = [8, 32], strides = [1, 1]} : vector<8x128xf32> to vector<8x32xf32>
    %375 = vector.extract_strided_slice %371 {offsets = [0, 96], sizes = [8, 32], strides = [1, 1]} : vector<8x128xf32> to vector<8x32xf32>
    %376 = arith.mulf %373, %326 : vector<8x32xf32>
    %377 = arith.mulf %372, %375 : vector<8x32xf32>
    %378 = arith.addf %376, %377 : vector<8x32xf32>
    %379 = math.tanh %378 : vector<8x32xf32>
    %380 = arith.mulf %374, %379 : vector<8x32xf32>
    %381 = arith.index_cast %332 : i32 to index
    %c0_147 = arith.constant 0 : index
    %382 = vector.load %arg15[%381, %c0_147] : memref<64x32xf32, #tpu.memory_space<vmem>>, vector<8x32xf32>
    tpu.vector_store %arg15[%381, %c0_147], %378 {strides = array<i32>} : memref<64x32xf32, #tpu.memory_space<vmem>>, vector<8x32xf32>,
    %c7_i32 = arith.constant 7 : i32
    %c8_i32_148 = arith.constant 8 : i32
    %383 = arith.muli %c7_i32, %c8_i32_148 : i32
    %384 = tpu.assume_multiple %383, 8 : i32
    %385 = arith.index_cast %384 : i32 to index
    %c0_149 = arith.constant 0 : index
    %386 = vector.load %arg14[%385, %c0_149] : memref<64x128xf32, #tpu.memory_space<vmem>>, vector<8x128xf32>
    %387 = arith.addf %386, %6 : vector<8x128xf32>
    %c64_150 = arith.constant 64 : index
    %c0_151 = arith.constant 0 : index
    %388 = vector.load %arg4[%c64_150, %c0_151] : memref<96x128xf32, #tpu.memory_space<vmem>>, vector<32x128xf32>
    %cst_152 = arith.constant dense<0.000000e+00> : vector<8x128xf32>
    %389 = tpu.matmul %353, %388, %cst_152 {dimension_numbers = #tpu.dot_dimension_numbers<[1], [0], [0], [1], [0, 0, 1, 1], [], []>} : vector<8x32xf32>, vector<32x128xf32>, vector<8x128xf32> -> vector<8x128xf32>
    %390 = arith.addf %387, %389 : vector<8x128xf32>
    %391 = arith.negf %390 : vector<8x128xf32>
    %392 = math.exp %391 : vector<8x128xf32>
    %cst_153 = arith.constant 1.000000e+00 : f32
    %393 = vector.broadcast %cst_153 : f32 to vector<8x128xf32>
    %394 = arith.addf %393, %392 : vector<8x128xf32>
    %395 = arith.divf %393, %394 : vector<8x128xf32>
    %396 = math.tanh %390 : vector<8x128xf32>
    %397 = vector.extract_strided_slice %395 {offsets = [0, 0], sizes = [8, 32], strides = [1, 1]} : vector<8x128xf32> to vector<8x32xf32>
    %398 = vector.extract_strided_slice %395 {offsets = [0, 32], sizes = [8, 32], strides = [1, 1]} : vector<8x128xf32> to vector<8x32xf32>
    %399 = vector.extract_strided_slice %395 {offsets = [0, 64], sizes = [8, 32], strides = [1, 1]} : vector<8x128xf32> to vector<8x32xf32>
    %400 = vector.extract_strided_slice %396 {offsets = [0, 96], sizes = [8, 32], strides = [1, 1]} : vector<8x128xf32> to vector<8x32xf32>
    %401 = arith.mulf %398, %351 : vector<8x32xf32>
    %402 = arith.mulf %397, %400 : vector<8x32xf32>
    %403 = arith.addf %401, %402 : vector<8x32xf32>
    %404 = math.tanh %403 : vector<8x32xf32>
    %405 = arith.mulf %399, %404 : vector<8x32xf32>
    %406 = tpu.concatenate %405, %403 in 1 : vector<8x32xf32>, vector<8x32xf32> -> vector<8x64xf32>
    %c0_154 = arith.constant 0 : index
    %c0_155 = arith.constant 0 : index
    %407 = vector.load %arg8[%c0_154, %c0_155] : memref<64x32xf32, #tpu.memory_space<vmem>>, vector<64x32xf32>
    %cst_156 = arith.constant dense<0.000000e+00> : vector<8x32xf32>
    %408 = tpu.matmul %406, %407, %cst_156 {dimension_numbers = #tpu.dot_dimension_numbers<[1], [0], [0], [1], [0, 0, 1, 1], [], []>} : vector<8x64xf32>, vector<64x32xf32>, vector<8x32xf32> -> vector<8x32xf32>
    %c0_157 = arith.constant 0 : index
    %c0_158 = arith.constant 0 : index
    %409 = vector.load %arg9[%c0_157, %c0_158] : memref<1x32xf32, #tpu.memory_space<vmem>>, vector<1x32xf32>
    %410 = vector.broadcast %409 : vector<1x32xf32> to vector<8x32xf32>
    %411 = arith.addf %408, %410 : vector<8x32xf32>
    %412 = tpu.concatenate %405, %411, %380 in 1 : vector<8x32xf32>, vector<8x32xf32>, vector<8x32xf32> -> vector<8x96xf32>
    %c0_159 = arith.constant 0 : index
    %c0_160 = arith.constant 0 : index
    %413 = vector.load %arg6[%c0_159, %c0_160] : memref<96x128xf32, #tpu.memory_space<vmem>>, vector<96x128xf32>
    %cst_161 = arith.constant dense<0.000000e+00> : vector<8x128xf32>
    %414 = tpu.matmul %412, %413, %cst_161 {dimension_numbers = #tpu.dot_dimension_numbers<[1], [0], [0], [1], [0, 0, 1, 1], [], []>} : vector<8x96xf32>, vector<96x128xf32>, vector<8x128xf32> -> vector<8x128xf32>
    %c0_162 = arith.constant 0 : index
    %c0_163 = arith.constant 0 : index
    %415 = vector.load %arg7[%c0_162, %c0_163] : memref<1x128xf32, #tpu.memory_space<vmem>>, vector<1x128xf32>
    %416 = vector.broadcast %415 : vector<1x128xf32> to vector<8x128xf32>
    %417 = arith.addf %414, %416 : vector<8x128xf32>
    %418 = arith.negf %417 : vector<8x128xf32>
    %419 = math.exp %418 : vector<8x128xf32>
    %cst_164 = arith.constant 1.000000e+00 : f32
    %420 = vector.broadcast %cst_164 : f32 to vector<8x128xf32>
    %421 = arith.addf %420, %419 : vector<8x128xf32>
    %422 = arith.divf %420, %421 : vector<8x128xf32>
    %423 = math.tanh %417 : vector<8x128xf32>
    %424 = vector.extract_strided_slice %422 {offsets = [0, 0], sizes = [8, 32], strides = [1, 1]} : vector<8x128xf32> to vector<8x32xf32>
    %425 = vector.extract_strided_slice %422 {offsets = [0, 32], sizes = [8, 32], strides = [1, 1]} : vector<8x128xf32> to vector<8x32xf32>
    %426 = vector.extract_strided_slice %422 {offsets = [0, 64], sizes = [8, 32], strides = [1, 1]} : vector<8x128xf32> to vector<8x32xf32>
    %427 = vector.extract_strided_slice %423 {offsets = [0, 96], sizes = [8, 32], strides = [1, 1]} : vector<8x128xf32> to vector<8x32xf32>
    %428 = arith.mulf %425, %378 : vector<8x32xf32>
    %429 = arith.mulf %424, %427 : vector<8x32xf32>
    %430 = arith.addf %428, %429 : vector<8x32xf32>
    %431 = math.tanh %430 : vector<8x32xf32>
    %432 = arith.mulf %426, %431 : vector<8x32xf32>
    %433 = arith.index_cast %384 : i32 to index
    %c0_165 = arith.constant 0 : index
    %434 = vector.load %arg15[%433, %c0_165] : memref<64x32xf32, #tpu.memory_space<vmem>>, vector<8x32xf32>
    tpu.vector_store %arg15[%433, %c0_165], %430 {strides = array<i32>} : memref<64x32xf32, #tpu.memory_space<vmem>>, vector<8x32xf32>,
    %c8_i32_166 = arith.constant 8 : i32
    %c0_167 = arith.constant 0 : index
    %c0_168 = arith.constant 0 : index
    %435 = vector.load %arg15[%c0_167, %c0_168] : memref<64x32xf32, #tpu.memory_space<vmem>>, vector<64x32xf32>
    %c0_169 = arith.constant 0 : index
    %c0_170 = arith.constant 0 : index
    %436 = vector.load %arg10[%c0_169, %c0_170] : memref<32x128xf32, #tpu.memory_space<vmem>>, vector<32x128xf32>
    %cst_171 = arith.constant dense<0.000000e+00> : vector<64x128xf32>
    %437 = tpu.matmul %435, %436, %cst_171 {dimension_numbers = #tpu.dot_dimension_numbers<[1], [0], [0], [1], [0, 0, 1, 1], [], []>} : vector<64x32xf32>, vector<32x128xf32>, vector<64x128xf32> -> vector<64x128xf32>
    %c0_172 = arith.constant 0 : index
    %c0_173 = arith.constant 0 : index
    %438 = vector.load %arg11[%c0_172, %c0_173] : memref<1x128xf32, #tpu.memory_space<vmem>>, vector<1x128xf32>
    %439 = vector.broadcast %438 : vector<1x128xf32> to vector<64x128xf32>
    %440 = arith.addf %437, %439 : vector<64x128xf32>
    %c0_174 = arith.constant 0 : index
    %c0_175 = arith.constant 0 : index
    %441 = vector.load %arg12[%c0_174, %c0_175] : memref<64x128xf32, #tpu.memory_space<vmem>>, vector<64x128xf32>
    tpu.vector_store %arg12[%c0_174, %c0_175], %440 {strides = array<i32>} : memref<64x128xf32, #tpu.memory_space<vmem>>, vector<64x128xf32>,
    %442 = tpu.concatenate %405, %403 in 1 : vector<8x32xf32>, vector<8x32xf32> -> vector<8x64xf32>
    %c0_176 = arith.constant 0 : index
    %c0_177 = arith.constant 0 : index
    %c0_178 = arith.constant 0 : index
    %443 = vector.load %arg13[%c0_176, %c0_177, %c0_178] : memref<2x8x64xf32, #tpu.memory_space<vmem>>, vector<1x8x64xf32>
    %444 = vector.shape_cast %443 : vector<1x8x64xf32> to vector<8x64xf32>
    %445 = vector.shape_cast %442 : vector<8x64xf32> to vector<1x8x64xf32>
    tpu.vector_store %arg13[%c0_176, %c0_177, %c0_178], %445 {strides = array<i32>} : memref<2x8x64xf32, #tpu.memory_space<vmem>>, vector<1x8x64xf32>,
    %446 = tpu.concatenate %432, %430 in 1 : vector<8x32xf32>, vector<8x32xf32> -> vector<8x64xf32>
    %c1_179 = arith.constant 1 : index
    %c0_180 = arith.constant 0 : index
    %c0_181 = arith.constant 0 : index
    %447 = vector.load %arg13[%c1_179, %c0_180, %c0_181] : memref<2x8x64xf32, #tpu.memory_space<vmem>>, vector<1x8x64xf32>
    %448 = vector.shape_cast %447 : vector<1x8x64xf32> to vector<8x64xf32>
    %449 = vector.shape_cast %446 : vector<8x64xf32> to vector<1x8x64xf32>
    tpu.vector_store %arg13[%c1_179, %c0_180, %c0_181], %449 {strides = array<i32>} : memref<2x8x64xf32, #tpu.memory_space<vmem>>, vector<1x8x64xf32>,
    return
  }
  func.func @transform_0(%arg0: i32) -> (i32, i32, i32) {
    %c0_i32 = arith.constant 0 : i32
    %c0_i32_0 = arith.constant 0 : i32
    %c0_i32_1 = arith.constant 0 : i32
    %c0_i32_2 = arith.constant 0 : i32
    return %c0_i32, %c0_i32_0, %c0_i32_1 : i32, i32, i32
  }
  func.func @transform_1(%arg0: i32) -> (i32, i32) {
    %c0_i32 = arith.constant 0 : i32
    %c0_i32_0 = arith.constant 0 : i32
    %c0_i32_1 = arith.constant 0 : i32
    return %c0_i32, %c0_i32_0 : i32, i32
  }
  func.func @transform_2(%arg0: i32) -> (i32, i32, i32) {
    %c0_i32 = arith.constant 0 : i32
    %c0_i32_0 = arith.constant 0 : i32
    %c0_i32_1 = arith.constant 0 : i32
    %c0_i32_2 = arith.constant 0 : i32
    return %c0_i32, %c0_i32_0, %c0_i32_1 : i32, i32, i32
  }
  func.func @transform_3(%arg0: i32) -> (i32, i32) {
    %c0_i32 = arith.constant 0 : i32
    %c0_i32_0 = arith.constant 0 : i32
    %c0_i32_1 = arith.constant 0 : i32
    return %c0_i32, %c0_i32_0 : i32, i32
  }
  func.func @transform_4(%arg0: i32) -> (i32, i32) {
    %c0_i32 = arith.constant 0 : i32
    %c0_i32_0 = arith.constant 0 : i32
    %c0_i32_1 = arith.constant 0 : i32
    return %c0_i32, %c0_i32_0 : i32, i32
  }
  func.func @transform_5(%arg0: i32) -> (i32, i32) {
    %c0_i32 = arith.constant 0 : i32
    %c0_i32_0 = arith.constant 0 : i32
    %c0_i32_1 = arith.constant 0 : i32
    return %c0_i32, %c0_i32_0 : i32, i32
  }
  func.func @transform_6(%arg0: i32) -> (i32, i32) {
    %c0_i32 = arith.constant 0 : i32
    %c0_i32_0 = arith.constant 0 : i32
    %c0_i32_1 = arith.constant 0 : i32
    return %c0_i32, %c0_i32_0 : i32, i32
  }
  func.func @transform_7(%arg0: i32) -> (i32, i32) {
    %c0_i32 = arith.constant 0 : i32
    %c0_i32_0 = arith.constant 0 : i32
    %c0_i32_1 = arith.constant 0 : i32
    return %c0_i32, %c0_i32_0 : i32, i32
  }
  func.func @transform_8(%arg0: i32) -> (i32, i32) {
    %c0_i32 = arith.constant 0 : i32
    %c0_i32_0 = arith.constant 0 : i32
    %c0_i32_1 = arith.constant 0 : i32
    return %c0_i32, %c0_i32_0 : i32, i32
  }
  func.func @transform_9(%arg0: i32) -> (i32, i32) {
    %c0_i32 = arith.constant 0 : i32
    %c0_i32_0 = arith.constant 0 : i32
    %c0_i32_1 = arith.constant 0 : i32
    return %c0_i32, %c0_i32_0 : i32, i32
  }
  func.func @transform_10(%arg0: i32) -> (i32, i32) {
    %c0_i32 = arith.constant 0 : i32
    %c0_i32_0 = arith.constant 0 : i32
    %c0_i32_1 = arith.constant 0 : i32
    return %c0_i32, %c0_i32_0 : i32, i32
  }
  func.func @transform_11(%arg0: i32) -> (i32, i32) {
    %c0_i32 = arith.constant 0 : i32
    %c0_i32_0 = arith.constant 0 : i32
    %c0_i32_1 = arith.constant 0 : i32
    return %c0_i32, %c0_i32_0 : i32, i32
  }
  func.func @transform_12(%arg0: i32) -> (i32, i32, i32) {
    %c0_i32 = arith.constant 0 : i32
    %c0_i32_0 = arith.constant 0 : i32
    %c0_i32_1 = arith.constant 0 : i32
    %c0_i32_2 = arith.constant 0 : i32
    return %c0_i32, %c0_i32_0, %c0_i32_1 : i32, i32, i32
  }
}

</mosaic_0001>

<bundles_post_ra>
// kernel: tpu_custom_call.1
= control target key start
LH: loop header
LB: loop body
LE: loop exit
PB: predicated region body
PF: predicated region fallthrough
CT: control target
= control target key end

     0   :  { %18 = vsyncpa [#allocation5], 0  ;;  %vm74_vm0 = vcmask 80896   ;;  %s3409_s0 = inlined_call_operand.vmem [shape: f32[8,32,10], index: 0, kind: input, shape index: {}]   ;;  %s3410_s1 = inlined_call_operand.vmem [shape: f32[64,32], index: 1, kind: input, shape index: {}]   ;;  %s3411_s2 = inlined_call_operand.vmem [shape: f32[2,8,64], index: 2, kind: input, shape index: {}]   ;;  %s3412_s3 = inlined_call_operand.vmem [shape: f32[96,128], index: 3, kind: input, shape index: {}]   ;;  %s3413_s4 = inlined_call_operand.vmem [shape: f32[1,128], index: 4, kind: input, shape index: {}]   ;;  %s3414_s5 = inlined_call_operand.vmem [shape: f32[96,128], index: 5, kind: input, shape index: {}]   ;;  %s3415_s6 = inlined_call_operand.vmem [shape: f32[1,128], index: 6, kind: input, shape index: {}]   ;;  %s3416_s7 = inlined_call_operand.vmem [shape: f32[64,32], index: 7, kind: input, shape index: {}]   ;;  %s3417_s8 = inlined_call_operand.vmem [shape: f32[1,32], index: 8, kind: input, shape index: {}]   ;;  %s3418_s9 = inlined_call_operand.vmem [shape: f32[32,128], index: 9, kind: input, shape index: {}]   ;;  %s3419_s10 = inlined_call_operand.vmem [shape: f32[1,128], index: 10, kind: input, shape index: {}]   ;;  %s3420_s11 = inlined_call_operand.hbm [shape: f32[64,128], index: 11, kind: output, shape index: {0}]   ;;  %s3421_s12 = inlined_call_operand.hbm [shape: f32[2,8,64], index: 12, kind: output, shape index: {1}]  }
   0x1   :  { %v46_v0 = vld [vmem:[%s3409_s0 + $0x20] sm:$0xff]  ;;  %v44_v1 = vld [vmem:[%s3409_s0 + $0x10] sm:$0xff]  ;;  %v47_v6 = vld [vmem:[%s3409_s0 + $0x28] sm:$0xff] }
   0x2   :  { %v42_v2 = vld [vmem:[%s3409_s0] sm:$0xff]  ;;  %v87_v3 = vsel %vm74_vm0, %v46_v0, -inf  ;;  %v81_v4 = vsel %vm74_vm0, %v44_v1, -inf  ;;  %v48_v7 = vld [vmem:[%s3409_s0 + $0x30] sm:$0xff]  ;;  %v43_v8 = vld [vmem:[%s3409_s0 + $0x8] sm:$0xff]  ;;  %v90_v9 = vsel %vm74_vm0, %v47_v6, -inf }
   0x3   :  { %v75_v5 = vsel %vm74_vm0, %v42_v2, -inf  ;;  %88 = vmax.xlane.f32.xlu1 %v87_v3  ;;  %82 = vmax.xlane.f32.xlu2 %v81_v4  ;;  %v93_v10 = vsel %vm74_vm0, %v48_v7, -inf  ;;  %v78_v11 = vsel %vm74_vm0, %v43_v8, -inf  ;;  %v51_v12 = vld [vmem:[%s3409_s0 + $0x48] sm:$0xff]  ;;  %v45_v13 = vld [vmem:[%s3409_s0 + $0x18] sm:$0xff]  ;;  %v50_v14 = vld [vmem:[%s3409_s0 + $0x40] sm:$0xff] }
   0x4   :  { %76 = vmax.xlane.f32.xlu0 %v75_v5 }
   0xb   :  { %91 = vmax.xlane.f32.xlu1 %v90_v9  ;;  %94 = vmax.xlane.f32.xlu2 %v93_v10 }
   0xc   :  { %79 = vmax.xlane.f32.xlu0 %v78_v11 }
   0xd   :  { %19 = vsyncpa [#allocation7], 0  ;;  %v102_v15 = vsel %vm74_vm0, %v51_v12, -inf  ;;  %v84_v16 = vsel %vm74_vm0, %v45_v13, -inf  ;;  %v99_v17 = vsel %vm74_vm0, %v50_v14, -inf  ;;  %v52_v18 = vld [vmem:[%s3409_s0 + $0x50] sm:$0xff]  ;;  %v211_v0 = vlaneseq }
   0xe   :  { %v54_v19 = vld [vmem:[%s3409_s0 + $0x60] sm:$0xff]  ;;  %v49_v20 = vld [vmem:[%s3409_s0 + $0x38] sm:$0xff]  ;;  %v105_v21 = vsel %vm74_vm0, %v52_v18, -inf  ;;  %v56_v25 = vld [vmem:[%s3409_s0 + $0x70] sm:$0xff]  ;;  %vm216_vm1 = vcmask 130112   ;;  %vm220_vm2 = vcmask 195712  }
   0xf   :  { %v111_v22 = vsel %vm74_vm0, %v54_v19, -inf  ;;  %v96_v23 = vsel %vm74_vm0, %v49_v20, -inf  ;;  %v53_v24 = vld [vmem:[%s3409_s0 + $0x58] sm:$0xff]  ;;  %v55_v26 = vld [vmem:[%s3409_s0 + $0x68] sm:$0xff]  ;;  %v117_v28 = vsel %vm74_vm0, %v56_v25, -inf  ;;  %v58_v32 = vld [vmem:[%s3409_s0 + $0x80] sm:$0xff] }
  0x10   :  { %v108_v27 = vsel %vm74_vm0, %v53_v24, -inf  ;;  %v114_v29 = vsel %vm74_vm0, %v55_v26, -inf  ;;  %v59_v30 = vld [vmem:[%s3409_s0 + $0x88] sm:$0xff]  ;;  %v57_v31 = vld [vmem:[%s3409_s0 + $0x78] sm:$0xff]  ;;  %v123_v35 = vsel %vm74_vm0, %v58_v32, -inf  ;;  %v62_v36 = vld [vmem:[%s3409_s0 + $0xa0] sm:$0xff] }
  0x11   :  { %v126_v33 = vsel %vm74_vm0, %v59_v30, -inf  ;;  %v120_v34 = vsel %vm74_vm0, %v57_v31, -inf  ;;  %v63_v37 = vld [vmem:[%s3409_s0 + $0xa8] sm:$0xff]  ;;  %v60_v38 = vld [vmem:[%s3409_s0 + $0x90] sm:$0xff]  ;;  %v135_v39 = vsel %vm74_vm0, %v62_v36, -inf  ;;  %v66_v43 = vld [vmem:[%s3409_s0 + $0xc0] sm:$0xff] }
  0x12   :  { %v138_v40 = vsel %vm74_vm0, %v63_v37, -inf  ;;  %v129_v41 = vsel %vm74_vm0, %v60_v38, -inf  ;;  %v64_v42 = vld [vmem:[%s3409_s0 + $0xb0] sm:$0xff]  ;;  %v61_v44 = vld [vmem:[%s3409_s0 + $0x98] sm:$0xff]  ;;  %v147_v46 = vsel %vm74_vm0, %v66_v43, -inf  ;;  %v67_v50 = vld [vmem:[%s3409_s0 + $0xc8] sm:$0xff] }
  0x13   :  { %103 = vmax.xlane.f32.xlu1 %v102_v15  ;;  %85 = vmax.xlane.f32.xlu2 %v84_v16  ;;  %v141_v45 = vsel %vm74_vm0, %v64_v42, -inf  ;;  %v132_v47 = vsel %vm74_vm0, %v61_v44, -inf  ;;  %v65_v48 = vld [vmem:[%s3409_s0 + $0xb8] sm:$0xff]  ;;  %v68_v49 = vld [vmem:[%s3409_s0 + $0xd0] sm:$0xff]  ;;  %v150_v53 = vsel %vm74_vm0, %v67_v50, -inf  ;;  %v71_v54 = vld [vmem:[%s3409_s0 + $0xe8] sm:$0xff] }
  0x14   :  { %100 = vmax.xlane.f32.xlu0 %v99_v17  ;;  %v144_v51 = vsel %vm74_vm0, %v65_v48, -inf  ;;  %v153_v52 = vsel %vm74_vm0, %v68_v49, -inf  ;;  %v69_v55 = vld [vmem:[%s3409_s0 + $0xd8] sm:$0xff]  ;;  %v70_v56 = vld [vmem:[%s3409_s0 + $0xe0] sm:$0xff]  ;;  %v162_v57 = vsel %vm74_vm0, %v71_v54, -inf  ;;  %v72_v61 = vld [vmem:[%s3409_s0 + $0xf0] sm:$0xff] }
  0x15   :  { %v156_v58 = vsel %vm74_vm0, %v69_v55, -inf  ;;  %v159_v59 = vsel %vm74_vm0, %v70_v56, -inf  ;;  %v73_v60 = vld [vmem:[%s3409_s0 + $0xf8] sm:$0xff]  ;;  %v165_v63 = vsel %vm74_vm0, %v72_v61, -inf  ;;  %v2561_v4 = vand.u32 127, %v211_v0  ;;  %v173_v42 = vld [vmem:[%s3412_s3 + $0x10] sm:$0xff] }
  0x16   :  { %v168_v62 = vsel %vm74_vm0, %v73_v60, -inf  ;;  %vm224_vm3 = vcmask 261312   ;;  %vm275_vm4 = vcmask 1041409   ;;  %v174_v38 = vld [vmem:[%s3412_s3 + $0x18] sm:$0xff]  ;;  %v172_v43 = vld [vmem:[%s3412_s3 + $0x8] sm:$0xff]  ;;  %v322_v49 = vld [vmem:[%s3412_s3 + $0x30] sm:$0xff] }
  0x17   :  { %v2564_v5 = vadd.s32 4294967280, %v2561_v4  ;;  %v2567_v6 = vadd.s32 4294967288, %v2561_v4  ;;  %304 = vmatpush.msra.mxu1 %v174_v38  ;;  %v2624_v44 = vld [vmem:[%s3412_s3 + $0x58] sm:$0xff]  ;;  %v2642_v48 = vld [vmem:[%s3412_s3 + $0x48] sm:$0xff]  ;;  %vm289_vm5 = vcmask 261120   ;;  %v320_v56 = vld [vmem:[%s3412_s3 + $0x20] sm:$0xff] }
  0x18   :  { %421 = vmatpush.msra.mxu2 %v2624_v44  ;;  %v321_v55 = vld [vmem:[%s3412_s3 + $0x28] sm:$0xff]  ;;  %vm277_vm6 = vcmask 1042434   ;;  %vm279_vm7 = vcmask 1043459   ;;  %vm281_vm8 = vcmask 1044484   ;;  %vm283_vm9 = vcmask 1045509   ;;  %s2361_s18 = smov 32  }
  0x19   :  { %305 = vmatpush.msra.mxu1 %v173_v42  ;;  %vm285_vm10 = vcmask 1046534   ;;  %vm287_vm11 = vcmask 1047559   ;;  %s2362_s0 = smov 64   ;;  %vm484_vm0 = vcmask 523264   ;;  %s2363_s29 = smov 96  }
  0x1a   :  { %s2068_s22 = sshll.u32 %s3420_s11, 4  ;;  %s2367_s23 = smov [#allocation6]   ;;  %s2069_s22 = int_to_ptr.hbm [resolvable:$true] %s2068_s22 }
  0x1b   :  { %106 = vmax.xlane.f32.xlu1 %v105_v21  ;;  %112 = vmax.xlane.f32.xlu2 %v111_v22  ;;  %v2582_v21 = vadd.s32 4294967272, %v2561_v4  ;;  %s2079_s24 = sshll.u32 %s2367_s23, 4  ;;  %s2080_s24 = int_to_ptr.vmem [resolvable:$true] %s2079_s24 }
  0x1c   :  { %97 = vmax.xlane.f32.xlu0 %v96_v23  ;;  %306 = vmatpush.msra.mxu1 %v172_v43 }
  0x23   :  { %109 = vmax.xlane.f32.xlu1 %v108_v27  ;;  %118 = vmax.xlane.f32.xlu2 %v117_v28 }
  0x24   :  { %115 = vmax.xlane.f32.xlu0 %v114_v29 }
  0x2b   :  { %127 = vmax.xlane.f32.xlu1 %v126_v33  ;;  %121 = vmax.xlane.f32.xlu2 %v120_v34 }
  0x2c   :  { %124 = vmax.xlane.f32.xlu0 %v123_v35 }
  0x33   :  { %136 = vmax.xlane.f32.xlu1 %v135_v39  ;;  %139 = vmax.xlane.f32.xlu2 %v138_v40 }
  0x34   :  { %130 = vmax.xlane.f32.xlu0 %v129_v41 }
  0x3b   :  { %142 = vmax.xlane.f32.xlu1 %v141_v45  ;;  %148 = vmax.xlane.f32.xlu2 %v147_v46  ;;  %v171_v45 = vld [vmem:[%s3412_s3] sm:$0xff]  ;;  %v2633_v46 = vld [vmem:[%s3412_s3 + $0x50] sm:$0xff] }
  0x3c   :  { %133 = vmax.xlane.f32.xlu0 %v132_v47  ;;  %307 = vmatpush.msra.mxu1 %v171_v45  ;;  %v323_v47 = vld [vmem:[%s3412_s3 + $0x38] sm:$0xff] }
  0x3d   :  { %422 = vmatpush.msra.mxu2 %v2633_v46 }
  0x3e   :  { %360 = vmatpush.msrb.mxu1 %v323_v47 }
  0x3f   :  { %423 = vmatpush.msra.mxu2 %v2642_v48 }
  0x40   :  { %361 = vmatpush.msrb.mxu1 %v322_v49 }
  0x42   :  { %362 = vmatpush.msrb.mxu1 %v321_v55 }
  0x43   :  { %145 = vmax.xlane.f32.xlu1 %v144_v51  ;;  %154 = vmax.xlane.f32.xlu2 %v153_v52  ;;  %v2651_v52 = vld [vmem:[%s3412_s3 + $0x40] sm:$0xff] }
  0x44   :  { %151 = vmax.xlane.f32.xlu0 %v150_v53  ;;  %v2656_v53 = vld [vmem:[%s3411_s2] sm:$0xff]  ;;  %424 = vmatpush.msra.mxu2 %v2651_v52 }
  0x45   :  { %2108 = vmatmul.msk.f32.vlgmr.msra.gmra.mxu2 %vm289_vm5, %v2656_v53  ;;  %363 = vmatpush.msrb.mxu1 %v320_v56  ;;  %v314_v56 = vld [vmem:[%s3410_s1 + $0x10] sm:$0xff] }
  0x46   :  { %621 = vmatpush.msrb.mxu2 %v2624_v44 }
  0x48   :  { %622 = vmatpush.msrb.mxu2 %v2633_v46 }
  0x4a   :  { %623 = vmatpush.msrb.mxu2 %v2642_v48 }
  0x4b   :  { %163 = vmax.xlane.f32.xlu1 %v162_v57  ;;  %157 = vmax.xlane.f32.xlu2 %v156_v58 }
  0x4c   :  { %160 = vmax.xlane.f32.xlu0 %v159_v59  ;;  %624 = vmatpush.msrb.mxu2 %v2651_v52 }
  0x53   :  { %169 = vmax.xlane.f32.xlu1 %v168_v62 }
  0x54   :  { %166 = vmax.xlane.f32.xlu0 %v165_v63 }
  0x76   :  { %v89_v1 = vpop.xlane.xlu1 %88  ;;  %v83_v2 = vpop.xlane.xlu2 %82 }
  0x77   :  { %v77_v3 = vpop.xlane.xlu0 %76  ;;  %v226_v9 = vperm.slane %v89_v1, %v2561_v4  ;;  %v219_v10 = vperm.slane %v83_v2, %v2564_v5 }
  0x78   :  { %v213_v13 = vperm.slane %v77_v3, %v2561_v4 }
  0x7e   :  { %v92_v7 = vpop.xlane.xlu1 %91  ;;  %v95_v8 = vpop.xlane.xlu2 %94 }
  0x7f   :  { %v227_v11 = vperm.slane %v92_v7, %v2567_v6  ;;  %v80_v12 = vpop.xlane.xlu0 %79  ;;  %v229_v22 = vperm.slane %v95_v8, %v2564_v5 }
  0x80   :  { %v215_v14 = vperm.slane %v80_v12, %v2567_v6 }
  0x81   :  { %v228_v15 = vsel %vm216_vm1, %v227_v11, %v226_v9 }
  0x82   :  { %v217_v16 = vsel %vm216_vm1, %v215_v14, %v213_v13  ;;  %v230_v28 = vsel %vm220_vm2, %v229_v22, %v228_v15 }
  0x83   :  { %v221_v17 = vsel %vm220_vm2, %v219_v10, %v217_v16 }
  0x86   :  { %v2577_v18 = vpop.xlane.xlu1 %103  ;;  %v86_v19 = vpop.xlane.xlu2 %85 }
  0x87   :  { %v2579_v20 = vpop.xlane.xlu0 %100  ;;  %v223_v23 = vperm.slane %v86_v19, %v2582_v21  ;;  %v234_v62 = vperm.slane %v2577_v18, %v2567_v6 }
  0x88   :  { %v233_v63 = vperm.slane %v2579_v20, %v2561_v4 }
  0x89   :  { %v225_v29 = vsel %vm224_vm3, %v223_v23, %v221_v17 }
  0x8a   :  { %v235_v14 = vsel %vm216_vm1, %v234_v62, %v233_v63  ;;  %v2163_v63 = vld [vmem:[%s3413_s4] ss:$0 sm:$0xff] }
  0x8e   :  { %v2586_v24 = vpop.xlane.xlu1 %106  ;;  %v2588_v25 = vpop.xlane.xlu2 %112 }
  0x8f   :  { %v98_v26 = vpop.xlane.xlu0 %97  ;;  %v240_v60 = vperm.slane %v2588_v25, %v2561_v4  ;;  %v236_v0 = vperm.slane %v2586_v24, %v2564_v5 }
  0x90   :  { %v231_v27 = vperm.slane %v98_v26, %v2582_v21 }
  0x91   :  { %v237_v19 = vsel %vm220_vm2, %v236_v0, %v235_v14 }
  0x92   :  { %v232_v30 = vsel %vm224_vm3, %v231_v27, %v230_v28 }
  0x93   :  { %v2594_v31 = vsel %vm275_vm4, %v232_v30, %v225_v29 }
  0x96   :  { %v2596_v32 = vpop.xlane.xlu1 %109  ;;  %v2598_v33 = vpop.xlane.xlu2 %118 }
  0x97   :  { %v116_v34 = vpop.xlane.xlu0 %115  ;;  %v238_v2 = vperm.slane %v2596_v32, %v2582_v21  ;;  %v243_v3 = vperm.slane %v2598_v33, %v2564_v5 }
  0x98   :  { %v241_v61 = vperm.slane %v116_v34, %v2567_v6 }
  0x99   :  { %v239_v23 = vsel %vm224_vm3, %v238_v2, %v237_v19 }
  0x9a   :  { %v242_v7 = vsel %vm216_vm1, %v241_v61, %v240_v60  ;;  %v318_v60 = vld [vmem:[%s3410_s1 + $0x30] sm:$0xff]  ;;  %v319_v61 = vld [vmem:[%s3410_s1 + $0x38] sm:$0xff] }
  0x9b   :  { %v244_v24 = vsel %vm220_vm2, %v243_v3, %v242_v7 }
  0x9e   :  { %v2600_v35 = vpop.xlane.xlu1 %127  ;;  %v2602_v36 = vpop.xlane.xlu2 %121 }
  0x9f   :  { %v2604_v37 = vpop.xlane.xlu0 %124  ;;  %v248_v8 = vperm.slane %v2600_v35, %v2567_v6  ;;  %v245_v10 = vperm.slane %v2602_v36, %v2582_v21  ;;  %v278_v36 = vsel %vm277_vm6, %v239_v23, %v2594_v31 }
  0xa0   :  { %v247_v11 = vperm.slane %v2604_v37, %v2561_v4 }
  0xa1   :  { %v246_v27 = vsel %vm224_vm3, %v245_v10, %v244_v24 }
  0xa2   :  { %v249_v28 = vsel %vm216_vm1, %v248_v8, %v247_v11 }
  0xa6   :  { %v2609_v39 = vpop.xlane.xlu1 %136  ;;  %v2611_v40 = vpop.xlane.xlu2 %139 }
  0xa7   :  { %v2613_v41 = vpop.xlane.xlu0 %130  ;;  %v254_v15 = vperm.slane %v2609_v39, %v2561_v4  ;;  %v255_v16 = vperm.slane %v2611_v40, %v2567_v6 }
  0xa8   :  { %v250_v17 = vperm.slane %v2613_v41, %v2564_v5 }
  0xa9   :  { %v256_v32 = vsel %vm216_vm1, %v255_v16, %v254_v15 }
  0xaa   :  { %v251_v33 = vsel %vm220_vm2, %v250_v17, %v249_v28 }
  0xae   :  { %v143_v50 = vpop.xlane.xlu1 %142  ;;  %v149_v51 = vpop.xlane.xlu2 %148 }
  0xaf   :  { %v134_v54 = vpop.xlane.xlu0 %133  ;;  %v261_v12 = vperm.slane %v149_v51, %v2561_v4  ;;  %v257_v20 = vperm.slane %v143_v50, %v2564_v5 }
  0xb0   :  { %v252_v22 = vperm.slane %v134_v54, %v2582_v21 }
  0xb1   :  { %v258_v37 = vsel %vm220_vm2, %v257_v20, %v256_v32 }
  0xb2   :  { %v253_v38 = vsel %vm224_vm3, %v252_v22, %v251_v33 }
  0xb6   :  { %v146_v57 = vpop.xlane.xlu1 %145  ;;  %v155_v58 = vpop.xlane.xlu2 %154 }
  0xb7   :  { %v152_v59 = vpop.xlane.xlu0 %151  ;;  %v259_v25 = vperm.slane %v146_v57, %v2582_v21  ;;  %v264_v26 = vperm.slane %v155_v58, %v2564_v5  ;;  %v315_v57 = vld [vmem:[%s3410_s1 + $0x18] sm:$0xff]  ;;  %v316_v58 = vld [vmem:[%s3410_s1 + $0x20] sm:$0xff] }
  0xb8   :  { %v262_v13 = vperm.slane %v152_v59, %v2567_v6  ;;  %v317_v59 = vld [vmem:[%s3410_s1 + $0x28] sm:$0xff] }
  0xb9   :  { %v260_v40 = vsel %vm224_vm3, %v259_v25, %v258_v37 }
  0xba   :  { %v263_v29 = vsel %vm216_vm1, %v262_v13, %v261_v12 }
  0xbb   :  { %v265_v41 = vsel %vm220_vm2, %v264_v26, %v263_v29 }
  0xbe   :  { %v164_v1 = vpop.xlane.xlu1 %163  ;;  %v158_v18 = vpop.xlane.xlu2 %157 }
  0xbf   :  { %v161_v9 = vpop.xlane.xlu0 %160  ;;  %v266_v30 = vperm.slane %v158_v18, %v2582_v21  ;;  %v269_v34 = vperm.slane %v164_v1, %v2567_v6  ;;  %v280_v6 = vsel %vm279_vm7, %v246_v27, %v278_v36 }
  0xc0   :  { %v268_v35 = vperm.slane %v161_v9, %v2561_v4  ;;  %v282_v45 = vsel %vm281_vm8, %v253_v38, %v280_v6  ;;  %v2791_v38 = vld [vmem:[%s3416_s7 + $0x38] sm:$0xff] }
  0xc1   :  { %v267_v4 = vsel %vm224_vm3, %v266_v30, %v265_v41  ;;  %v284_v50 = vsel %vm283_vm9, %v260_v40, %v282_v45  ;;  %496 = vmatpush.msra.mxu3 %v2791_v38  ;;  %695 = vmatpush.msra.mxu2 %v2791_v38  ;;  %v2810_v40 = vld [vmem:[%s3416_s7 + $0x20] sm:$0xff]  ;;  %v2817_v41 = vld [vmem:[%s3416_s7 + $0x18] sm:$0xff]  ;;  %v2848_v45 = vld [vmem:[%s3411_s2 + $0x8] sm:$0xff] }
  0xc2   :  { %v270_v47 = vsel %vm216_vm1, %v269_v34, %v268_v35  ;;  %v286_v54 = vsel %vm285_vm10, %v267_v4, %v284_v50  ;;  %v2883_v50 = vld [vmem:[%s3414_s5 + $0x58] sm:$0xff]  ;;  %vm534_vm1 = vcmask 785408  }
  0xc3   :  { %542 = vmatpush.msra.mxu0 %v2883_v50 }
  0xc6   :  { %v170_v39 = vpop.xlane.xlu1 %169 }
  0xc7   :  { %v167_v42 = vpop.xlane.xlu0 %166  ;;  %v273_v43 = vperm.slane %v170_v39, %v2582_v21  ;;  %v312_v21 = vld [vmem:[%s3410_s1] sm:$0xff]  ;;  %v2796_v39 = vld [vmem:[%s3416_s7 + $0x30] sm:$0xff] }
  0xc8   :  { %v271_v31 = vperm.slane %v167_v42, %v2564_v5  ;;  %v313_v5 = vld [vmem:[%s3410_s1 + $0x8] sm:$0xff]  ;;  %v426_v2 = vpop.f32.mrf.mxu2  ;;  %497 = vmatpush.msra.mxu3 %v2796_v39  ;;  %696 = vmatpush.msra.mxu2 %v2796_v39  ;;  %v2824_v42 = vld [vmem:[%s3416_s7 + $0x10] sm:$0xff] }
  0xca   :  { %v272_v49 = vsel %vm220_vm2, %v271_v31, %v270_v47  ;;  %v2841_v31 = vld [vmem:[%s3416_s7] sm:$0xff] }
  0xcb   :  { %v274_v51 = vsel %vm224_vm3, %v273_v43, %v272_v49  ;;  %v2831_v43 = vld [vmem:[%s3416_s7 + $0x8] sm:$0xff] }
  0xcc   :  { %v288_v55 = vsel %vm287_vm11, %v274_v51, %v286_v54  ;;  %v2888_v51 = vld [vmem:[%s3414_s5 + $0x50] sm:$0xff]  ;;  %v2895_v54 = vld [vmem:[%s3414_s5 + $0x48] sm:$0xff] }
  0xcd   :  { %2098 = vmatmul.msk.f32.vlgmr.msra.gmra.mxu1 %vm289_vm5, %v288_v55  ;;  %543 = vmatpush.msra.mxu0 %v2888_v51  ;;  %v2902_v55 = vld [vmem:[%s3414_s5 + $0x40] sm:$0xff] }
  0xce   :  { %1126 = vmatpush.msra.mxu1 %v2883_v50 }
  0xcf   :  { %544 = vmatpush.msra.mxu0 %v2895_v54 }
  0xd0   :  { %1127 = vmatpush.msra.mxu1 %v2888_v51 }
  0xd1   :  { %545 = vmatpush.msra.mxu0 %v2902_v55 }
  0xd2   :  { %1128 = vmatpush.msra.mxu1 %v2895_v54 }
  0xd4   :  { %1129 = vmatpush.msra.mxu1 %v2902_v55 }
  0xd5   :  { %2099 = vmatmul.msk.f32.vlgmr.msrb.gmra.mxu1 %vm289_vm5, %v312_v21  ;;  %v2909_v21 = vld [vmem:[%s3414_s5 + $0x38] sm:$0xff] }
  0xd6   :  { %546 = vmatpush.msra.mxu0 %v2909_v21  ;;  %1130 = vmatpush.msra.mxu1 %v2909_v21 }
  0xdd   :  { %2100 = vmatmul.msk.f32.gmra.mxu1 %vm289_vm5, %v313_v5  ;;  %v2916_v5 = vld [vmem:[%s3414_s5 + $0x30] sm:$0xff] }
  0xde   :  { %547 = vmatpush.msra.mxu0 %v2916_v5  ;;  %1131 = vmatpush.msra.mxu1 %v2916_v5 }
  0xe5   :  { %2101 = vmatmul.msk.f32.gmra.mxu1 %vm289_vm5, %v314_v56  ;;  %v2923_v56 = vld [vmem:[%s3414_s5 + $0x28] sm:$0xff] }
  0xe6   :  { %548 = vmatpush.msra.mxu0 %v2923_v56  ;;  %1132 = vmatpush.msra.mxu1 %v2923_v56 }
  0xed   :  { %2102 = vmatmul.msk.f32.gmra.mxu1 %vm289_vm5, %v315_v57  ;;  %v2930_v57 = vld [vmem:[%s3414_s5 + $0x20] sm:$0xff] }
  0xee   :  { %549 = vmatpush.msra.mxu0 %v2930_v57  ;;  %1133 = vmatpush.msra.mxu1 %v2930_v57 }
  0xf5   :  { %2103 = vmatmul.msk.f32.gmra.mxu1 %vm289_vm5, %v316_v58  ;;  %v2937_v58 = vld [vmem:[%s3414_s5 + $0x18] sm:$0xff] }
  0xf6   :  { %550 = vmatpush.msra.mxu0 %v2937_v58  ;;  %1134 = vmatpush.msra.mxu1 %v2937_v58 }
  0xfd   :  { %2104 = vmatmul.msk.f32.gmra.mxu1 %vm289_vm5, %v317_v59  ;;  %v2164_v59 = vld [vmem:[%s3417_s8] ss:$0 sm:$0xff] }
 0x105   :  { %2105 = vmatmul.msk.f32.gmra.mxu1 %vm289_vm5, %v318_v60  ;;  %v2947_v60 = vld [vmem:[%s3414_s5 + $0x10] sm:$0xff] }
 0x106   :  { %551 = vmatpush.msra.mxu0 %v2947_v60  ;;  %1135 = vmatpush.msra.mxu1 %v2947_v60 }
 0x10d   :  { %2106 = vmatmul.msk.f32.gmra.mxu1 %vm289_vm5, %v319_v61 }
 0x14a   :  { %v309_v62 = vpop.f32.mrf.mxu1 }
 0x14b   :  { %v2764_v0 = vadd.f32 %v2163_v63, %v309_v62  ;;  %v2956_v63 = vld [vmem:[%s3414_s5 + $0x8] sm:$0xff] }
 0x14c   :  { %552 = vmatpush.msra.mxu0 %v2956_v63  ;;  %1136 = vmatpush.msra.mxu1 %v2956_v63 }
 0x152   :  { %v365_v1 = vpop.f32.mrf.mxu1 }
 0x153   :  { %v401_v3 = vadd.f32 %v365_v1, %v2764_v0 }
 0x155   :  { %v429_v7 = vadd.f32 %v426_v2, %v401_v3 }
 0x157   :  { %2181 = vtanh.f32 %v429_v7  ;;  %v2109_v17 = vmul.f32 -1.442695, %v429_v7 }
 0x159   :  { %2183 = vpow2.f32 %v2109_v17 }
 0x15a   :  { %v2767_v8 = vpop.f32.mrf.mxu1 }
 0x15b   :  { %v602_v61 = vadd.f32 %v2767_v8, %v2764_v0  ;;  %v2967_v8 = vld [vmem:[%s3414_s5] sm:$0xff] }
 0x15c   :  { %553 = vmatpush.msra.mxu0 %v2967_v8  ;;  %1137 = vmatpush.msra.mxu1 %v2967_v8 }
 0x15d   :  { %v2182_v9 = vpop.eup %2181 }
 0x15e   :  { %452 = vrot.lane.b32.xlu2 %v2182_v9, %s2361_s18  ;;  %736 = vmatpush.msrb.mxu0 %v2883_v50 }
 0x15f   :  { %v2184_v18 = vpop.eup %2183 }
 0x160   :  { %v433_v19 = vadd.f32 1.0, %v2184_v18  ;;  %737 = vmatpush.msrb.mxu0 %v2888_v51 }
 0x162   :  { %v2770_v10 = vpop.f32.mrf.mxu1  ;;  %2185 = vrcp.f32 %v433_v19  ;;  %v445_v26 = vand.u32 2147483648, %v433_v19  ;;  %vm439_vm13 = vweird.f32 %v433_v19  ;;  %v443_v27 = vand.u32 2147483647, %v433_v19  ;;  %738 = vmatpush.msrb.mxu0 %v2895_v54 }
 0x164   :  { %v446_v29 = vor.u32 1.1754944e-38, %v445_v26  ;;  %vm444_vm15 = vcmp.eq.f32.partialorder %v443_v27, 8.507059e+37  ;;  %739 = vmatpush.msrb.mxu0 %v2902_v55 }
 0x166   :  { %740 = vmatpush.msrb.mxu0 %v2909_v21 }
 0x168   :  { %v2186_v20 = vpop.eup %2185  ;;  %741 = vmatpush.msrb.mxu0 %v2916_v5 }
 0x169   :  { %v435_v22 = vmul.f32 %v2186_v20, %v433_v19  ;;  %vm440_vm12 = vweird.f32 %v2186_v20 }
 0x16a   :  { %v2772_v11 = vpop.f32.mrf.mxu1  ;;  %vm441_vm14 = vmor %vm439_vm13, %vm440_vm12  ;;  %742 = vmatpush.msrb.mxu0 %v2923_v56 }
 0x16b   :  { %v436_v23 = vsub.f32 1.0, %v435_v22 }
 0x16c   :  { %743 = vmatpush.msrb.mxu0 %v2930_v57 }
 0x16d   :  { %v437_v24 = vmul.f32 %v2186_v20, %v436_v23 }
 0x16e   :  { %744 = vmatpush.msrb.mxu0 %v2937_v58 }
 0x16f   :  { %v438_v25 = vadd.f32 %v2186_v20, %v437_v24 }
 0x170   :  { %745 = vmatpush.msrb.mxu0 %v2947_v60 }
 0x171   :  { %v442_v28 = vsel %vm441_vm14, %v2186_v20, %v438_v25 }
 0x172   :  { %v2774_v12 = vpop.f32.mrf.mxu1  ;;  %v447_v32 = vsel %vm444_vm15, %v446_v29, %v442_v28  ;;  %746 = vmatpush.msrb.mxu0 %v2956_v63 }
 0x173   :  { %v450_v34 = vmul.f32 %v447_v32, %v2656_v53  ;;  %v2803_v53 = vld [vmem:[%s3416_s7 + $0x28] sm:$0xff] }
 0x174   :  { %498 = vmatpush.msra.mxu3 %v2803_v53  ;;  %697 = vmatpush.msra.mxu2 %v2803_v53 }
 0x175   :  { %747 = vmatpush.msrb.mxu0 %v2967_v8 }
 0x176   :  { %499 = vmatpush.msra.mxu3 %v2810_v40  ;;  %698 = vmatpush.msra.mxu2 %v2810_v40 }
 0x178   :  { %500 = vmatpush.msra.mxu3 %v2817_v41  ;;  %699 = vmatpush.msra.mxu2 %v2817_v41 }
 0x17a   :  { %v380_v13 = vpop.f32.mrf.mxu1  ;;  %501 = vmatpush.msra.mxu3 %v2824_v42  ;;  %700 = vmatpush.msra.mxu2 %v2824_v42 }
 0x17b   :  { %v2777_v14 = vadd.f32 %v380_v13, %v2764_v0 }
 0x17c   :  { %502 = vmatpush.msra.mxu3 %v2831_v43  ;;  %701 = vmatpush.msra.mxu2 %v2831_v43 }
 0x17e   :  { %503 = vmatpush.msra.mxu3 %v2841_v31  ;;  %702 = vmatpush.msra.mxu2 %v2841_v31 }
 0x180   :  { %1011 = vmatpush.msrb.mxu3 %v2624_v44 }
 0x182   :  { %v383_v15 = vpop.f32.mrf.mxu1  ;;  %1012 = vmatpush.msrb.mxu3 %v2633_v46 }
 0x183   :  { %v2780_v16 = vadd.f32 %v383_v15, %v2764_v0 }
 0x184   :  { %1013 = vmatpush.msrb.mxu3 %v2642_v48 }
 0x186   :  { %1014 = vmatpush.msrb.mxu3 %v2651_v52 }
 0x1b8   :  { %v453_v30 = vpop.permute.xlu2 %452 }
 0x1b9   :  { %v455_v33 = vmul.f32 %v453_v30, %v447_v32 }
 0x1bb   :  { %457 = vrot.lane.b32.xlu0 %v455_v33, %s2361_s18 }
 0x22d   :  { %v458_v35 = vpop.permute.xlu0 %457 }
 0x22e   :  { %v2784_v36 = vadd.f32 %v458_v35, %v450_v34 }
 0x230   :  { %2187 = vtanh.f32 %v2784_v36 }
 0x236   :  { %v2188_v37 = vpop.eup %2187 }
 0x237   :  { %463 = vrot.lane.b32.xlu1 %v2188_v37, %s2361_s18 }
 0x23f   :  { %513 = vrot.lane.b32.xlu1 %v2848_v45, %s2362_s0 }
 0x2a9   :  { %v464_v6 = vpop.permute.xlu1 %463 }
 0x2aa   :  { %v466_v4 = vmul.f32 %v464_v6, %v447_v32 }
 0x2ac   :  { %468 = vrot.lane.b32.xlu2 %v466_v4, %s2362_s0 }
 0x2b1   :  { %v514_v17 = vpop.permute.xlu1 %513 }
 0x306   :  { %v2856_v47 = vpop.permute.xlu2 %468 }
 0x307   :  { %2113 = vmatmul.msk.f32.vlgmr.msrb.gmra.mxu2 %vm289_vm5, %v2856_v47  ;;  %v471_v49 = vsel %vm289_vm5, %v2856_v47, %v2784_v36 }
 0x308   :  { %2110 = vmatmul.msk.f32.vlgmr.msra.gmra.mxu3 %vm484_vm0, %v471_v49  ;;  %890 = vmatpush.msrb.mxu2 %v2791_v38 }
 0x309   :  { %1280 = vmatpush.msra.mxu3 %v2791_v38 }
 0x30a   :  { %891 = vmatpush.msrb.mxu2 %v2796_v39 }
 0x30b   :  { %1281 = vmatpush.msra.mxu3 %v2796_v39 }
 0x30c   :  { %892 = vmatpush.msrb.mxu2 %v2803_v53 }
 0x30d   :  { %1282 = vmatpush.msra.mxu3 %v2803_v53 }
 0x30e   :  { %893 = vmatpush.msrb.mxu2 %v2810_v40 }
 0x30f   :  { %1283 = vmatpush.msra.mxu3 %v2810_v40 }
 0x310   :  { %894 = vmatpush.msrb.mxu2 %v2817_v41 }
 0x311   :  { %1284 = vmatpush.msra.mxu3 %v2817_v41 }
 0x312   :  { %895 = vmatpush.msrb.mxu2 %v2824_v42 }
 0x313   :  { %1285 = vmatpush.msra.mxu3 %v2824_v42 }
 0x314   :  { %896 = vmatpush.msrb.mxu2 %v2831_v43 }
 0x315   :  { %1286 = vmatpush.msra.mxu3 %v2831_v43 }
 0x316   :  { %897 = vmatpush.msrb.mxu2 %v2841_v31 }
 0x317   :  { %1287 = vmatpush.msra.mxu3 %v2841_v31 }
 0x38a   :  { %v626_v62 = vpop.f32.mrf.mxu2 }
 0x38b   :  { %v629_v1 = vadd.f32 %v626_v62, %v602_v61  ;;  %v505_v2 = vpop.f32.mrf.mxu3 }
 0x38c   :  { %v506_v3 = vadd.f32 %v2164_v59, %v505_v2 }
 0x38d   :  { %2189 = vtanh.f32 %v629_v1  ;;  %v2114_v9 = vmul.f32 -1.442695, %v629_v1 }
 0x38e   :  { %509 = vrot.lane.b32.xlu2 %v506_v3, %s2361_s18 }
 0x38f   :  { %2191 = vpow2.f32 %v2114_v9 }
 0x393   :  { %v2190_v7 = vpop.eup %2189 }
 0x394   :  { %652 = vrot.lane.b32.xlu0 %v2190_v7, %s2361_s18 }
 0x395   :  { %v2192_v13 = vpop.eup %2191 }
 0x396   :  { %v633_v15 = vadd.f32 1.0, %v2192_v13 }
 0x398   :  { %2193 = vrcp.f32 %v633_v15  ;;  %v645_v27 = vand.u32 2147483648, %v633_v15  ;;  %vm639_vm3 = vweird.f32 %v633_v15  ;;  %v643_v28 = vand.u32 2147483647, %v633_v15 }
 0x39a   :  { %v646_v30 = vor.u32 1.1754944e-38, %v645_v27  ;;  %vm644_vm6 = vcmp.eq.f32.partialorder %v643_v28, 8.507059e+37 }
 0x39e   :  { %v2194_v22 = vpop.eup %2193 }
 0x39f   :  { %v635_v23 = vmul.f32 %v2194_v22, %v633_v15  ;;  %vm640_vm2 = vweird.f32 %v2194_v22 }
 0x3a0   :  { %vm641_vm4 = vmor %vm639_vm3, %vm640_vm2 }
 0x3a1   :  { %v636_v24 = vsub.f32 1.0, %v635_v23 }
 0x3a3   :  { %v637_v25 = vmul.f32 %v2194_v22, %v636_v24 }
 0x3a5   :  { %v638_v26 = vadd.f32 %v2194_v22, %v637_v25 }
 0x3a7   :  { %v642_v29 = vsel %vm641_vm4, %v2194_v22, %v638_v26 }
 0x3a8   :  { %v647_v32 = vsel %vm644_vm6, %v646_v30, %v642_v29 }
 0x3a9   :  { %v650_v35 = vmul.f32 %v647_v32, %v2784_v36 }
 0x3e8   :  { %v510_v18 = vpop.permute.xlu2 %509 }
 0x3e9   :  { %v516_v19 = vsel %vm289_vm5, %v2856_v47, %v510_v18 }
 0x3ea   :  { %v517_v20 = vsel %vm484_vm0, %v516_v19, %v514_v17 }
 0x3eb   :  { %2111 = vmatmul.msk.f32.vlgmr.msra.gmra.mxu0 %vm534_vm1, %v517_v20 }
 0x3ec   :  { %816 = vmatpush.msra.mxu0 %v2624_v44 }
 0x3ee   :  { %817 = vmatpush.msra.mxu0 %v2633_v46 }
 0x3f0   :  { %818 = vmatpush.msra.mxu0 %v2642_v48  ;;  %v2165_v48 = vld [vmem:[%s3415_s6] ss:$0 sm:$0xff] }
 0x3f2   :  { %819 = vmatpush.msra.mxu0 %v2651_v52 }
 0x406   :  { %v653_v44 = vpop.permute.xlu0 %652 }
 0x407   :  { %v655_v46 = vmul.f32 %v653_v44, %v647_v32 }
 0x409   :  { %657 = vrot.lane.b32.xlu0 %v655_v46, %s2361_s18 }
 0x468   :  { %v555_v52 = vpop.f32.mrf.mxu0 }
 0x469   :  { %v556_v33 = vadd.f32 %v2165_v48, %v555_v52 }
 0x46b   :  { %2195 = vtanh.f32 %v556_v33  ;;  %v2112_v47 = vmul.f32 -1.442695, %v556_v33 }
 0x471   :  { %v2196_v34 = vpop.eup %2195 }
 0x472   :  { %580 = vrot.lane.b32.xlu0 %v2196_v34, %s2361_s18 }
 0x47b   :  { %v658_v37 = vpop.permute.xlu0 %657 }
 0x47c   :  { %v2997_v6 = vadd.f32 %v658_v37, %v650_v35 }
 0x47e   :  { %2197 = vtanh.f32 %v2997_v6 }
 0x47f   :  { %2199 = vpow2.f32 %v2112_v47 }
 0x484   :  { %v2198_v4 = vpop.eup %2197 }
 0x485   :  { %663 = vrot.lane.b32.xlu2 %v2198_v4, %s2361_s18  ;;  %v2200_v49 = vpop.eup %2199 }
 0x486   :  { %v561_v59 = vadd.f32 1.0, %v2200_v49 }
 0x488   :  { %2201 = vrcp.f32 %v561_v59  ;;  %v573_v36 = vand.u32 2147483648, %v561_v59  ;;  %vm567_vm8 = vweird.f32 %v561_v59  ;;  %v571_v9 = vand.u32 2147483647, %v561_v59 }
 0x48a   :  { %v574_v17 = vor.u32 1.1754944e-38, %v573_v36  ;;  %vm572_vm10 = vcmp.eq.f32.partialorder %v571_v9, 8.507059e+37 }
 0x48e   :  { %v2202_v61 = vpop.eup %2201 }
 0x48f   :  { %v563_v62 = vmul.f32 %v2202_v61, %v561_v59  ;;  %vm568_vm7 = vweird.f32 %v2202_v61 }
 0x490   :  { %vm569_vm9 = vmor %vm567_vm8, %vm568_vm7 }
 0x491   :  { %v564_v1 = vsub.f32 1.0, %v563_v62 }
 0x493   :  { %v565_v2 = vmul.f32 %v2202_v61, %v564_v1 }
 0x495   :  { %v566_v3 = vadd.f32 %v2202_v61, %v565_v2 }
 0x497   :  { %v570_v15 = vsel %vm569_vm9, %v2202_v61, %v566_v3 }
 0x498   :  { %v575_v19 = vsel %vm572_vm10, %v574_v17, %v570_v15 }
 0x499   :  { %v578_v22 = vmul.f32 %v2848_v45, %v575_v19  ;;  %v2166_v45 = vld [vmem:[%s3417_s8] ss:$0 sm:$0xff] }
 0x4df   :  { %v664_v7 = vpop.permute.xlu2 %663 }
 0x4e0   :  { %v666_v13 = vmul.f32 %v664_v7, %v647_v32 }
 0x4e2   :  { %668 = vrot.lane.b32.xlu1 %v666_v13, %s2362_s0 }
 0x4e4   :  { %v581_v18 = vpop.permute.xlu0 %580 }
 0x4e5   :  { %v583_v20 = vmul.f32 %v581_v18, %v575_v19 }
 0x4e7   :  { %585 = vrot.lane.b32.xlu2 %v583_v20, %s2361_s18 }
 0x541   :  { %v586_v23 = vpop.permute.xlu2 %585 }
 0x542   :  { %v3004_v24 = vadd.f32 %v586_v23, %v578_v22 }
 0x544   :  { %2203 = vtanh.f32 %v3004_v24 }
 0x54a   :  { %v2204_v25 = vpop.eup %2203 }
 0x54b   :  { %591 = vrot.lane.b32.xlu1 %v2204_v25, %s2361_s18 }
 0x554   :  { %v669_v26 = vpop.permute.xlu1 %668 }
 0x555   :  { %v671_v27 = vsel %vm289_vm5, %v669_v26, %v2997_v6 }
 0x556   :  { %2115 = vmatmul.msk.f32.vlgmr.msra.gmra.mxu2 %vm484_vm0, %v671_v27 }
 0x557   :  { %1085 = vmatpush.msra.mxu2 %v2791_v38 }
 0x559   :  { %1086 = vmatpush.msra.mxu2 %v2796_v39 }
 0x55b   :  { %1087 = vmatpush.msra.mxu2 %v2803_v53 }
 0x55d   :  { %1088 = vmatpush.msra.mxu2 %v2810_v40 }
 0x55f   :  { %1089 = vmatpush.msra.mxu2 %v2817_v41 }
 0x561   :  { %1090 = vmatpush.msra.mxu2 %v2824_v42 }
 0x563   :  { %1091 = vmatpush.msra.mxu2 %v2831_v43  ;;  %v797_v43 = vadd.f32 %v2770_v10, %v2764_v0 }
 0x565   :  { %1092 = vmatpush.msra.mxu2 %v2841_v31 }
 0x5bd   :  { %v592_v39 = vpop.permute.xlu1 %591 }
 0x5be   :  { %v594_v53 = vmul.f32 %v592_v39, %v575_v19 }
 0x5d9   :  { %v704_v28 = vpop.f32.mrf.mxu2 }
 0x5da   :  { %v705_v38 = vadd.f32 %v2166_v45, %v704_v28  ;;  %v2168_v45 = vld [vmem:[%s3417_s8] ss:$0 sm:$0xff]  ;;  %v992_v28 = vadd.f32 %v2772_v11, %v2764_v0 }
 0x5dc   :  { %708 = vrot.lane.b32.xlu0 %v705_v38, %s2361_s18 }
 0x64e   :  { %v709_v29 = vpop.permute.xlu0 %708 }
 0x64f   :  { %v711_v40 = vsel %vm289_vm5, %v669_v26, %v709_v29 }
 0x650   :  { %v712_v41 = vsel %vm484_vm0, %v711_v40, %v594_v53 }
 0x651   :  { %2116 = vmatmul.msk.f32.vlgmr.msrb.gmra.mxu0 %vm534_vm1, %v712_v41 }
 0x652   :  { %931 = vmatpush.msrb.mxu0 %v2883_v50 }
 0x654   :  { %932 = vmatpush.msrb.mxu0 %v2888_v51 }
 0x656   :  { %933 = vmatpush.msrb.mxu0 %v2895_v54 }
 0x658   :  { %934 = vmatpush.msrb.mxu0 %v2902_v55 }
 0x659   :  { %2118 = vmatmul.msk.f32.vlgmr.msra.gmra.mxu0 %vm289_vm5, %v669_v26 }
 0x65a   :  { %935 = vmatpush.msrb.mxu0 %v2909_v21 }
 0x65c   :  { %936 = vmatpush.msrb.mxu0 %v2916_v5 }
 0x65e   :  { %937 = vmatpush.msrb.mxu0 %v2923_v56 }
 0x660   :  { %938 = vmatpush.msrb.mxu0 %v2930_v57 }
 0x662   :  { %939 = vmatpush.msrb.mxu0 %v2937_v58 }
 0x664   :  { %940 = vmatpush.msrb.mxu0 %v2947_v60 }
 0x666   :  { %941 = vmatpush.msrb.mxu0 %v2956_v63 }
 0x668   :  { %942 = vmatpush.msrb.mxu0 %v2967_v8  ;;  %v2167_v8 = vld [vmem:[%s3415_s6] ss:$0 sm:$0xff] }
 0x6ce   :  { %v749_v42 = vpop.f32.mrf.mxu0 }
 0x6cf   :  { %v750_v32 = vadd.f32 %v2167_v8, %v749_v42 }
 0x6d1   :  { %v2117_v34 = vmul.f32 -1.442695, %v750_v32 }
 0x6d6   :  { %v821_v31 = vpop.f32.mrf.mxu0 }
 0x6d7   :  { %v824_v50 = vadd.f32 %v821_v31, %v797_v43 }
 0x6d9   :  { %2205 = vtanh.f32 %v824_v50  ;;  %v2119_v54 = vmul.f32 -1.442695, %v824_v50 }
 0x6db   :  { %2207 = vpow2.f32 %v2119_v54 }
 0x6df   :  { %v2206_v51 = vpop.eup %2205 }
 0x6e0   :  { %847 = vrot.lane.b32.xlu2 %v2206_v51, %s2361_s18 }
 0x6e1   :  { %v2208_v55 = vpop.eup %2207 }
 0x6e2   :  { %v828_v21 = vadd.f32 1.0, %v2208_v55 }
 0x6e4   :  { %2209 = vrcp.f32 %v828_v21  ;;  %v840_v63 = vand.u32 2147483648, %v828_v21  ;;  %vm834_vm12 = vweird.f32 %v828_v21  ;;  %v838_v10 = vand.u32 2147483647, %v828_v21 }
 0x6e5   :  { %2211 = vtanh.f32 %v750_v32 }
 0x6e6   :  { %v841_v44 = vor.u32 1.1754944e-38, %v840_v63  ;;  %vm839_vm14 = vcmp.eq.f32.partialorder %v838_v10, 8.507059e+37  ;;  %2213 = vpow2.f32 %v2117_v34 }
 0x6ea   :  { %v2210_v5 = vpop.eup %2209 }
 0x6eb   :  { %v830_v56 = vmul.f32 %v2210_v5, %v828_v21  ;;  %vm835_vm11 = vweird.f32 %v2210_v5  ;;  %v2212_v33 = vpop.eup %2211 }
 0x6ec   :  { %vm836_vm13 = vmor %vm834_vm12, %vm835_vm11  ;;  %v2214_v35 = vpop.eup %2213 }
 0x6ed   :  { %v831_v57 = vsub.f32 1.0, %v830_v56  ;;  %v755_v37 = vadd.f32 1.0, %v2214_v35 }
 0x6ef   :  { %v832_v58 = vmul.f32 %v2210_v5, %v831_v57  ;;  %2215 = vrcp.f32 %v755_v37  ;;  %v767_v36 = vand.u32 2147483648, %v755_v37  ;;  %vm761_vm2 = vweird.f32 %v755_v37 }
 0x6f0   :  { %v765_v7 = vand.u32 2147483647, %v755_v37 }
 0x6f1   :  { %v833_v60 = vadd.f32 %v2210_v5, %v832_v58  ;;  %v768_v15 = vor.u32 1.1754944e-38, %v767_v36 }
 0x6f2   :  { %vm766_vm4 = vcmp.eq.f32.partialorder %v765_v7, 8.507059e+37 }
 0x6f3   :  { %v837_v30 = vsel %vm836_vm13, %v2210_v5, %v833_v60 }
 0x6f4   :  { %v842_v48 = vsel %vm839_vm14, %v841_v44, %v837_v30 }
 0x6f5   :  { %v2216_v4 = vpop.eup %2215  ;;  %v845_v49 = vmul.f32 %v842_v48, %v2997_v6 }
 0x6f6   :  { %v757_v47 = vmul.f32 %v2216_v4, %v755_v37  ;;  %vm762_vm15 = vweird.f32 %v2216_v4 }
 0x6f7   :  { %vm763_vm3 = vmor %vm761_vm2, %vm762_vm15 }
 0x6f8   :  { %v758_v61 = vsub.f32 1.0, %v757_v47 }
 0x6fa   :  { %v759_v1 = vmul.f32 %v2216_v4, %v758_v61 }
 0x6fc   :  { %v760_v2 = vadd.f32 %v2216_v4, %v759_v1 }
 0x6fe   :  { %v764_v9 = vsel %vm763_vm3, %v2216_v4, %v760_v2 }
 0x6ff   :  { %v769_v6 = vsel %vm766_vm4, %v768_v15, %v764_v9 }
 0x700   :  { %v772_v20 = vmul.f32 %v769_v6, %v3004_v24 }
 0x73a   :  { %v848_v46 = vpop.permute.xlu2 %847 }
 0x73b   :  { %v850_v52 = vmul.f32 %v848_v46, %v842_v48 }
 0x73d   :  { %852 = vrot.lane.b32.xlu1 %v850_v52, %s2361_s18 }
 0x745   :  { %774 = vrot.lane.b32.xlu1 %v2212_v33, %s2361_s18  ;;  %v2169_v33 = vld [vmem:[%s3415_s6] ss:$0 sm:$0xff] }
 0x7af   :  { %v853_v59 = vpop.permute.xlu1 %852 }
 0x7b0   :  { %v3048_v62 = vadd.f32 %v853_v59, %v845_v49 }
 0x7b2   :  { %2217 = vtanh.f32 %v3048_v62 }
 0x7b7   :  { %v775_v13 = vpop.permute.xlu1 %774 }
 0x7b8   :  { %v2218_v3 = vpop.eup %2217  ;;  %v777_v17 = vmul.f32 %v775_v13, %v769_v6 }
 0x7b9   :  { %858 = vrot.lane.b32.xlu0 %v2218_v3, %s2361_s18 }
 0x7c1   :  { %779 = vrot.lane.b32.xlu0 %v777_v17, %s2361_s18 }
 0x82b   :  { %v859_v18 = vpop.permute.xlu0 %858 }
 0x82c   :  { %v861_v19 = vmul.f32 %v859_v18, %v842_v48 }
 0x82e   :  { %863 = vrot.lane.b32.xlu2 %v861_v19, %s2362_s0 }
 0x833   :  { %v780_v22 = vpop.permute.xlu0 %779 }
 0x834   :  { %v3055_v23 = vadd.f32 %v780_v22, %v772_v20 }
 0x836   :  { %2219 = vtanh.f32 %v3055_v23 }
 0x83c   :  { %v2220_v25 = vpop.eup %2219 }
 0x83d   :  { %785 = vrot.lane.b32.xlu1 %v2220_v25, %s2361_s18 }
 0x888   :  { %v864_v26 = vpop.permute.xlu2 %863 }
 0x889   :  { %v866_v27 = vsel %vm289_vm5, %v864_v26, %v3048_v62  ;;  %2123 = vmatmul.msk.f32.vlgmr.msrb.gmra.mxu3 %vm289_vm5, %v864_v26 }
 0x88a   :  { %2120 = vmatmul.msk.f32.vlgmr.msrb.gmra.mxu2 %vm484_vm0, %v866_v27 }
 0x8af   :  { %v786_v63 = vpop.permute.xlu1 %785 }
 0x8b0   :  { %v788_v10 = vmul.f32 %v786_v63, %v769_v6 }
 0x90c   :  { %v1016_v38 = vpop.f32.mrf.mxu3 }
 0x90d   :  { %v1019_v39 = vadd.f32 %v1016_v38, %v992_v28  ;;  %v899_v53 = vpop.f32.mrf.mxu2 }
 0x90e   :  { %v900_v29 = vadd.f32 %v2168_v45, %v899_v53  ;;  %v2170_v45 = vld [vmem:[%s3417_s8] ss:$0 sm:$0xff]  ;;  %v3105_v53 = vld [vmem:[%s3412_s3 + $0x50] sm:$0xff] }
 0x90f   :  { %2221 = vtanh.f32 %v1019_v39  ;;  %v2124_v41 = vmul.f32 -1.442695, %v1019_v39  ;;  %v3100_v39 = vld [vmem:[%s3412_s3 + $0x58] sm:$0xff] }
 0x910   :  { %903 = vrot.lane.b32.xlu0 %v900_v29, %s2361_s18  ;;  %1206 = vmatpush.msrb.mxu1 %v3100_v39  ;;  %v3112_v29 = vld [vmem:[%s3412_s3 + $0x48] sm:$0xff] }
 0x911   :  { %2223 = vpow2.f32 %v2124_v41  ;;  %1401 = vmatpush.msrb.mxu2 %v3100_v39  ;;  %1596 = vmatpush.msrb.mxu3 %v3100_v39 }
 0x912   :  { %1207 = vmatpush.msrb.mxu1 %v3105_v53 }
 0x913   :  { %1402 = vmatpush.msrb.mxu2 %v3105_v53  ;;  %1597 = vmatpush.msrb.mxu3 %v3105_v53 }
 0x914   :  { %1208 = vmatpush.msrb.mxu1 %v3112_v29 }
 0x915   :  { %v2222_v40 = vpop.eup %2221  ;;  %1403 = vmatpush.msrb.mxu2 %v3112_v29  ;;  %1598 = vmatpush.msrb.mxu3 %v3112_v29 }
 0x916   :  { %1042 = vrot.lane.b32.xlu2 %v2222_v40, %s2361_s18  ;;  %v3120_v40 = vld [vmem:[%s3412_s3 + $0x40] sm:$0xff] }
 0x917   :  { %v2224_v42 = vpop.eup %2223  ;;  %1209 = vmatpush.msrb.mxu1 %v3120_v40  ;;  %1404 = vmatpush.msrb.mxu2 %v3120_v40 }
 0x918   :  { %v1023_v43 = vadd.f32 1.0, %v2224_v42  ;;  %1599 = vmatpush.msrb.mxu3 %v3120_v40 }
 0x91a   :  { %2225 = vrcp.f32 %v1023_v43  ;;  %v1035_v55 = vand.u32 2147483648, %v1023_v43  ;;  %vm1029_vm7 = vweird.f32 %v1023_v43  ;;  %v1033_v21 = vand.u32 2147483647, %v1023_v43 }
 0x91c   :  { %v1036_v56 = vor.u32 1.1754944e-38, %v1035_v55  ;;  %vm1034_vm9 = vcmp.eq.f32.partialorder %v1033_v21, 8.507059e+37 }
 0x920   :  { %v2226_v31 = vpop.eup %2225 }
 0x921   :  { %v1025_v50 = vmul.f32 %v2226_v31, %v1023_v43  ;;  %vm1030_vm6 = vweird.f32 %v2226_v31 }
 0x922   :  { %vm1031_vm8 = vmor %vm1029_vm7, %vm1030_vm6 }
 0x923   :  { %v1026_v51 = vsub.f32 1.0, %v1025_v50 }
 0x925   :  { %v1027_v54 = vmul.f32 %v2226_v31, %v1026_v51  ;;  %v3133_v51 = vpop.f32.mrf.mxu1 }
 0x927   :  { %v1028_v11 = vadd.f32 %v2226_v31, %v1027_v54 }
 0x929   :  { %v1032_v5 = vsel %vm1031_vm8, %v2226_v31, %v1028_v11  ;;  %v1187_v11 = vadd.f32 %v2774_v12, %v2764_v0 }
 0x92a   :  { %v1037_v58 = vsel %vm1034_vm9, %v1036_v56, %v1032_v5 }
 0x92b   :  { %v1040_v32 = vmul.f32 %v1037_v58, %v3048_v62 }
 0x970   :  { %v1043_v57 = vpop.permute.xlu2 %1042 }
 0x971   :  { %v1045_v60 = vmul.f32 %v1043_v57, %v1037_v58 }
 0x973   :  { %1047 = vrot.lane.b32.xlu2 %v1045_v60, %s2361_s18 }
 0x982   :  { %v904_v8 = vpop.permute.xlu0 %903 }
 0x983   :  { %v906_v30 = vsel %vm289_vm5, %v864_v26, %v904_v8 }
 0x984   :  { %v907_v44 = vsel %vm484_vm0, %v906_v30, %v788_v10 }
 0x985   :  { %2121 = vmatmul.msk.f32.vlgmr.msrb.gmra.mxu0 %vm534_vm1, %v907_v44 }
 0x9cd   :  { %v1048_v46 = vpop.permute.xlu2 %1047 }
 0x9ce   :  { %v3075_v48 = vadd.f32 %v1048_v46, %v1040_v32 }
 0x9d0   :  { %2227 = vtanh.f32 %v3075_v48 }
 0x9d6   :  { %v2228_v52 = vpop.eup %2227 }
 0x9d7   :  { %1053 = vrot.lane.b32.xlu1 %v2228_v52, %s2361_s18 }
 0xa02   :  { %v944_v34 = vpop.f32.mrf.mxu0 }
 0xa03   :  { %v945_v35 = vadd.f32 %v2169_v33, %v944_v34 }
 0xa05   :  { %2229 = vtanh.f32 %v945_v35  ;;  %v2122_v4 = vmul.f32 -1.442695, %v945_v35 }
 0xa07   :  { %2231 = vpow2.f32 %v2122_v4 }
 0xa0b   :  { %v2230_v37 = vpop.eup %2229 }
 0xa0c   :  { %969 = vrot.lane.b32.xlu2 %v2230_v37, %s2361_s18 }
 0xa0d   :  { %v2232_v47 = vpop.eup %2231 }
 0xa0e   :  { %v950_v49 = vadd.f32 1.0, %v2232_v47  ;;  %v2171_v47 = vld [vmem:[%s3415_s6] ss:$0 sm:$0xff] }
 0xa10   :  { %2233 = vrcp.f32 %v950_v49  ;;  %v962_v7 = vand.u32 2147483648, %v950_v49  ;;  %vm956_vm11 = vweird.f32 %v950_v49  ;;  %v960_v9 = vand.u32 2147483647, %v950_v49 }
 0xa12   :  { %v963_v15 = vor.u32 1.1754944e-38, %v962_v7  ;;  %vm961_vm13 = vcmp.eq.f32.partialorder %v960_v9, 8.507059e+37 }
 0xa16   :  { %v2234_v62 = vpop.eup %2233 }
 0xa17   :  { %v952_v1 = vmul.f32 %v2234_v62, %v950_v49  ;;  %vm957_vm10 = vweird.f32 %v2234_v62 }
 0xa18   :  { %vm958_vm12 = vmor %vm956_vm11, %vm957_vm10 }
 0xa19   :  { %v953_v2 = vsub.f32 1.0, %v952_v1 }
 0xa1b   :  { %v954_v3 = vmul.f32 %v2234_v62, %v953_v2 }
 0xa1d   :  { %v955_v36 = vadd.f32 %v2234_v62, %v954_v3 }
 0xa1f   :  { %v959_v13 = vsel %vm958_vm12, %v2234_v62, %v955_v36 }
 0xa20   :  { %v964_v17 = vsel %vm961_vm13, %v963_v15, %v959_v13 }
 0xa21   :  { %v967_v22 = vmul.f32 %v964_v17, %v3055_v23 }
 0xa49   :  { %v1054_v59 = vpop.permute.xlu1 %1053 }
 0xa4a   :  { %v1056_v61 = vmul.f32 %v1054_v59, %v1037_v58 }
 0xa4c   :  { %1058 = vrot.lane.b32.xlu0 %v1056_v61, %s2362_s0 }
 0xa66   :  { %v970_v6 = vpop.permute.xlu2 %969 }
 0xa67   :  { %v972_v18 = vmul.f32 %v970_v6, %v964_v17 }
 0xa69   :  { %974 = vrot.lane.b32.xlu1 %v972_v18, %s2361_s18 }
 0xabe   :  { %v1059_v19 = vpop.permute.xlu0 %1058 }
 0xabf   :  { %v1061_v20 = vsel %vm289_vm5, %v1059_v19, %v3075_v48 }
 0xac0   :  { %2125 = vmatmul.msk.f32.vlgmr.msra.gmra.mxu2 %vm484_vm0, %v1061_v20 }
 0xadb   :  { %v975_v25 = vpop.permute.xlu1 %974 }
 0xadc   :  { %v3089_v26 = vadd.f32 %v975_v25, %v967_v22 }
 0xade   :  { %2235 = vtanh.f32 %v3089_v26 }
 0xae4   :  { %v2236_v27 = vpop.eup %2235 }
 0xae5   :  { %980 = vrot.lane.b32.xlu0 %v2236_v27, %s2361_s18 }
 0xb43   :  { %v1094_v28 = vpop.f32.mrf.mxu2 }
 0xb44   :  { %v1095_v38 = vadd.f32 %v2170_v45, %v1094_v28 }
 0xb46   :  { %1098 = vrot.lane.b32.xlu2 %v1095_v38, %s2361_s18 }
 0xb57   :  { %v981_v41 = vpop.permute.xlu0 %980 }
 0xb58   :  { %v983_v42 = vmul.f32 %v981_v41, %v964_v17 }
 0xba0   :  { %v1099_v43 = vpop.permute.xlu2 %1098 }
 0xba1   :  { %v1101_v31 = vsel %vm289_vm5, %v1059_v19, %v1099_v43 }
 0xba2   :  { %v1102_v50 = vsel %vm484_vm0, %v1101_v31, %v983_v42 }
 0xba3   :  { %2126 = vmatmul.msk.f32.vlgmr.msra.gmra.mxu1 %vm534_vm1, %v1102_v50 }
 0xbab   :  { %2128 = vmatmul.msk.f32.vlgmr.msrb.gmra.mxu1 %vm289_vm5, %v1059_v19 }
 0xc20   :  { %v1139_v54 = vpop.f32.mrf.mxu1 }
 0xc21   :  { %v1140_v49 = vadd.f32 %v2171_v47, %v1139_v54  ;;  %v1304_v47 = vld [vmem:[%s3414_s5 + $0x30] sm:$0xff] }
 0xc23   :  { %v2127_v3 = vmul.f32 -1.442695, %v1140_v49 }
 0xc28   :  { %v1211_v55 = vpop.f32.mrf.mxu1 }
 0xc29   :  { %v1214_v21 = vadd.f32 %v1211_v55, %v1187_v11 }
 0xc2b   :  { %2237 = vtanh.f32 %v1214_v21  ;;  %v2129_v56 = vmul.f32 -1.442695, %v1214_v21 }
 0xc2d   :  { %2239 = vpow2.f32 %v2129_v56  ;;  %v1308_v56 = vld [vmem:[%s3414_s5 + $0x50] sm:$0xff] }
 0xc31   :  { %v2238_v5 = vpop.eup %2237 }
 0xc32   :  { %1237 = vrot.lane.b32.xlu1 %v2238_v5, %s2361_s18  ;;  %v1309_v5 = vld [vmem:[%s3414_s5 + $0x58] sm:$0xff] }
 0xc33   :  { %v2240_v57 = vpop.eup %2239  ;;  %1321 = vmatpush.msra.mxu0 %v1309_v5  ;;  %1516 = vmatpush.msra.mxu2 %v1309_v5 }
 0xc34   :  { %v1218_v58 = vadd.f32 1.0, %v2240_v57  ;;  %v1307_v57 = vld [vmem:[%s3414_s5 + $0x48] sm:$0xff] }
 0xc35   :  { %1322 = vmatpush.msra.mxu0 %v1308_v56  ;;  %1517 = vmatpush.msra.mxu2 %v1308_v56 }
 0xc36   :  { %2241 = vrcp.f32 %v1218_v58  ;;  %v1230_v44 = vand.u32 2147483648, %v1218_v58  ;;  %vm1224_vm15 = vweird.f32 %v1218_v58  ;;  %v1228_v12 = vand.u32 2147483647, %v1218_v58 }
 0xc37   :  { %1323 = vmatpush.msra.mxu0 %v1307_v57  ;;  %1518 = vmatpush.msra.mxu2 %v1307_v57 }
 0xc38   :  { %v1231_v46 = vor.u32 1.1754944e-38, %v1230_v44  ;;  %vm1229_vm3 = vcmp.eq.f32.partialorder %v1228_v12, 8.507059e+37 }
 0xc3c   :  { %v2242_v60 = vpop.eup %2241 }
 0xc3d   :  { %v1220_v63 = vmul.f32 %v2242_v60, %v1218_v58  ;;  %vm1225_vm14 = vweird.f32 %v2242_v60 }
 0xc3e   :  { %vm1226_vm2 = vmor %vm1224_vm15, %vm1225_vm14 }
 0xc3f   :  { %v1221_v10 = vsub.f32 1.0, %v1220_v63 }
 0xc41   :  { %v1222_v8 = vmul.f32 %v2242_v60, %v1221_v10 }
 0xc43   :  { %v1223_v30 = vadd.f32 %v2242_v60, %v1222_v8 }
 0xc45   :  { %v1227_v32 = vsel %vm1226_vm2, %v2242_v60, %v1223_v30 }
 0xc46   :  { %v1232_v33 = vsel %vm1229_vm3, %v1231_v46, %v1227_v32 }
 0xc47   :  { %v1235_v35 = vmul.f32 %v1232_v33, %v3075_v48 }
 0xca4   :  { %v1238_v52 = vpop.permute.xlu1 %1237 }
 0xca5   :  { %v1240_v34 = vmul.f32 %v1238_v52, %v1232_v33 }
 0xca7   :  { %1242 = vrot.lane.b32.xlu0 %v1240_v34, %s2361_s18 }
 0xd19   :  { %v1243_v37 = vpop.permute.xlu0 %1242 }
 0xd1a   :  { %v3140_v4 = vadd.f32 %v1243_v37, %v1235_v35  ;;  %v1306_v35 = vld [vmem:[%s3414_s5 + $0x40] sm:$0xff]  ;;  %v1305_v37 = vld [vmem:[%s3414_s5 + $0x38] sm:$0xff] }
 0xd1b   :  { %1324 = vmatpush.msra.mxu0 %v1306_v35  ;;  %1519 = vmatpush.msra.mxu2 %v1306_v35 }
 0xd1c   :  { %2243 = vtanh.f32 %v3140_v4 }
 0xd1d   :  { %2245 = vtanh.f32 %v1140_v49  ;;  %1325 = vmatpush.msra.mxu0 %v1305_v37  ;;  %1520 = vmatpush.msra.mxu2 %v1305_v37  ;;  %v1303_v49 = vld [vmem:[%s3414_s5 + $0x28] sm:$0xff] }
 0xd1e   :  { %2247 = vpow2.f32 %v2127_v3 }
 0xd1f   :  { %1326 = vmatpush.msra.mxu0 %v1304_v47  ;;  %1521 = vmatpush.msra.mxu2 %v1304_v47 }
 0xd21   :  { %1327 = vmatpush.msra.mxu0 %v1303_v49  ;;  %1522 = vmatpush.msra.mxu2 %v1303_v49 }
 0xd22   :  { %v2244_v59 = vpop.eup %2243 }
 0xd23   :  { %1248 = vrot.lane.b32.xlu2 %v2244_v59, %s2361_s18  ;;  %v2246_v61 = vpop.eup %2245  ;;  %v1302_v59 = vld [vmem:[%s3414_s5 + $0x20] sm:$0xff] }
 0xd24   :  { %v2248_v36 = vpop.eup %2247  ;;  %1328 = vmatpush.msra.mxu0 %v1302_v59  ;;  %1523 = vmatpush.msra.mxu2 %v1302_v59 }
 0xd25   :  { %v1145_v7 = vadd.f32 1.0, %v2248_v36 }
 0xd27   :  { %2249 = vrcp.f32 %v1145_v7  ;;  %v1157_v22 = vand.u32 2147483648, %v1145_v7  ;;  %vm1151_vm6 = vweird.f32 %v1145_v7  ;;  %v1155_v25 = vand.u32 2147483647, %v1145_v7 }
 0xd29   :  { %v1158_v28 = vor.u32 1.1754944e-38, %v1157_v22  ;;  %vm1156_vm8 = vcmp.eq.f32.partialorder %v1155_v25, 8.507059e+37  ;;  %v1458_v22 = vld [vmem:[%s3416_s7 + $0x30] sm:$0xff]  ;;  %v1456_v25 = vld [vmem:[%s3416_s7 + $0x20] sm:$0xff] }
 0xd2b   :  { %1164 = vrot.lane.b32.xlu2 %v2246_v61, %s2361_s18  ;;  %v1301_v61 = vld [vmem:[%s3414_s5 + $0x18] sm:$0xff] }
 0xd2c   :  { %1329 = vmatpush.msra.mxu0 %v1301_v61  ;;  %1524 = vmatpush.msra.mxu2 %v1301_v61 }
 0xd2d   :  { %v2250_v9 = vpop.eup %2249 }
 0xd2e   :  { %v1147_v13 = vmul.f32 %v2250_v9, %v1145_v7  ;;  %vm1152_vm4 = vweird.f32 %v2250_v9 }
 0xd2f   :  { %vm1153_vm7 = vmor %vm1151_vm6, %vm1152_vm4 }
 0xd30   :  { %v1148_v15 = vsub.f32 1.0, %v1147_v13 }
 0xd32   :  { %v1149_v18 = vmul.f32 %v2250_v9, %v1148_v15 }
 0xd34   :  { %v1150_v19 = vadd.f32 %v2250_v9, %v1149_v18 }
 0xd36   :  { %v1154_v27 = vsel %vm1153_vm7, %v2250_v9, %v1150_v19 }
 0xd37   :  { %v3159_v38 = vsel %vm1156_vm8, %v1158_v28, %v1154_v27  ;;  %v1455_v27 = vld [vmem:[%s3416_s7 + $0x18] sm:$0xff]  ;;  %v1453_v28 = vld [vmem:[%s3416_s7 + $0x8] sm:$0xff] }
 0xd38   :  { %v1162_v46 = vmul.f32 %v3159_v38, %v3089_v26 }
 0xd7d   :  { %v1249_v62 = vpop.permute.xlu2 %1248 }
 0xd7e   :  { %v1251_v1 = vmul.f32 %v1249_v62, %v1232_v33  ;;  %v1300_v62 = vld [vmem:[%s3414_s5 + $0x10] sm:$0xff] }
 0xd7f   :  { %1330 = vmatpush.msra.mxu0 %v1300_v62  ;;  %1525 = vmatpush.msra.mxu2 %v1300_v62 }
 0xd80   :  { %1253 = vrot.lane.b32.xlu1 %v1251_v1, %s2362_s0  ;;  %v1299_v1 = vld [vmem:[%s3414_s5 + $0x8] sm:$0xff] }
 0xd81   :  { %1331 = vmatpush.msra.mxu0 %v1299_v1  ;;  %1526 = vmatpush.msra.mxu2 %v1299_v1 }
 0xd85   :  { %v1165_v45 = vpop.permute.xlu2 %1164 }
 0xd86   :  { %v1167_v41 = vmul.f32 %v1165_v45, %v3159_v38  ;;  %v1454_v45 = vld [vmem:[%s3416_s7 + $0x10] sm:$0xff] }
 0xdf2   :  { %v3149_v48 = vpop.permute.xlu1 %1253 }
 0xdf3   :  { %v1256_v2 = vsel %vm289_vm5, %v3149_v48, %v3140_v4  ;;  %2133 = vmatmul.msk.f32.vlgmr.msrb.gmra.mxu2 %vm289_vm5, %v3149_v48 }
 0xdf4   :  { %2130 = vmatmul.msk.f32.vlgmr.msra.gmra.mxu3 %vm484_vm0, %v1256_v2  ;;  %v1298_v2 = vld [vmem:[%s3414_s5] sm:$0xff]  ;;  %s2081_s5 = sshll.u32 %s3421_s12, 4  ;;  %s2082_s5 = int_to_ptr.hbm [resolvable:$true] %s2081_s5 }
 0xdf5   :  { %1332 = vmatpush.msra.mxu0 %v1298_v2  ;;  %1527 = vmatpush.msra.mxu2 %v1298_v2 }
 0xdf7   :  { %1711 = vmatpush.msrb.mxu0 %v1309_v5  ;;  %1906 = vmatpush.msrb.mxu2 %v1309_v5 }
 0xdf9   :  { %1712 = vmatpush.msrb.mxu0 %v1308_v56  ;;  %1907 = vmatpush.msrb.mxu2 %v1308_v56 }
 0xdfb   :  { %1713 = vmatpush.msrb.mxu0 %v1307_v57  ;;  %1908 = vmatpush.msrb.mxu2 %v1307_v57 }
 0xdfd   :  { %1714 = vmatpush.msrb.mxu0 %v1306_v35  ;;  %1909 = vmatpush.msrb.mxu2 %v1306_v35 }
 0xdff   :  { %1715 = vmatpush.msrb.mxu0 %v1305_v37  ;;  %1910 = vmatpush.msrb.mxu2 %v1305_v37 }
 0xe01   :  { %1716 = vmatpush.msrb.mxu0 %v1304_v47  ;;  %1911 = vmatpush.msrb.mxu2 %v1304_v47 }
 0xe03   :  { %1717 = vmatpush.msrb.mxu0 %v1303_v49  ;;  %1912 = vmatpush.msrb.mxu2 %v1303_v49 }
 0xe05   :  { %1718 = vmatpush.msrb.mxu0 %v1302_v59  ;;  %1913 = vmatpush.msrb.mxu2 %v1302_v59 }
 0xe07   :  { %1719 = vmatpush.msrb.mxu0 %v1301_v61  ;;  %1914 = vmatpush.msrb.mxu2 %v1301_v61 }
 0xe09   :  { %1720 = vmatpush.msrb.mxu0 %v1300_v62  ;;  %1915 = vmatpush.msrb.mxu2 %v1300_v62 }
 0xe0b   :  { %1721 = vmatpush.msrb.mxu0 %v1299_v1  ;;  %1916 = vmatpush.msrb.mxu2 %v1299_v1 }
 0xe0d   :  { %1722 = vmatpush.msrb.mxu0 %v1298_v2  ;;  %1917 = vmatpush.msrb.mxu2 %v1298_v2 }
 0xe76   :  { %v1406_v6 = vpop.f32.mrf.mxu2 }
 0xe77   :  { %v1409_v17 = vadd.f32 %v1406_v6, %v2777_v14  ;;  %v2172_v14 = vld [vmem:[%s3417_s8] ss:$0 sm:$0xff]  ;;  %v1289_v42 = vpop.f32.mrf.mxu3 }
 0xe78   :  { %v1290_v43 = vadd.f32 %v2172_v14, %v1289_v42 }
 0xe79   :  { %2251 = vtanh.f32 %v1409_v17  ;;  %v2134_v31 = vmul.f32 -1.442695, %v1409_v17 }
 0xe7b   :  { %2253 = vpow2.f32 %v2134_v31 }
 0xe7f   :  { %v2252_v20 = vpop.eup %2251 }
 0xe80   :  { %1432 = vrot.lane.b32.xlu0 %v2252_v20, %s2361_s18  ;;  %v1459_v20 = vld [vmem:[%s3416_s7 + $0x38] sm:$0xff] }
 0xe81   :  { %v2254_v50 = vpop.eup %2253  ;;  %1475 = vmatpush.msra.mxu1 %v1459_v20  ;;  %1670 = vmatpush.msra.mxu3 %v1459_v20 }
 0xe82   :  { %v1413_v54 = vadd.f32 1.0, %v2254_v50 }
 0xe83   :  { %1476 = vmatpush.msra.mxu1 %v1458_v22  ;;  %1671 = vmatpush.msra.mxu3 %v1458_v22 }
 0xe84   :  { %2255 = vrcp.f32 %v1413_v54  ;;  %v1425_v63 = vand.u32 2147483648, %v1413_v54  ;;  %vm1419_vm10 = vweird.f32 %v1413_v54  ;;  %v1423_v10 = vand.u32 2147483647, %v1413_v54 }
 0xe86   :  { %v1426_v30 = vor.u32 1.1754944e-38, %v1425_v63  ;;  %vm1424_vm12 = vcmp.eq.f32.partialorder %v1423_v10, 8.507059e+37 }
 0xe88   :  { %1169 = vrot.lane.b32.xlu0 %v1167_v41, %s2361_s18 }
 0xe8a   :  { %v2256_v11 = vpop.eup %2255 }
 0xe8b   :  { %v1415_v55 = vmul.f32 %v2256_v11, %v1413_v54  ;;  %vm1420_vm9 = vweird.f32 %v2256_v11 }
 0xe8c   :  { %vm1421_vm11 = vmor %vm1419_vm10, %vm1420_vm9 }
 0xe8d   :  { %v1416_v21 = vsub.f32 1.0, %v1415_v55 }
 0xe8f   :  { %v1417_v58 = vmul.f32 %v2256_v11, %v1416_v21 }
 0xe90   :  { %1293 = vrot.lane.b32.xlu0 %v1290_v43, %s2361_s18  ;;  %v1452_v43 = vld [vmem:[%s3416_s7] sm:$0xff] }
 0xe91   :  { %v1418_v60 = vadd.f32 %v2256_v11, %v1417_v58 }
 0xe93   :  { %v1422_v8 = vsel %vm1421_vm11, %v2256_v11, %v1418_v60 }
 0xe94   :  { %v3176_v12 = vsel %vm1424_vm12, %v1426_v30, %v1422_v8  ;;  %v2174_v8 = vld [vmem:[%s3417_s8] ss:$0 sm:$0xff] }
 0xe95   :  { %v1430_v3 = vmul.f32 %v3176_v12, %v3140_v4 }
 0xef2   :  { %v1433_v44 = vpop.permute.xlu0 %1432 }
 0xef3   :  { %v1435_v32 = vmul.f32 %v1433_v44, %v3176_v12 }
 0xef5   :  { %1437 = vrot.lane.b32.xlu1 %v1435_v32, %s2361_s18 }
 0xefa   :  { %v1170_v52 = vpop.permute.xlu0 %1169 }
 0xefb   :  { %v3182_v33 = vadd.f32 %v1170_v52, %v1162_v46 }
 0xefd   :  { %2257 = vtanh.f32 %v3182_v33 }
 0xf02   :  { %v1294_v4 = vpop.permute.xlu0 %1293 }
 0xf03   :  { %v2258_v34 = vpop.eup %2257  ;;  %v1296_v6 = vsel %vm289_vm5, %v3149_v48, %v1294_v4  ;;  %v1457_v48 = vld [vmem:[%s3416_s7 + $0x28] sm:$0xff]  ;;  %s2366_s7 = smov 8  }
 0xf04   :  { %1175 = vrot.lane.b32.xlu1 %v2258_v34, %s2361_s18  ;;  %1477 = vmatpush.msra.mxu1 %v1457_v48 }
 0xf05   :  { %1672 = vmatpush.msra.mxu3 %v1457_v48 }
 0xf06   :  { %1478 = vmatpush.msra.mxu1 %v1456_v25 }
 0xf07   :  { %1673 = vmatpush.msra.mxu3 %v1456_v25 }
 0xf08   :  { %1479 = vmatpush.msra.mxu1 %v1455_v27 }
 0xf09   :  { %1674 = vmatpush.msra.mxu3 %v1455_v27 }
 0xf0a   :  { %1480 = vmatpush.msra.mxu1 %v1454_v45 }
 0xf0b   :  { %1675 = vmatpush.msra.mxu3 %v1454_v45 }
 0xf0c   :  { %1481 = vmatpush.msra.mxu1 %v1453_v28 }
 0xf0d   :  { %1676 = vmatpush.msra.mxu3 %v1453_v28 }
 0xf0e   :  { %1482 = vmatpush.msra.mxu1 %v1452_v43 }
 0xf0f   :  { %1677 = vmatpush.msra.mxu3 %v1452_v43 }
 0xf10   :  { %1791 = vmatpush.msrb.mxu1 %v3100_v39 }
 0xf12   :  { %1792 = vmatpush.msrb.mxu1 %v3105_v53 }
 0xf14   :  { %1793 = vmatpush.msrb.mxu1 %v3112_v29 }
 0xf16   :  { %1794 = vmatpush.msrb.mxu1 %v3120_v40 }
 0xf67   :  { %v1438_v36 = vpop.permute.xlu1 %1437 }
 0xf68   :  { %v3215_v7 = vadd.f32 %v1438_v36, %v1430_v3 }
 0xf6a   :  { %2259 = vtanh.f32 %v3215_v7 }
 0xf70   :  { %v2260_v9 = vpop.eup %2259 }
 0xf71   :  { %1443 = vrot.lane.b32.xlu2 %v2260_v9, %s2361_s18 }
 0xf76   :  { %v1176_v13 = vpop.permute.xlu1 %1175 }
 0xf77   :  { %v1178_v15 = vmul.f32 %v1176_v13, %v3159_v38  ;;  %v2173_v38 = vld [vmem:[%s3415_s6] ss:$0 sm:$0xff] }
 0xf79   :  { %v1297_v17 = vsel %vm484_vm0, %v1296_v6, %v1178_v15 }
 0xf7a   :  { %2131 = vmatmul.msk.f32.vlgmr.msra.gmra.mxu0 %vm534_vm1, %v1297_v17 }
 0xfcb   :  { %v1444_v18 = vpop.permute.xlu2 %1443 }
 0xfcc   :  { %v1446_v19 = vmul.f32 %v1444_v18, %v3176_v12 }
 0xfce   :  { %1448 = vrot.lane.b32.xlu2 %v1446_v19, %s2362_s0 }
 0xff7   :  { %v1334_v41 = vpop.f32.mrf.mxu0 }
 0xff8   :  { %v1335_v14 = vadd.f32 %v2173_v38, %v1334_v41 }
 0xffa   :  { %2261 = vtanh.f32 %v1335_v14  ;;  %v2132_v39 = vmul.f32 -1.442695, %v1335_v14 }
 0xffc   :  { %2263 = vpow2.f32 %v2132_v39 }
0x1000   :  { %v2262_v42 = vpop.eup %2261 }
0x1001   :  { %1359 = vrot.lane.b32.xlu1 %v2262_v42, %s2361_s18 }
0x1002   :  { %v2264_v53 = vpop.eup %2263 }
0x1003   :  { %v1340_v29 = vadd.f32 1.0, %v2264_v53 }
0x1005   :  { %2265 = vrcp.f32 %v1340_v29  ;;  %v1352_v5 = vand.u32 2147483648, %v1340_v29  ;;  %vm1346_vm14 = vweird.f32 %v1340_v29  ;;  %v1350_v56 = vand.u32 2147483647, %v1340_v29 }
0x1007   :  { %v1353_v58 = vor.u32 1.1754944e-38, %v1352_v5  ;;  %vm1351_vm2 = vcmp.eq.f32.partialorder %v1350_v56, 8.507059e+37 }
0x100b   :  { %v2266_v40 = vpop.eup %2265 }
0x100c   :  { %v1342_v54 = vmul.f32 %v2266_v40, %v1340_v29  ;;  %vm1347_vm13 = vweird.f32 %v2266_v40 }
0x100d   :  { %vm1348_vm15 = vmor %vm1346_vm14, %vm1347_vm13 }
0x100e   :  { %v1343_v11 = vsub.f32 1.0, %v1342_v54 }
0x1010   :  { %v1344_v55 = vmul.f32 %v2266_v40, %v1343_v11 }
0x1012   :  { %v1345_v21 = vadd.f32 %v2266_v40, %v1344_v55 }
0x1014   :  { %v1349_v57 = vsel %vm1348_vm15, %v2266_v40, %v1345_v21 }
0x1015   :  { %v1354_v63 = vsel %vm1351_vm2, %v1353_v58, %v1349_v57 }
0x1016   :  { %v1357_v52 = vmul.f32 %v1354_v63, %v3182_v33 }
0x1028   :  { %v3258_v31 = vpop.permute.xlu2 %1448 }
0x1029   :  { %v1451_v50 = vsel %vm289_vm5, %v3258_v31, %v3215_v7  ;;  %2138 = vmatmul.msk.f32.vlgmr.msrb.gmra.mxu3 %vm289_vm5, %v3258_v31 }
0x102a   :  { %2135 = vmatmul.msk.f32.vlgmr.msra.gmra.mxu1 %vm484_vm0, %v1451_v50 }
0x102b   :  { %1865 = vmatpush.msra.mxu1 %v1459_v20 }
0x102d   :  { %1866 = vmatpush.msra.mxu1 %v1458_v22 }
0x102f   :  { %1867 = vmatpush.msra.mxu1 %v1457_v48 }
0x1031   :  { %1868 = vmatpush.msra.mxu1 %v1456_v25 }
0x1033   :  { %1869 = vmatpush.msra.mxu1 %v1455_v27 }
0x1035   :  { %1870 = vmatpush.msra.mxu1 %v1454_v45 }
0x1037   :  { %1871 = vmatpush.msra.mxu1 %v1453_v28  ;;  %v2175_v28 = vld [vmem:[%s3415_s6] ss:$0 sm:$0xff] }
0x1039   :  { %1872 = vmatpush.msra.mxu1 %v1452_v43 }
0x1073   :  { %v1360_v60 = vpop.permute.xlu1 %1359 }
0x1074   :  { %v1362_v10 = vmul.f32 %v1360_v60, %v1354_v63 }
0x1076   :  { %1364 = vrot.lane.b32.xlu2 %v1362_v10, %s2361_s18 }
0x10a7   :  { %v1484_v30 = vpop.f32.mrf.mxu1 }
0x10a8   :  { %v1485_v44 = vadd.f32 %v2174_v8, %v1484_v30 }
0x10aa   :  { %1488 = vrot.lane.b32.xlu2 %v1485_v44, %s2361_s18 }
0x10ac   :  { %v1601_v12 = vpop.f32.mrf.mxu3 }
0x10ad   :  { %v1604_v32 = vadd.f32 %v1601_v12, %v2780_v16  ;;  %v1772_v12 = vadd.f32 %v3133_v51, %v2764_v0 }
0x10af   :  { %2267 = vtanh.f32 %v1604_v32  ;;  %v2139_v47 = vmul.f32 -1.442695, %v1604_v32 }
0x10b5   :  { %v2268_v46 = vpop.eup %2267 }
0x10b6   :  { %1627 = vrot.lane.b32.xlu0 %v2268_v46, %s2361_s18 }
0x10d0   :  { %v1365_v34 = vpop.permute.xlu2 %1364 }
0x10d1   :  { %v3274_v35 = vadd.f32 %v1365_v34, %v1357_v52  ;;  %v2176_v52 = vld [vmem:[%s3417_s8] ss:$0 sm:$0xff] }
0x10d3   :  { %2269 = vtanh.f32 %v3274_v35 }
0x10d4   :  { %2271 = vpow2.f32 %v2139_v47 }
0x10d9   :  { %v2270_v37 = vpop.eup %2269 }
0x10da   :  { %1370 = vrot.lane.b32.xlu0 %v2270_v37, %s2361_s18  ;;  %v2272_v49 = vpop.eup %2271 }
0x10db   :  { %v1608_v59 = vadd.f32 1.0, %v2272_v49 }
0x10dd   :  { %2273 = vrcp.f32 %v1608_v59  ;;  %v1620_v3 = vand.u32 2147483648, %v1608_v59  ;;  %vm1614_vm4 = vweird.f32 %v1608_v59  ;;  %v1618_v36 = vand.u32 2147483647, %v1608_v59 }
0x10df   :  { %v1621_v4 = vor.u32 1.1754944e-38, %v1620_v3  ;;  %vm1619_vm7 = vcmp.eq.f32.partialorder %v1618_v36, 8.507059e+37 }
0x10e3   :  { %v2274_v16 = vpop.eup %2273 }
0x10e4   :  { %v1610_v61 = vmul.f32 %v2274_v16, %v1608_v59  ;;  %vm1615_vm3 = vweird.f32 %v2274_v16 }
0x10e5   :  { %vm1616_vm6 = vmor %vm1614_vm4, %vm1615_vm3 }
0x10e6   :  { %v1611_v62 = vsub.f32 1.0, %v1610_v61 }
0x10e8   :  { %v1612_v1 = vmul.f32 %v2274_v16, %v1611_v62 }
0x10ea   :  { %v1613_v2 = vadd.f32 %v2274_v16, %v1612_v1 }
0x10ec   :  { %v1617_v9 = vsel %vm1616_vm6, %v2274_v16, %v1613_v2 }
0x10ed   :  { %v1622_v13 = vsel %vm1619_vm7, %v1621_v4, %v1617_v9 }
0x10ee   :  { %v1625_v48 = vmul.f32 %v1622_v13, %v3215_v7 }
0x1104   :  { %v1489_v17 = vpop.permute.xlu2 %1488 }
0x1105   :  { %v1491_v20 = vsel %vm289_vm5, %v3258_v31, %v1489_v17 }
0x1128   :  { %v1628_v15 = vpop.permute.xlu0 %1627 }
0x1129   :  { %v1630_v6 = vmul.f32 %v1628_v15, %v1622_v13 }
0x112b   :  { %1632 = vrot.lane.b32.xlu1 %v1630_v6, %s2361_s18 }
0x114c   :  { %v1371_v18 = vpop.permute.xlu0 %1370 }
0x114d   :  { %v1373_v19 = vmul.f32 %v1371_v18, %v1354_v63 }
0x114f   :  { %v1492_v22 = vsel %vm484_vm0, %v1491_v20, %v1373_v19 }
0x1150   :  { %2136 = vmatmul.msk.f32.vlgmr.msra.gmra.mxu2 %vm534_vm1, %v1492_v22 }
0x119d   :  { %v1633_v25 = vpop.permute.xlu1 %1632 }
0x119e   :  { %v3284_v27 = vadd.f32 %v1633_v25, %v1625_v48 }
0x11a0   :  { %2275 = vtanh.f32 %v3284_v27 }
0x11a6   :  { %v2276_v45 = vpop.eup %2275 }
0x11a7   :  { %1638 = vrot.lane.b32.xlu1 %v2276_v45, %s2361_s18  ;;  %v2177_v45 = vld [vmem:[%s3415_s6] ss:$0 sm:$0xff] }
0x11d3   :  { %v1529_v38 = vpop.f32.mrf.mxu2 }
0x11d4   :  { %v1530_v41 = vadd.f32 %v2175_v28, %v1529_v38 }
0x11d6   :  { %2277 = vtanh.f32 %v1530_v41  ;;  %v2137_v42 = vmul.f32 -1.442695, %v1530_v41 }
0x11d8   :  { %2279 = vpow2.f32 %v2137_v42 }
0x11dc   :  { %v2278_v14 = vpop.eup %2277 }
0x11dd   :  { %1554 = vrot.lane.b32.xlu2 %v2278_v14, %s2361_s18 }
0x11de   :  { %v2280_v7 = vpop.eup %2279 }
0x11df   :  { %v1535_v43 = vadd.f32 1.0, %v2280_v7 }
0x11e1   :  { %2281 = vrcp.f32 %v1535_v43  ;;  %v1547_v11 = vand.u32 2147483648, %v1535_v43  ;;  %vm1541_vm9 = vweird.f32 %v1535_v43  ;;  %v1545_v55 = vand.u32 2147483647, %v1535_v43 }
0x11e3   :  { %v1548_v5 = vor.u32 1.1754944e-38, %v1547_v11  ;;  %vm1546_vm11 = vcmp.eq.f32.partialorder %v1545_v55, 8.507059e+37 }
0x11e7   :  { %v2282_v39 = vpop.eup %2281 }
0x11e8   :  { %v1537_v53 = vmul.f32 %v2282_v39, %v1535_v43  ;;  %vm1542_vm8 = vweird.f32 %v2282_v39 }
0x11e9   :  { %vm1543_vm10 = vmor %vm1541_vm9, %vm1542_vm8 }
0x11ea   :  { %v1538_v29 = vsub.f32 1.0, %v1537_v53 }
0x11ec   :  { %v1539_v40 = vmul.f32 %v2282_v39, %v1538_v29 }
0x11ee   :  { %v1540_v54 = vadd.f32 %v2282_v39, %v1539_v40 }
0x11f0   :  { %v1544_v21 = vsel %vm1543_vm10, %v2282_v39, %v1540_v54 }
0x11f1   :  { %v1549_v57 = vsel %vm1546_vm11, %v1548_v5, %v1544_v21 }
0x11f2   :  { %v1552_v10 = vmul.f32 %v1549_v57, %v3274_v35 }
0x1219   :  { %v1639_v31 = vpop.permute.xlu1 %1638 }
0x121a   :  { %v1641_v50 = vmul.f32 %v1639_v31, %v1622_v13 }
0x121c   :  { %1643 = vrot.lane.b32.xlu0 %v1641_v50, %s2362_s0 }
0x1237   :  { %v1555_v56 = vpop.permute.xlu2 %1554 }
0x1238   :  { %v1557_v58 = vmul.f32 %v1555_v56, %v1549_v57 }
0x123a   :  { %1559 = vrot.lane.b32.xlu1 %v1557_v58, %s2361_s18 }
0x128e   :  { %v1644_v60 = vpop.permute.xlu0 %1643 }
0x128f   :  { %v1646_v63 = vsel %vm289_vm5, %v1644_v60, %v3284_v27  ;;  %2143 = vmatmul.msk.f32.vlgmr.msrb.gmra.mxu1 %vm289_vm5, %v1644_v60 }
0x1290   :  { %2140 = vmatmul.msk.f32.vlgmr.msra.gmra.mxu3 %vm484_vm0, %v1646_v63 }
0x12ac   :  { %v1560_v8 = vpop.permute.xlu1 %1559 }
0x12ad   :  { %v3299_v30 = vadd.f32 %v1560_v8, %v1552_v10 }
0x12af   :  { %2283 = vtanh.f32 %v3299_v30 }
0x12b5   :  { %v2284_v44 = vpop.eup %2283 }
0x12b6   :  { %1565 = vrot.lane.b32.xlu2 %v2284_v44, %s2361_s18 }
0x130c   :  { %v1796_v32 = vpop.f32.mrf.mxu1 }
0x130d   :  { %v1799_v46 = vadd.f32 %v1796_v32, %v1772_v12  ;;  %v1976_v12 = vld [vmem:[%s3418_s9 + $0x18] sm:$0xff]  ;;  %v1975_v32 = vld [vmem:[%s3418_s9 + $0x10] sm:$0xff] }
0x130e   :  { %2017 = vmatpush.msrb.mxu3 %v1976_v12 }
0x130f   :  { %2285 = vtanh.f32 %v1799_v46  ;;  %v2144_v49 = vmul.f32 -1.442695, %v1799_v46  ;;  %v1974_v46 = vld [vmem:[%s3418_s9 + $0x8] sm:$0xff] }
0x1310   :  { %v1566_v36 = vpop.permute.xlu2 %1565  ;;  %2018 = vmatpush.msrb.mxu3 %v1975_v32 }
0x1311   :  { %2287 = vpow2.f32 %v2144_v49  ;;  %v1568_v13 = vmul.f32 %v1566_v36, %v1549_v57  ;;  %v3374_v36 = vld [vmem:[%s3419_s10] ss:$0 sm:$0xff] }
0x1312   :  { %2019 = vmatpush.msrb.mxu3 %v1974_v46 }
0x1313   :  { %v1679_v34 = vpop.f32.mrf.mxu3 }
0x1314   :  { %v1680_v37 = vadd.f32 %v2176_v52, %v1679_v34 }
0x1315   :  { %v2286_v47 = vpop.eup %2285 }
0x1316   :  { %1822 = vrot.lane.b32.xlu0 %v2286_v47, %s2361_s18  ;;  %1683 = vrot.lane.b32.xlu1 %v1680_v37, %s2361_s18 }
0x1317   :  { %v2288_v59 = vpop.eup %2287 }
0x1318   :  { %v1803_v16 = vadd.f32 1.0, %v2288_v59 }
0x131a   :  { %2289 = vrcp.f32 %v1803_v16  ;;  %v1815_v2 = vand.u32 2147483648, %v1803_v16  ;;  %vm1809_vm13 = vweird.f32 %v1803_v16  ;;  %v1813_v3 = vand.u32 2147483647, %v1803_v16 }
0x131c   :  { %v1816_v4 = vor.u32 1.1754944e-38, %v1815_v2  ;;  %vm1814_vm15 = vcmp.eq.f32.partialorder %v1813_v3, 8.507059e+37 }
0x1320   :  { %v2290_v0 = vpop.eup %2289 }
0x1321   :  { %v1805_v51 = vmul.f32 %v2290_v0, %v1803_v16  ;;  %vm1810_vm12 = vweird.f32 %v2290_v0 }
0x1322   :  { %vm1811_vm14 = vmor %vm1809_vm13, %vm1810_vm12 }
0x1323   :  { %v1806_v61 = vsub.f32 1.0, %v1805_v51 }
0x1325   :  { %v1807_v62 = vmul.f32 %v2290_v0, %v1806_v61 }
0x1327   :  { %v1808_v1 = vadd.f32 %v2290_v0, %v1807_v62 }
0x1329   :  { %v1812_v9 = vsel %vm1811_vm14, %v2290_v0, %v1808_v1 }
0x132a   :  { %v1817_v6 = vsel %vm1814_vm15, %v1816_v4, %v1812_v9 }
0x132b   :  { %v1820_v22 = vmul.f32 %v1817_v6, %v3284_v27 }
0x1388   :  { %v1823_v15 = vpop.permute.xlu0 %1822  ;;  %v1684_v17 = vpop.permute.xlu1 %1683 }
0x1389   :  { %v1825_v18 = vmul.f32 %v1823_v15, %v1817_v6  ;;  %v1686_v19 = vsel %vm289_vm5, %v1644_v60, %v1684_v17 }
0x138a   :  { %v1687_v20 = vsel %vm484_vm0, %v1686_v19, %v1568_v13  ;;  %v2180_v13 = vld [vmem:[%s3415_s6] ss:$0 sm:$0xff]  ;;  %s2364_s6 = smov [#allocation4]  }
0x138b   :  { %1827 = vrot.lane.b32.xlu0 %v1825_v18, %s2361_s18  ;;  %2141 = vmatmul.msk.f32.vlgmr.msrb.gmra.mxu0 %vm534_vm1, %v1687_v20  ;;  %s2066_s10 = sshll.u32 %s2364_s6, 4  ;;  %s2067_s10 = int_to_ptr.vmem [resolvable:$true] %s2066_s10 }
0x13fd   :  { %v1828_v48 = vpop.permute.xlu0 %1827 }
0x13fe   :  { %v1830_v25 = vadd.f32 %v1828_v48, %v1820_v22 }
0x1400   :  { %2291 = vtanh.f32 %v1830_v25 }
0x1406   :  { %v2292_v28 = vpop.eup %2291 }
0x1407   :  { %1833 = vrot.lane.b32.xlu2 %v2292_v28, %s2361_s18 }
0x1408   :  { %v1724_v38 = vpop.f32.mrf.mxu0 }
0x1409   :  { %v1725_v41 = vadd.f32 %v2177_v45, %v1724_v38 }
0x140b   :  { %2293 = vtanh.f32 %v1725_v41  ;;  %v2142_v42 = vmul.f32 -1.442695, %v1725_v41 }
0x140d   :  { %2295 = vpow2.f32 %v2142_v42 }
0x1411   :  { %v2294_v14 = vpop.eup %2293 }
0x1412   :  { %1749 = vrot.lane.b32.xlu0 %v2294_v14, %s2361_s18 }
0x1413   :  { %v2296_v7 = vpop.eup %2295 }
0x1414   :  { %v1730_v31 = vadd.f32 1.0, %v2296_v7 }
0x1416   :  { %2297 = vrcp.f32 %v1730_v31  ;;  %v1742_v54 = vand.u32 2147483648, %v1730_v31  ;;  %vm1736_vm3 = vweird.f32 %v1730_v31  ;;  %v1740_v11 = vand.u32 2147483647, %v1730_v31 }
0x1418   :  { %v1743_v21 = vor.u32 1.1754944e-38, %v1742_v54  ;;  %vm1741_vm6 = vcmp.eq.f32.partialorder %v1740_v11, 8.507059e+37 }
0x141c   :  { %v2298_v50 = vpop.eup %2297 }
0x141d   :  { %v1732_v39 = vmul.f32 %v2298_v50, %v1730_v31  ;;  %vm1737_vm2 = vweird.f32 %v2298_v50 }
0x141e   :  { %vm1738_vm4 = vmor %vm1736_vm3, %vm1737_vm2 }
0x141f   :  { %v1733_v53 = vsub.f32 1.0, %v1732_v39 }
0x1421   :  { %v1734_v29 = vmul.f32 %v2298_v50, %v1733_v53 }
0x1423   :  { %v1735_v40 = vadd.f32 %v2298_v50, %v1734_v29 }
0x1425   :  { %v1739_v55 = vsel %vm1738_vm4, %v2298_v50, %v1735_v40 }
0x1426   :  { %v1744_v56 = vsel %vm1741_vm6, %v1743_v21, %v1739_v55 }
0x1427   :  { %v1747_v63 = vmul.f32 %v1744_v56, %v3299_v30 }
0x1461   :  { %v1834_v27 = vpop.permute.xlu2 %1833 }
0x1462   :  { %v1836_v43 = vmul.f32 %v1834_v27, %v1817_v6 }
0x1464   :  { %1838 = vrot.lane.b32.xlu1 %v1836_v43, %s2362_s0 }
0x1484   :  { %v1750_v5 = vpop.permute.xlu0 %1749 }
0x1485   :  { %v1752_v57 = vmul.f32 %v1750_v5, %v1744_v56 }
0x1487   :  { %1754 = vrot.lane.b32.xlu2 %v1752_v57, %s2361_s18 }
0x14d6   :  { %v1839_v58 = vpop.permute.xlu1 %1838 }
0x14d7   :  { %v1841_v60 = vsel %vm289_vm5, %v1839_v58, %v1830_v25 }
0x14d8   :  { %2054 = vst.msk [vmem:[#allocation6] sm:$0xff] %vm484_vm0, %v1841_v60  ;;  %2145 = vmatmul.msk.f32.vlgmr.msra.gmra.mxu1 %vm484_vm0, %v1841_v60 }
0x14e1   :  { %v1755_v10 = vpop.permute.xlu2 %1754 }
0x14e2   :  { %v3326_v8 = vadd.f32 %v1755_v10, %v1747_v63 }
0x14e4   :  { %2299 = vtanh.f32 %v3326_v8 }
0x14ea   :  { %v2300_v44 = vpop.eup %2299 }
0x14eb   :  { %1760 = vrot.lane.b32.xlu1 %v2300_v44, %s2361_s18 }
0x14f3   :  { %596 = vrot.lane.b32.xlu1 %v3004_v24, %s2363_s29  ;;  %v1973_v24 = vld [vmem:[%s3418_s9] sm:$0xff] }
0x14f4   :  { %2020 = vmatpush.msrb.mxu3 %v1973_v24 }
0x14fb   :  { %985 = vrot.lane.b32.xlu1 %v3089_v26, %s2363_s29  ;;  %v2178_v26 = vld [vmem:[%s3417_s8] ss:$0 sm:$0xff] }
0x1503   :  { %1570 = vrot.lane.b32.xlu1 %v3299_v30, %s2363_s29 }
0x1555   :  { %v1874_v30 = vpop.f32.mrf.mxu1 }
0x1556   :  { %v1875_v52 = vadd.f32 %v2178_v26, %v1874_v30 }
0x1558   :  { %1878 = vrot.lane.b32.xlu0 %v1875_v52, %s2361_s18 }
0x155d   :  { %v1761_v34 = vpop.permute.xlu1 %1760 }
0x155e   :  { %v1763_v16 = vmul.f32 %v1761_v34, %v1744_v56 }
0x1560   :  { %790 = vrot.lane.b32.xlu0 %v3055_v23, %s2363_s29 }
0x1565   :  { %v597_v37 = vpop.permute.xlu1 %596 }
0x1566   :  { %599 = vst.msk [vmem:[#allocation3] sm:$0xff] %vm289_vm5, %v597_v37 }
0x1568   :  { %1180 = vrot.lane.b32.xlu0 %v3182_v33, %s2363_s29 }
0x156d   :  { %v986_v47 = vpop.permute.xlu1 %985  ;;  %v1965_v49 = vld [vmem:[#allocation3] sm:$0xff] }
0x156e   :  { %989 = vst.msk [vmem:[#allocation3 + $0x10] sm:$0xff] %vm289_vm5, %v986_v47  ;;  %2148 = vmatmul.msk.f32.vlgmr.msrb.gmra.mxu3 %vm289_vm5, %v1965_v49 }
0x1570   :  { %1765 = vrot.lane.b32.xlu0 %v3326_v8, %s2363_s29 }
0x1575   :  { %v1571_v59 = vpop.permute.xlu1 %1570  ;;  %v1967_v2 = vld [vmem:[#allocation3 + $0x10] sm:$0xff] }
0x1576   :  { %1574 = vst.msk [vmem:[#allocation3 + $0x28] sm:$0xff] %vm289_vm5, %v1571_v59 }
0x157d   :  { %v1970_v57 = vld [vmem:[#allocation3 + $0x28] sm:$0xff] }
0x15ca   :  { %v1879_v23 = vpop.permute.xlu0 %1878 }
0x15cb   :  { %v1881_v0 = vsel %vm289_vm5, %v1839_v58, %v1879_v23 }
0x15cc   :  { %v1882_v51 = vsel %vm484_vm0, %v1881_v0, %v1763_v16 }
0x15cd   :  { %2146 = vmatmul.msk.f32.vlgmr.msrb.gmra.mxu2 %vm534_vm1, %v1882_v51 }
0x15d2   :  { %v791_v33 = vpop.permute.xlu0 %790 }
0x15d3   :  { %794 = vst.msk [vmem:[#allocation3 + $0x8] sm:$0xff] %vm289_vm5, %v791_v33 }
0x15da   :  { %v1181_v61 = vpop.permute.xlu0 %1180  ;;  %v1966_v62 = vld [vmem:[#allocation3 + $0x8] sm:$0xff] }
0x15db   :  { %1184 = vst.msk [vmem:[#allocation3 + $0x18] sm:$0xff] %vm289_vm5, %v1181_v61  ;;  %2149 = vmatmul.msk.f32.gmra.mxu3 %vm289_vm5, %v1966_v62 }
0x15e2   :  { %v1766_v1 = vpop.permute.xlu0 %1765  ;;  %v1968_v3 = vld [vmem:[#allocation3 + $0x18] sm:$0xff] }
0x15e3   :  { %1769 = vst.msk [vmem:[#allocation3 + $0x30] sm:$0xff] %vm289_vm5, %v1766_v1  ;;  %2150 = vmatmul.msk.f32.gmra.mxu3 %vm289_vm5, %v1967_v2 }
0x15eb   :  { %2151 = vmatmul.msk.f32.gmra.mxu3 %vm289_vm5, %v1968_v3 }
0x15f1   :  { %v2022_v9 = vpop.f32.mrf.mxu3 }
0x15f2   :  { %v2023_v4 = vadd.f32 %v3374_v36, %v2022_v9 }
0x15f4   :  { %2046 = vst [vmem:[#allocation4] sm:$0xff] %v2023_v4 }
0x1650   :  { %v1919_v15 = vpop.f32.mrf.mxu2 }
0x1651   :  { %v1920_v6 = vadd.f32 %v2180_v13, %v1919_v15 }
0x1653   :  { %2301 = vtanh.f32 %v1920_v6  ;;  %v2147_v45 = vmul.f32 -1.442695, %v1920_v6 }
0x1655   :  { %2303 = vpow2.f32 %v2147_v45 }
0x1659   :  { %v2302_v17 = vpop.eup %2301 }
0x165a   :  { %1944 = vrot.lane.b32.xlu2 %v2302_v17, %s2361_s18 }
0x165b   :  { %v2304_v28 = vpop.eup %2303 }
0x165c   :  { %v1925_v38 = vadd.f32 1.0, %v2304_v28 }
0x165e   :  { %v2025_v18 = vpop.f32.mrf.mxu3  ;;  %2305 = vrcp.f32 %v1925_v38  ;;  %v1937_v43 = vand.u32 2147483648, %v1925_v38  ;;  %vm1931_vm7 = vweird.f32 %v1925_v38  ;;  %v1935_v31 = vand.u32 2147483647, %v1925_v38 }
0x165f   :  { %v2026_v19 = vadd.f32 %v3374_v36, %v2025_v18 }
0x1660   :  { %v1938_v39 = vor.u32 1.1754944e-38, %v1937_v43  ;;  %vm1936_vm9 = vcmp.eq.f32.partialorder %v1935_v31, 8.507059e+37 }
0x1661   :  { %2047 = vst [vmem:[#allocation4 + $0x8] sm:$0xff] %v2026_v19 }
0x1664   :  { %v2306_v41 = vpop.eup %2305 }
0x1665   :  { %v1927_v14 = vmul.f32 %v2306_v41, %v1925_v38  ;;  %vm1932_vm1 = vweird.f32 %v2306_v41 }
0x1666   :  { %v2028_v20 = vpop.f32.mrf.mxu3  ;;  %vm1933_vm8 = vmor %vm1931_vm7, %vm1932_vm1 }
0x1667   :  { %v2029_v22 = vadd.f32 %v3374_v36, %v2028_v20  ;;  %v1928_v42 = vsub.f32 1.0, %v1927_v14 }
0x1669   :  { %2048 = vst [vmem:[#allocation4 + $0x10] sm:$0xff] %v2029_v22  ;;  %v1929_v7 = vmul.f32 %v2306_v41, %v1928_v42 }
0x166b   :  { %v1930_v27 = vadd.f32 %v2306_v41, %v1929_v7 }
0x166d   :  { %v1934_v50 = vsel %vm1933_vm8, %v2306_v41, %v1930_v27 }
0x166e   :  { %v2031_v48 = vpop.f32.mrf.mxu3  ;;  %v1939_v29 = vsel %vm1936_vm9, %v1938_v39, %v1934_v50 }
0x166f   :  { %v2032_v25 = vadd.f32 %v3374_v36, %v2031_v48  ;;  %v1942_v54 = vmul.f32 %v1939_v29, %v3326_v8 }
0x1671   :  { %2049 = vst [vmem:[#allocation4 + $0x18] sm:$0xff] %v2032_v25 }
0x16b4   :  { %v1945_v53 = vpop.permute.xlu2 %1944 }
0x16b5   :  { %v1947_v40 = vmul.f32 %v1945_v53, %v1939_v29 }
0x16b7   :  { %1949 = vrot.lane.b32.xlu2 %v1947_v40, %s2361_s18 }
0x16bf   :  { %1375 = vrot.lane.b32.xlu2 %v3274_v35, %s2363_s29  ;;  %v1971_v35 = vld [vmem:[#allocation3 + $0x30] sm:$0xff] }
0x1711   :  { %v1950_v11 = vpop.permute.xlu2 %1949 }
0x1712   :  { %v1952_v55 = vadd.f32 %v1950_v11, %v1942_v54 }
0x1714   :  { %2307 = vtanh.f32 %v1952_v55  ;;  %1960 = vrot.lane.b32.xlu2 %v1952_v55, %s2363_s29 }
0x1719   :  { %v1376_v21 = vpop.permute.xlu2 %1375 }
0x171a   :  { %v2308_v5 = vpop.eup %2307  ;;  %1379 = vst.msk [vmem:[#allocation3 + $0x20] sm:$0xff] %vm289_vm5, %v1376_v21 }
0x171b   :  { %1955 = vrot.lane.b32.xlu1 %v2308_v5, %s2361_s18 }
0x1721   :  { %v1969_v56 = vld [vmem:[#allocation3 + $0x20] sm:$0xff] }
0x1722   :  { %2152 = vmatmul.msk.f32.gmra.mxu3 %vm289_vm5, %v1969_v56 }
0x172a   :  { %2153 = vmatmul.msk.f32.gmra.mxu3 %vm289_vm5, %v1970_v57 }
0x1732   :  { %2154 = vmatmul.msk.f32.gmra.mxu3 %vm289_vm5, %v1971_v35 }
0x176e   :  { %v1961_v58 = vpop.permute.xlu2 %1960 }
0x176f   :  { %1964 = vst.msk [vmem:[#allocation3 + $0x38] sm:$0xff] %vm289_vm5, %v1961_v58 }
0x1776   :  { %v1972_v60 = vld [vmem:[#allocation3 + $0x38] sm:$0xff] }
0x1777   :  { %2155 = vmatmul.msk.f32.gmra.mxu3 %vm289_vm5, %v1972_v60 }
0x178d   :  { %v1956_v63 = vpop.permute.xlu1 %1955 }
0x178e   :  { %v1958_v10 = vmul.f32 %v1956_v63, %v1939_v29 }
0x1790   :  { %2056 = vrot.lane.b32.xlu0 %v1958_v10, %s2362_s0  ;;  %s2365_s0 = smov 128  }
0x17a5   :  { %v2034_v8 = vpop.f32.mrf.mxu3 }
0x17a6   :  { %v2035_v44 = vadd.f32 %v3374_v36, %v2034_v8 }
0x17a8   :  { %2050 = vst [vmem:[#allocation4 + $0x20] sm:$0xff] %v2035_v44 }
0x17ad   :  { %v2037_v12 = vpop.f32.mrf.mxu3 }
0x17ae   :  { %v2038_v32 = vadd.f32 %v3374_v36, %v2037_v12 }
0x17b0   :  { %2051 = vst [vmem:[#allocation4 + $0x28] sm:$0xff] %v2038_v32 }
0x17b5   :  { %v2040_v46 = vpop.f32.mrf.mxu3 }
0x17b6   :  { %v2041_v24 = vadd.f32 %v3374_v36, %v2040_v46 }
0x17b8   :  { %2052 = vst [vmem:[#allocation4 + $0x30] sm:$0xff] %v2041_v24 }
0x17fa   :  { %v2043_v26 = vpop.f32.mrf.mxu3 }
0x17fb   :  { %v2044_v30 = vadd.f32 %v3374_v36, %v2043_v26 }
0x17fd   :  { %2053 = vst [vmem:[#allocation4 + $0x38] sm:$0xff] %v2044_v30 }
0x17fe   :  { %2074 = dma.vmem_to_hbm [thread:$0]  %s2067_s10, 1024, %s2069_s22, [#allocation5], %s2365_s0, %s2365_s0, %s2366_s7  }
0x1802   :  { %v2057_v52 = vpop.permute.xlu0 %2056 }
0x1803   :  { %v2059_v34 = vsel %vm289_vm5, %v2057_v52, %v1952_v55 }
0x1804   :  { %2061 = vst.msk [vmem:[#allocation6 + $0x8] sm:$0xff] %vm484_vm0, %v2059_v34 }
0x1805   :  { %2087 = dma.vmem_to_hbm [thread:$0]  %s2080_s24, 256, %s2082_s5, [#allocation7], %s2365_s0, %s2365_s0, %s2366_s7  }
0x1806   :  { %2357 = dma.done.wait [#allocation5], 1024  }
0x1807   :  { %2358 = vsyncadd [#allocation5], 4294966272 }
0x1808   :  { %2359 = dma.done.wait [#allocation7], 256  }
0x1809   :  { %2360 = vsyncadd [#allocation7], 4294967040 }
0x180a   :  { %2096 = vsyncpa [#allocation5], 1 }
0x180b   :  { %2097 = vsyncpa [#allocation7], 1 }

</bundles_post_ra>
